<compile_context>
chip_gen: v7x
topology: tpu7x:2x2x1
jax: 0.10.0
libtpu: 0.0.40
codegen_flags: <defaults>
</compile_context>

<pallas_src>
import functools

import jax
import jax.numpy as jnp
from jax.experimental import pallas as pl
from jax.experimental.pallas import tpu as pltpu

_BN_EPS = 1e-5


def _round_up(x, m):
    return (x + m - 1) // m * m


# ---------------------------------------------------------------------------
# Fused Pallas kernel: one image per grid step, both convs done in VMEM.
# ---------------------------------------------------------------------------
def _basic_block_kernel(x_ref, w1_ref, b1_ref, w2_ref, b2_ref, o_ref, h_ref,
                        *, H, W, Cp):
    Wp = W + 2                                   # padded row width (flat layout)
    M = H * Wp                                   # rows computed (incl. 2 garbage cols/row)
    offs = [ki * Wp + kj for ki in range(3) for kj in range(3)]
    head = _round_up(W + 3, 16)                  # 16-aligned start of h inside the scratch
    shift = head - (W + 3)
    Lsc = h_ref.shape[0]

    # In-kernel mask for the 2 wrap-around ("garbage") columns of every flat row.
    col = jax.lax.broadcasted_iota(jnp.int32, (M, 1), 0) % Wp
    valid = col < W

    # ---- conv1 (BN1 folded into w1) + bias + ReLU -------------------------
    acc = jnp.dot(x_ref[0, offs[0]:offs[0] + M, :], w1_ref[0],
                  preferred_element_type=jnp.float32)
    for k in range(1, 9):
        off = offs[k]
        acc += jnp.dot(x_ref[0, off:off + M, :], w1_ref[k],
                       preferred_element_type=jnp.float32)
    h = jnp.where(valid, jnp.maximum(acc + b1_ref[...], 0.0), 0.0)

    # ---- place zero-padded h in the VMEM scratch (never touches HBM) ------
    # Only the head/tail pad regions need zeroing; [head:head+M] is overwritten.
    h_ref[0:head, :] = jnp.zeros((head, Cp), h_ref.dtype)
    h_ref[head + M:Lsc, :] = jnp.zeros((Lsc - head - M, Cp), h_ref.dtype)
    h_ref[head:head + M, :] = h.astype(h_ref.dtype)

    # ---- conv2 (BN2 folded into w2) + bias + residual + ReLU --------------
    acc2 = jnp.dot(h_ref[shift + offs[0]:shift + offs[0] + M, :], w2_ref[0],
                   preferred_element_type=jnp.float32)
    for k in range(1, 9):
        off = offs[k]
        acc2 += jnp.dot(h_ref[shift + off:shift + off + M, :], w2_ref[k],
                        preferred_element_type=jnp.float32)
    # Residual: the interior of the padded input starts at flat row Wp+1, and its
    # garbage columns are exactly the zero pads.
    res = x_ref[0, Wp + 1:Wp + 1 + M, :].astype(jnp.float32)
    out = jnp.maximum(acc2 + b2_ref[...] + res, 0.0)
    o_ref[0] = out.astype(o_ref.dtype)


# ---------------------------------------------------------------------------
# Wrapper (all glue runs under one jax.jit together with the Pallas call)
# ---------------------------------------------------------------------------
def _fold_bn(w, gamma, beta, mean, var, C, Cp):
    """Fold BN (running stats) into the conv weight; returns bf16 (9, Cp, Cp) + f32 (1, Cp)."""
    scale = gamma / jnp.sqrt(var + _BN_EPS)                    # (Cout,)
    wf = w * scale[:, None, None, None]                        # (Cout, Cin, 3, 3)
    wk = jnp.transpose(wf, (2, 3, 1, 0)).reshape(9, C, C)      # (k, Cin, Cout)
    wk = jnp.pad(wk, ((0, 0), (0, Cp - C), (0, Cp - C))).astype(jnp.bfloat16)
    bias = jnp.pad(beta - mean * scale, (0, Cp - C)).reshape(1, Cp).astype(jnp.float32)
    return wk, bias


def _basic_block_forward(x_nchw, params):
    N, C, H, W = x_nchw.shape
    Cp = _round_up(C, 128)                       # lane-dense channel width
    Wp = W + 2
    M2 = H * Wp                                  # flat rows computed per conv
    Lin = (H + 3) * Wp                           # flat padded-input rows (+1 slack row)
    head = _round_up(W + 3, 16)
    shift = head - (W + 3)
    Lsc = _round_up(shift + 2 * Wp + 2 + M2, 16)  # VMEM scratch rows for padded h

    # Single padded bf16 copy of the activation (also serves as the residual).
    # conv input layout: zero-pad H by (1,2), W by (1,1); flatten rows.
    # TODO(synk): when chaining blocks, keep activations in this flat padded NHWC/bf16
    #             layout between blocks to avoid per-block transpose/pad round trips.
    x_nhwc = jnp.transpose(x_nchw, (0, 2, 3, 1)).astype(jnp.bfloat16)
    x_in = jnp.pad(x_nhwc, ((0, 0), (1, 2), (1, 1), (0, Cp - C)))
    x_in = x_in.reshape(N, Lin, Cp)

    w1, b1 = _fold_bn(params["w1"], params["g1"], params["b1"],
                      params["m1"], params["v1"], C, Cp)
    w2, b2 = _fold_bn(params["w2"], params["g2"], params["b2"],
                      params["m2"], params["v2"], C, Cp)

    kernel = functools.partial(_basic_block_kernel, H=H, W=W, Cp=Cp)

    # Generous VMEM budget (double-buffered ins/outs + weights + scratch + f32 accums).
    vmem_bytes = (2 * Lin * Cp * 2           # x_in  (bf16, x2 buffers)
                  + 2 * 2 * 9 * Cp * Cp * 2  # w1,w2 (bf16, x2 buffers)
                  + 2 * 2 * Cp * 4           # biases
                  + 2 * M2 * Cp * 2          # output (bf16, x2 buffers)
                  + Lsc * Cp * 2             # h scratch (bf16)
                  + 2 * M2 * Cp * 4)         # f32 accumulators
    vmem_limit = int(min(2 * vmem_bytes + (8 << 20), 64 << 20))

    out_flat = pl.pallas_call(
        kernel,
        out_shape=jax.ShapeDtypeStruct((N, M2, Cp), jnp.bfloat16),
        grid=(N,),
        in_specs=[
            pl.BlockSpec((1, Lin, Cp), lambda n: (n, 0, 0)),   # padded activation (bf16)
            pl.BlockSpec((9, Cp, Cp), lambda n: (0, 0, 0)),    # folded w1 (bf16)
            pl.BlockSpec((1, Cp), lambda n: (0, 0)),           # bias1 (f32)
            pl.BlockSpec((9, Cp, Cp), lambda n: (0, 0, 0)),    # folded w2 (bf16)
            pl.BlockSpec((1, Cp), lambda n: (0, 0)),           # bias2 (f32)
        ],
        out_specs=pl.BlockSpec((1, M2, Cp), lambda n: (n, 0, 0)),
        scratch_shapes=[pltpu.VMEM((Lsc, Cp), jnp.bfloat16)],  # zero-padded intermediate h
        compiler_params=pltpu.CompilerParams(
            dimension_semantics=("parallel",),
            vmem_limit_bytes=vmem_limit),
    )(x_in, w1, b1, w2, b2)

    out = out_flat.reshape(N, H, Wp, Cp)[:, :, :W, :C]
    out_nchw = jnp.transpose(out, (0, 3, 1, 2)).astype(jnp.float32)
    # BasicBlock.forward returns (offset, mask, out); offset/mask are None here.
    return None, None, out_nchw


basic_block_forward = jax.jit(_basic_block_forward)


# ---------------------------------------------------------------------------
# Pure-JAX reference (eval-mode BasicBlock) for a correctness check
# ---------------------------------------------------------------------------
def reference_forward(x, p):
    def conv(h, w):
        return jax.lax.conv_general_dilated(
            h, w, window_strides=(1, 1), padding=((1, 1), (1, 1)),
            dimension_numbers=("NCHW", "OIHW", "NCHW"),
            precision=jax.lax.Precision.HIGHEST)

    def bn(h, g, b, m, v):
        inv = g / jnp.sqrt(v + _BN_EPS)
        return h * inv[None, :, None, None] + (b - m * inv)[None, :, None, None]

    h = jax.nn.relu(bn(conv(x, p["w1"]), p["g1"], p["b1"], p["m1"], p["v1"]))
    y = bn(conv(h, p["w2"]), p["g2"], p["b2"], p["m2"], p["v2"])
    return jax.nn.relu(y + x)


if __name__ == "__main__":
    key = jax.random.PRNGKey(0)
    ks = jax.random.split(key, 11)
    N, C, H, W = 2, 64, 16, 16
    std = (2.0 / (9 * C)) ** 0.5  # kaiming-ish init for the 3x3 convs

    params = {
        "w1": jax.random.normal(ks[0], (C, C, 3, 3), jnp.float32) * std,
        "g1": 1.0 + 0.1 * jax.random.normal(ks[1], (C,), jnp.float32),
        "b1": 0.1 * jax.random.normal(ks[2], (C,), jnp.float32),
        "m1": 0.1 * jax.random.normal(ks[3], (C,), jnp.float32),
        "v1": 1.0 + 0.2 * jax.random.uniform(ks[4], (C,), jnp.float32),
        "w2": jax.random.normal(ks[5], (C, C, 3, 3), jnp.float32) * std,
        "g2": 1.0 + 0.1 * jax.random.normal(ks[6], (C,), jnp.float32),
        "b2": 0.1 * jax.random.normal(ks[7], (C,), jnp.float32),
        "m2": 0.1 * jax.random.normal(ks[8], (C,), jnp.float32),
        "v2": 1.0 + 0.2 * jax.random.uniform(ks[9], (C,), jnp.float32),
    }
    x = jax.random.normal(ks[10], (N, C, H, W), jnp.float32)

    offset, msk, out = basic_block_forward(x, params)
    out = jax.block_until_ready(out)

    assert offset is None and msk is None
    assert out.shape == (N, C, H, W), out.shape
    assert bool(jnp.all(jnp.isfinite(out)))

    ref = reference_forward(x, params)
    err = float(jnp.max(jnp.abs(out - ref)) / (jnp.max(jnp.abs(ref)) + 1e-6))
    assert err < 5e-2, f"mismatch vs reference: rel-max-err={err:.4f}"

    print("KERNEL_OK")
</pallas_src>

<mosaic_0001>
module attributes {stable_mosaic.version = 11 : i64} {
  func.func @_basic_block_kernel(%arg0: i32, %arg1: memref<1x342x128xbf16, #tpu.memory_space<vmem>>, %arg2: memref<9x128x128xbf16, #tpu.memory_space<vmem>>, %arg3: memref<1x128xf32, #tpu.memory_space<vmem>>, %arg4: memref<9x128x128xbf16, #tpu.memory_space<vmem>>, %arg5: memref<1x128xf32, #tpu.memory_space<vmem>>, %arg6: memref<1x288x128xbf16, #tpu.memory_space<vmem>>, %arg7: memref<352x128xbf16, #tpu.memory_space<vmem>>) attributes {dimension_semantics = [#tpu.dimension_semantics<parallel>], iteration_bounds = array<i64: 2>, scalar_prefetch = 0 : i64, scratch_operands = 1 : i64, tpu.core_type = #tpu.core_type<tc>, window_params = [{transform_indices = @transform_0, window_bounds = array<i64: 1, 342, 128>}, {pipeline_mode = #tpu.pipeline_mode<synchronous>, transform_indices = @transform_1, window_bounds = array<i64: 9, 128, 128>}, {pipeline_mode = #tpu.pipeline_mode<synchronous>, transform_indices = @transform_2, window_bounds = array<i64: 1, 128>}, {pipeline_mode = #tpu.pipeline_mode<synchronous>, transform_indices = @transform_3, window_bounds = array<i64: 9, 128, 128>}, {pipeline_mode = #tpu.pipeline_mode<synchronous>, transform_indices = @transform_4, window_bounds = array<i64: 1, 128>}, {transform_indices = @transform_5, window_bounds = array<i64: 1, 288, 128>}]} {
    %0 = tpu.iota {dimensions = array<i32: 0>} : vector<288x1xi32>
    %c18_i32 = arith.constant 18 : i32
    %c0_i32 = arith.constant 0 : i32
    %1 = arith.cmpi eq, %c18_i32, %c0_i32 : i32
    %c1_i32 = arith.constant 1 : i32
    %2 = arith.select %1, %c1_i32, %c18_i32 : i32
    %3 = vector.broadcast %2 : i32 to vector<288x1xi32>
    %4 = arith.remsi %0, %3 : vector<288x1xi32>
    %c0_i32_0 = arith.constant 0 : i32
    %5 = vector.broadcast %c0_i32_0 : i32 to vector<288x1xi32>
    %6 = arith.cmpi ne, %4, %5 : vector<288x1xi32>
    %c0_i32_1 = arith.constant 0 : i32
    %7 = vector.broadcast %c0_i32_1 : i32 to vector<288x1xi32>
    %8 = arith.cmpi slt, %4, %7 : vector<288x1xi32>
    %c0_i32_2 = arith.constant 0 : i32
    %9 = arith.cmpi slt, %2, %c0_i32_2 : i32
    %10 = vector.broadcast %9 : i1 to vector<288x1xi1>
    %11 = vector.broadcast %10 : vector<288x1xi1> to vector<288x1xi1>
    %12 = arith.xori %8, %11 : vector<288x1xi1>
    %13 = arith.andi %12, %6 : vector<288x1xi1>
    %14 = vector.broadcast %2 : i32 to vector<288x1xi32>
    %15 = arith.addi %4, %14 : vector<288x1xi32>
    %16 = arith.select %13, %15, %4 : vector<288x1xi1>, vector<288x1xi32>
    %c16_i32 = arith.constant 16 : i32
    %17 = vector.broadcast %c16_i32 : i32 to vector<288x1xi32>
    %18 = arith.cmpi slt, %16, %17 : vector<288x1xi32>
    %c0 = arith.constant 0 : index
    %c0_3 = arith.constant 0 : index
    %c0_4 = arith.constant 0 : index
    %19 = vector.load %arg1[%c0, %c0_3, %c0_4] : memref<1x342x128xbf16, #tpu.memory_space<vmem>>, vector<1x288x128xbf16>
    %20 = vector.shape_cast %19 : vector<1x288x128xbf16> to vector<288x128xbf16>
    %c0_5 = arith.constant 0 : index
    %c0_6 = arith.constant 0 : index
    %c0_7 = arith.constant 0 : index
    %21 = vector.load %arg2[%c0_5, %c0_6, %c0_7] : memref<9x128x128xbf16, #tpu.memory_space<vmem>>, vector<1x128x128xbf16>
    %22 = vector.shape_cast %21 : vector<1x128x128xbf16> to vector<128x128xbf16>
    %cst = arith.constant dense<0.000000e+00> : vector<288x128xf32>
    %23 = tpu.matmul %20, %22, %cst {dimension_numbers = #tpu.dot_dimension_numbers<[1], [0], [0], [1], [0, 0, 1, 1], [], []>} : vector<288x128xbf16>, vector<128x128xbf16>, vector<288x128xf32> -> vector<288x128xf32>
    %c0_8 = arith.constant 0 : index
    %c1 = arith.constant 1 : index
    %c0_9 = arith.constant 0 : index
    %24 = vector.load %arg1[%c0_8, %c1, %c0_9] : memref<1x342x128xbf16, #tpu.memory_space<vmem>>, vector<1x288x128xbf16>
    %25 = vector.shape_cast %24 : vector<1x288x128xbf16> to vector<288x128xbf16>
    %c1_10 = arith.constant 1 : index
    %c0_11 = arith.constant 0 : index
    %c0_12 = arith.constant 0 : index
    %26 = vector.load %arg2[%c1_10, %c0_11, %c0_12] : memref<9x128x128xbf16, #tpu.memory_space<vmem>>, vector<1x128x128xbf16>
    %27 = vector.shape_cast %26 : vector<1x128x128xbf16> to vector<128x128xbf16>
    %cst_13 = arith.constant dense<0.000000e+00> : vector<288x128xf32>
    %28 = tpu.matmul %25, %27, %cst_13 {dimension_numbers = #tpu.dot_dimension_numbers<[1], [0], [0], [1], [0, 0, 1, 1], [], []>} : vector<288x128xbf16>, vector<128x128xbf16>, vector<288x128xf32> -> vector<288x128xf32>
    %29 = arith.addf %23, %28 : vector<288x128xf32>
    %c0_14 = arith.constant 0 : index
    %c2 = arith.constant 2 : index
    %c0_15 = arith.constant 0 : index
    %30 = vector.load %arg1[%c0_14, %c2, %c0_15] : memref<1x342x128xbf16, #tpu.memory_space<vmem>>, vector<1x288x128xbf16>
    %31 = vector.shape_cast %30 : vector<1x288x128xbf16> to vector<288x128xbf16>
    %c2_16 = arith.constant 2 : index
    %c0_17 = arith.constant 0 : index
    %c0_18 = arith.constant 0 : index
    %32 = vector.load %arg2[%c2_16, %c0_17, %c0_18] : memref<9x128x128xbf16, #tpu.memory_space<vmem>>, vector<1x128x128xbf16>
    %33 = vector.shape_cast %32 : vector<1x128x128xbf16> to vector<128x128xbf16>
    %cst_19 = arith.constant dense<0.000000e+00> : vector<288x128xf32>
    %34 = tpu.matmul %31, %33, %cst_19 {dimension_numbers = #tpu.dot_dimension_numbers<[1], [0], [0], [1], [0, 0, 1, 1], [], []>} : vector<288x128xbf16>, vector<128x128xbf16>, vector<288x128xf32> -> vector<288x128xf32>
    %35 = arith.addf %29, %34 : vector<288x128xf32>
    %c0_20 = arith.constant 0 : index
    %c18 = arith.constant 18 : index
    %c0_21 = arith.constant 0 : index
    %36 = vector.load %arg1[%c0_20, %c18, %c0_21] : memref<1x342x128xbf16, #tpu.memory_space<vmem>>, vector<1x288x128xbf16>
    %37 = vector.shape_cast %36 : vector<1x288x128xbf16> to vector<288x128xbf16>
    %c3 = arith.constant 3 : index
    %c0_22 = arith.constant 0 : index
    %c0_23 = arith.constant 0 : index
    %38 = vector.load %arg2[%c3, %c0_22, %c0_23] : memref<9x128x128xbf16, #tpu.memory_space<vmem>>, vector<1x128x128xbf16>
    %39 = vector.shape_cast %38 : vector<1x128x128xbf16> to vector<128x128xbf16>
    %cst_24 = arith.constant dense<0.000000e+00> : vector<288x128xf32>
    %40 = tpu.matmul %37, %39, %cst_24 {dimension_numbers = #tpu.dot_dimension_numbers<[1], [0], [0], [1], [0, 0, 1, 1], [], []>} : vector<288x128xbf16>, vector<128x128xbf16>, vector<288x128xf32> -> vector<288x128xf32>
    %41 = arith.addf %35, %40 : vector<288x128xf32>
    %c0_25 = arith.constant 0 : index
    %c19 = arith.constant 19 : index
    %c0_26 = arith.constant 0 : index
    %42 = vector.load %arg1[%c0_25, %c19, %c0_26] : memref<1x342x128xbf16, #tpu.memory_space<vmem>>, vector<1x288x128xbf16>
    %43 = vector.shape_cast %42 : vector<1x288x128xbf16> to vector<288x128xbf16>
    %c4 = arith.constant 4 : index
    %c0_27 = arith.constant 0 : index
    %c0_28 = arith.constant 0 : index
    %44 = vector.load %arg2[%c4, %c0_27, %c0_28] : memref<9x128x128xbf16, #tpu.memory_space<vmem>>, vector<1x128x128xbf16>
    %45 = vector.shape_cast %44 : vector<1x128x128xbf16> to vector<128x128xbf16>
    %cst_29 = arith.constant dense<0.000000e+00> : vector<288x128xf32>
    %46 = tpu.matmul %43, %45, %cst_29 {dimension_numbers = #tpu.dot_dimension_numbers<[1], [0], [0], [1], [0, 0, 1, 1], [], []>} : vector<288x128xbf16>, vector<128x128xbf16>, vector<288x128xf32> -> vector<288x128xf32>
    %47 = arith.addf %41, %46 : vector<288x128xf32>
    %c0_30 = arith.constant 0 : index
    %c20 = arith.constant 20 : index
    %c0_31 = arith.constant 0 : index
    %48 = vector.load %arg1[%c0_30, %c20, %c0_31] : memref<1x342x128xbf16, #tpu.memory_space<vmem>>, vector<1x288x128xbf16>
    %49 = vector.shape_cast %48 : vector<1x288x128xbf16> to vector<288x128xbf16>
    %c5 = arith.constant 5 : index
    %c0_32 = arith.constant 0 : index
    %c0_33 = arith.constant 0 : index
    %50 = vector.load %arg2[%c5, %c0_32, %c0_33] : memref<9x128x128xbf16, #tpu.memory_space<vmem>>, vector<1x128x128xbf16>
    %51 = vector.shape_cast %50 : vector<1x128x128xbf16> to vector<128x128xbf16>
    %cst_34 = arith.constant dense<0.000000e+00> : vector<288x128xf32>
    %52 = tpu.matmul %49, %51, %cst_34 {dimension_numbers = #tpu.dot_dimension_numbers<[1], [0], [0], [1], [0, 0, 1, 1], [], []>} : vector<288x128xbf16>, vector<128x128xbf16>, vector<288x128xf32> -> vector<288x128xf32>
    %53 = arith.addf %47, %52 : vector<288x128xf32>
    %c0_35 = arith.constant 0 : index
    %c36 = arith.constant 36 : index
    %c0_36 = arith.constant 0 : index
    %54 = vector.load %arg1[%c0_35, %c36, %c0_36] : memref<1x342x128xbf16, #tpu.memory_space<vmem>>, vector<1x288x128xbf16>
    %55 = vector.shape_cast %54 : vector<1x288x128xbf16> to vector<288x128xbf16>
    %c6 = arith.constant 6 : index
    %c0_37 = arith.constant 0 : index
    %c0_38 = arith.constant 0 : index
    %56 = vector.load %arg2[%c6, %c0_37, %c0_38] : memref<9x128x128xbf16, #tpu.memory_space<vmem>>, vector<1x128x128xbf16>
    %57 = vector.shape_cast %56 : vector<1x128x128xbf16> to vector<128x128xbf16>
    %cst_39 = arith.constant dense<0.000000e+00> : vector<288x128xf32>
    %58 = tpu.matmul %55, %57, %cst_39 {dimension_numbers = #tpu.dot_dimension_numbers<[1], [0], [0], [1], [0, 0, 1, 1], [], []>} : vector<288x128xbf16>, vector<128x128xbf16>, vector<288x128xf32> -> vector<288x128xf32>
    %59 = arith.addf %53, %58 : vector<288x128xf32>
    %c0_40 = arith.constant 0 : index
    %c37 = arith.constant 37 : index
    %c0_41 = arith.constant 0 : index
    %60 = vector.load %arg1[%c0_40, %c37, %c0_41] : memref<1x342x128xbf16, #tpu.memory_space<vmem>>, vector<1x288x128xbf16>
    %61 = vector.shape_cast %60 : vector<1x288x128xbf16> to vector<288x128xbf16>
    %c7 = arith.constant 7 : index
    %c0_42 = arith.constant 0 : index
    %c0_43 = arith.constant 0 : index
    %62 = vector.load %arg2[%c7, %c0_42, %c0_43] : memref<9x128x128xbf16, #tpu.memory_space<vmem>>, vector<1x128x128xbf16>
    %63 = vector.shape_cast %62 : vector<1x128x128xbf16> to vector<128x128xbf16>
    %cst_44 = arith.constant dense<0.000000e+00> : vector<288x128xf32>
    %64 = tpu.matmul %61, %63, %cst_44 {dimension_numbers = #tpu.dot_dimension_numbers<[1], [0], [0], [1], [0, 0, 1, 1], [], []>} : vector<288x128xbf16>, vector<128x128xbf16>, vector<288x128xf32> -> vector<288x128xf32>
    %65 = arith.addf %59, %64 : vector<288x128xf32>
    %c0_45 = arith.constant 0 : index
    %c38 = arith.constant 38 : index
    %c0_46 = arith.constant 0 : index
    %66 = vector.load %arg1[%c0_45, %c38, %c0_46] : memref<1x342x128xbf16, #tpu.memory_space<vmem>>, vector<1x288x128xbf16>
    %67 = vector.shape_cast %66 : vector<1x288x128xbf16> to vector<288x128xbf16>
    %c8 = arith.constant 8 : index
    %c0_47 = arith.constant 0 : index
    %c0_48 = arith.constant 0 : index
    %68 = vector.load %arg2[%c8, %c0_47, %c0_48] : memref<9x128x128xbf16, #tpu.memory_space<vmem>>, vector<1x128x128xbf16>
    %69 = vector.shape_cast %68 : vector<1x128x128xbf16> to vector<128x128xbf16>
    %cst_49 = arith.constant dense<0.000000e+00> : vector<288x128xf32>
    %70 = tpu.matmul %67, %69, %cst_49 {dimension_numbers = #tpu.dot_dimension_numbers<[1], [0], [0], [1], [0, 0, 1, 1], [], []>} : vector<288x128xbf16>, vector<128x128xbf16>, vector<288x128xf32> -> vector<288x128xf32>
    %71 = arith.addf %65, %70 : vector<288x128xf32>
    %c0_50 = arith.constant 0 : index
    %c0_51 = arith.constant 0 : index
    %72 = vector.load %arg3[%c0_50, %c0_51] : memref<1x128xf32, #tpu.memory_space<vmem>>, vector<1x128xf32>
    %73 = vector.broadcast %72 : vector<1x128xf32> to vector<288x128xf32>
    %74 = arith.addf %71, %73 : vector<288x128xf32>
    %cst_52 = arith.constant 0.000000e+00 : f32
    %75 = vector.broadcast %cst_52 : f32 to vector<288x128xf32>
    %76 = arith.maximumf %74, %75 : vector<288x128xf32>
    %cst_53 = arith.constant 0.000000e+00 : f32
    %77 = vector.shape_cast %18 : vector<288x1xi1> to vector<288x1xi1>
    %78 = vector.broadcast %77 : vector<288x1xi1> to vector<288x128xi1>
    %79 = vector.broadcast %cst_53 : f32 to vector<288x128xf32>
    %80 = arith.select %78, %76, %79 : vector<288x128xi1>, vector<288x128xf32>
    %cst_54 = arith.constant 0.000000e+00 : bf16
    %81 = vector.broadcast %cst_54 : bf16 to vector<32x128xbf16>
    %c0_55 = arith.constant 0 : index
    %c0_56 = arith.constant 0 : index
    %82 = vector.load %arg7[%c0_55, %c0_56] : memref<352x128xbf16, #tpu.memory_space<vmem>>, vector<32x128xbf16>
    tpu.vector_store %arg7[%c0_55, %c0_56], %81 {strides = array<i32>} : memref<352x128xbf16, #tpu.memory_space<vmem>>, vector<32x128xbf16>,
    %cst_57 = arith.constant 0.000000e+00 : bf16
    %83 = vector.broadcast %cst_57 : bf16 to vector<32x128xbf16>
    %c320 = arith.constant 320 : index
    %c0_58 = arith.constant 0 : index
    %84 = vector.load %arg7[%c320, %c0_58] : memref<352x128xbf16, #tpu.memory_space<vmem>>, vector<32x128xbf16>
    tpu.vector_store %arg7[%c320, %c0_58], %83 {strides = array<i32>} : memref<352x128xbf16, #tpu.memory_space<vmem>>, vector<32x128xbf16>,
    %85 = arith.truncf %80 : vector<288x128xf32> to vector<288x128xbf16>
    %c32 = arith.constant 32 : index
    %c0_59 = arith.constant 0 : index
    %86 = vector.load %arg7[%c32, %c0_59] : memref<352x128xbf16, #tpu.memory_space<vmem>>, vector<288x128xbf16>
    tpu.vector_store %arg7[%c32, %c0_59], %85 {strides = array<i32>} : memref<352x128xbf16, #tpu.memory_space<vmem>>, vector<288x128xbf16>,
    %c13 = arith.constant 13 : index
    %c0_60 = arith.constant 0 : index
    %87 = vector.load %arg7[%c13, %c0_60] : memref<352x128xbf16, #tpu.memory_space<vmem>>, vector<288x128xbf16>
    %c0_61 = arith.constant 0 : index
    %c0_62 = arith.constant 0 : index
    %c0_63 = arith.constant 0 : index
    %88 = vector.load %arg4[%c0_61, %c0_62, %c0_63] : memref<9x128x128xbf16, #tpu.memory_space<vmem>>, vector<1x128x128xbf16>
    %89 = vector.shape_cast %88 : vector<1x128x128xbf16> to vector<128x128xbf16>
    %cst_64 = arith.constant dense<0.000000e+00> : vector<288x128xf32>
    %90 = tpu.matmul %87, %89, %cst_64 {dimension_numbers = #tpu.dot_dimension_numbers<[1], [0], [0], [1], [0, 0, 1, 1], [], []>} : vector<288x128xbf16>, vector<128x128xbf16>, vector<288x128xf32> -> vector<288x128xf32>
    %c14 = arith.constant 14 : index
    %c0_65 = arith.constant 0 : index
    %91 = vector.load %arg7[%c14, %c0_65] : memref<352x128xbf16, #tpu.memory_space<vmem>>, vector<288x128xbf16>
    %c1_66 = arith.constant 1 : index
    %c0_67 = arith.constant 0 : index
    %c0_68 = arith.constant 0 : index
    %92 = vector.load %arg4[%c1_66, %c0_67, %c0_68] : memref<9x128x128xbf16, #tpu.memory_space<vmem>>, vector<1x128x128xbf16>
    %93 = vector.shape_cast %92 : vector<1x128x128xbf16> to vector<128x128xbf16>
    %cst_69 = arith.constant dense<0.000000e+00> : vector<288x128xf32>
    %94 = tpu.matmul %91, %93, %cst_69 {dimension_numbers = #tpu.dot_dimension_numbers<[1], [0], [0], [1], [0, 0, 1, 1], [], []>} : vector<288x128xbf16>, vector<128x128xbf16>, vector<288x128xf32> -> vector<288x128xf32>
    %95 = arith.addf %90, %94 : vector<288x128xf32>
    %c15 = arith.constant 15 : index
    %c0_70 = arith.constant 0 : index
    %96 = vector.load %arg7[%c15, %c0_70] : memref<352x128xbf16, #tpu.memory_space<vmem>>, vector<288x128xbf16>
    %c2_71 = arith.constant 2 : index
    %c0_72 = arith.constant 0 : index
    %c0_73 = arith.constant 0 : index
    %97 = vector.load %arg4[%c2_71, %c0_72, %c0_73] : memref<9x128x128xbf16, #tpu.memory_space<vmem>>, vector<1x128x128xbf16>
    %98 = vector.shape_cast %97 : vector<1x128x128xbf16> to vector<128x128xbf16>
    %cst_74 = arith.constant dense<0.000000e+00> : vector<288x128xf32>
    %99 = tpu.matmul %96, %98, %cst_74 {dimension_numbers = #tpu.dot_dimension_numbers<[1], [0], [0], [1], [0, 0, 1, 1], [], []>} : vector<288x128xbf16>, vector<128x128xbf16>, vector<288x128xf32> -> vector<288x128xf32>
    %100 = arith.addf %95, %99 : vector<288x128xf32>
    %c31 = arith.constant 31 : index
    %c0_75 = arith.constant 0 : index
    %101 = vector.load %arg7[%c31, %c0_75] : memref<352x128xbf16, #tpu.memory_space<vmem>>, vector<288x128xbf16>
    %c3_76 = arith.constant 3 : index
    %c0_77 = arith.constant 0 : index
    %c0_78 = arith.constant 0 : index
    %102 = vector.load %arg4[%c3_76, %c0_77, %c0_78] : memref<9x128x128xbf16, #tpu.memory_space<vmem>>, vector<1x128x128xbf16>
    %103 = vector.shape_cast %102 : vector<1x128x128xbf16> to vector<128x128xbf16>
    %cst_79 = arith.constant dense<0.000000e+00> : vector<288x128xf32>
    %104 = tpu.matmul %101, %103, %cst_79 {dimension_numbers = #tpu.dot_dimension_numbers<[1], [0], [0], [1], [0, 0, 1, 1], [], []>} : vector<288x128xbf16>, vector<128x128xbf16>, vector<288x128xf32> -> vector<288x128xf32>
    %105 = arith.addf %100, %104 : vector<288x128xf32>
    %c32_80 = arith.constant 32 : index
    %c0_81 = arith.constant 0 : index
    %106 = vector.load %arg7[%c32_80, %c0_81] : memref<352x128xbf16, #tpu.memory_space<vmem>>, vector<288x128xbf16>
    %c4_82 = arith.constant 4 : index
    %c0_83 = arith.constant 0 : index
    %c0_84 = arith.constant 0 : index
    %107 = vector.load %arg4[%c4_82, %c0_83, %c0_84] : memref<9x128x128xbf16, #tpu.memory_space<vmem>>, vector<1x128x128xbf16>
    %108 = vector.shape_cast %107 : vector<1x128x128xbf16> to vector<128x128xbf16>
    %cst_85 = arith.constant dense<0.000000e+00> : vector<288x128xf32>
    %109 = tpu.matmul %106, %108, %cst_85 {dimension_numbers = #tpu.dot_dimension_numbers<[1], [0], [0], [1], [0, 0, 1, 1], [], []>} : vector<288x128xbf16>, vector<128x128xbf16>, vector<288x128xf32> -> vector<288x128xf32>
    %110 = arith.addf %105, %109 : vector<288x128xf32>
    %c33 = arith.constant 33 : index
    %c0_86 = arith.constant 0 : index
    %111 = vector.load %arg7[%c33, %c0_86] : memref<352x128xbf16, #tpu.memory_space<vmem>>, vector<288x128xbf16>
    %c5_87 = arith.constant 5 : index
    %c0_88 = arith.constant 0 : index
    %c0_89 = arith.constant 0 : index
    %112 = vector.load %arg4[%c5_87, %c0_88, %c0_89] : memref<9x128x128xbf16, #tpu.memory_space<vmem>>, vector<1x128x128xbf16>
    %113 = vector.shape_cast %112 : vector<1x128x128xbf16> to vector<128x128xbf16>
    %cst_90 = arith.constant dense<0.000000e+00> : vector<288x128xf32>
    %114 = tpu.matmul %111, %113, %cst_90 {dimension_numbers = #tpu.dot_dimension_numbers<[1], [0], [0], [1], [0, 0, 1, 1], [], []>} : vector<288x128xbf16>, vector<128x128xbf16>, vector<288x128xf32> -> vector<288x128xf32>
    %115 = arith.addf %110, %114 : vector<288x128xf32>
    %c49 = arith.constant 49 : index
    %c0_91 = arith.constant 0 : index
    %116 = vector.load %arg7[%c49, %c0_91] : memref<352x128xbf16, #tpu.memory_space<vmem>>, vector<288x128xbf16>
    %c6_92 = arith.constant 6 : index
    %c0_93 = arith.constant 0 : index
    %c0_94 = arith.constant 0 : index
    %117 = vector.load %arg4[%c6_92, %c0_93, %c0_94] : memref<9x128x128xbf16, #tpu.memory_space<vmem>>, vector<1x128x128xbf16>
    %118 = vector.shape_cast %117 : vector<1x128x128xbf16> to vector<128x128xbf16>
    %cst_95 = arith.constant dense<0.000000e+00> : vector<288x128xf32>
    %119 = tpu.matmul %116, %118, %cst_95 {dimension_numbers = #tpu.dot_dimension_numbers<[1], [0], [0], [1], [0, 0, 1, 1], [], []>} : vector<288x128xbf16>, vector<128x128xbf16>, vector<288x128xf32> -> vector<288x128xf32>
    %120 = arith.addf %115, %119 : vector<288x128xf32>
    %c50 = arith.constant 50 : index
    %c0_96 = arith.constant 0 : index
    %121 = vector.load %arg7[%c50, %c0_96] : memref<352x128xbf16, #tpu.memory_space<vmem>>, vector<288x128xbf16>
    %c7_97 = arith.constant 7 : index
    %c0_98 = arith.constant 0 : index
    %c0_99 = arith.constant 0 : index
    %122 = vector.load %arg4[%c7_97, %c0_98, %c0_99] : memref<9x128x128xbf16, #tpu.memory_space<vmem>>, vector<1x128x128xbf16>
    %123 = vector.shape_cast %122 : vector<1x128x128xbf16> to vector<128x128xbf16>
    %cst_100 = arith.constant dense<0.000000e+00> : vector<288x128xf32>
    %124 = tpu.matmul %121, %123, %cst_100 {dimension_numbers = #tpu.dot_dimension_numbers<[1], [0], [0], [1], [0, 0, 1, 1], [], []>} : vector<288x128xbf16>, vector<128x128xbf16>, vector<288x128xf32> -> vector<288x128xf32>
    %125 = arith.addf %120, %124 : vector<288x128xf32>
    %c51 = arith.constant 51 : index
    %c0_101 = arith.constant 0 : index
    %126 = vector.load %arg7[%c51, %c0_101] : memref<352x128xbf16, #tpu.memory_space<vmem>>, vector<288x128xbf16>
    %c8_102 = arith.constant 8 : index
    %c0_103 = arith.constant 0 : index
    %c0_104 = arith.constant 0 : index
    %127 = vector.load %arg4[%c8_102, %c0_103, %c0_104] : memref<9x128x128xbf16, #tpu.memory_space<vmem>>, vector<1x128x128xbf16>
    %128 = vector.shape_cast %127 : vector<1x128x128xbf16> to vector<128x128xbf16>
    %cst_105 = arith.constant dense<0.000000e+00> : vector<288x128xf32>
    %129 = tpu.matmul %126, %128, %cst_105 {dimension_numbers = #tpu.dot_dimension_numbers<[1], [0], [0], [1], [0, 0, 1, 1], [], []>} : vector<288x128xbf16>, vector<128x128xbf16>, vector<288x128xf32> -> vector<288x128xf32>
    %130 = arith.addf %125, %129 : vector<288x128xf32>
    %c0_106 = arith.constant 0 : index
    %c19_107 = arith.constant 19 : index
    %c0_108 = arith.constant 0 : index
    %131 = vector.load %arg1[%c0_106, %c19_107, %c0_108] : memref<1x342x128xbf16, #tpu.memory_space<vmem>>, vector<1x288x128xbf16>
    %132 = vector.shape_cast %131 : vector<1x288x128xbf16> to vector<288x128xbf16>
    %133 = arith.extf %132 : vector<288x128xbf16> to vector<288x128xf32>
    %c0_109 = arith.constant 0 : index
    %c0_110 = arith.constant 0 : index
    %134 = vector.load %arg5[%c0_109, %c0_110] : memref<1x128xf32, #tpu.memory_space<vmem>>, vector<1x128xf32>
    %135 = vector.broadcast %134 : vector<1x128xf32> to vector<288x128xf32>
    %136 = arith.addf %130, %135 : vector<288x128xf32>
    %137 = arith.addf %136, %133 : vector<288x128xf32>
    %cst_111 = arith.constant 0.000000e+00 : f32
    %138 = vector.broadcast %cst_111 : f32 to vector<288x128xf32>
    %139 = arith.maximumf %137, %138 : vector<288x128xf32>
    %140 = arith.truncf %139 : vector<288x128xf32> to vector<288x128xbf16>
    %c0_112 = arith.constant 0 : index
    %c0_113 = arith.constant 0 : index
    %c0_114 = arith.constant 0 : index
    %141 = vector.load %arg6[%c0_112, %c0_113, %c0_114] : memref<1x288x128xbf16, #tpu.memory_space<vmem>>, vector<1x288x128xbf16>
    %142 = vector.shape_cast %141 : vector<1x288x128xbf16> to vector<288x128xbf16>
    %143 = vector.shape_cast %140 : vector<288x128xbf16> to vector<1x288x128xbf16>
    tpu.vector_store %arg6[%c0_112, %c0_113, %c0_114], %143 {strides = array<i32>} : memref<1x288x128xbf16, #tpu.memory_space<vmem>>, vector<1x288x128xbf16>,
    return
  }
  func.func @transform_0(%arg0: i32) -> (i32, i32, i32) {
    %c0_i32 = arith.constant 0 : i32
    %c0_i32_0 = arith.constant 0 : i32
    %c0_i32_1 = arith.constant 0 : i32
    return %arg0, %c0_i32, %c0_i32_0 : i32, i32, i32
  }
  func.func @transform_1(%arg0: i32) -> (i32, i32, i32) {
    %c0_i32 = arith.constant 0 : i32
    %c0_i32_0 = arith.constant 0 : i32
    %c0_i32_1 = arith.constant 0 : i32
    %c0_i32_2 = arith.constant 0 : i32
    return %c0_i32, %c0_i32_0, %c0_i32_1 : i32, i32, i32
  }
  func.func @transform_2(%arg0: i32) -> (i32, i32) {
    %c0_i32 = arith.constant 0 : i32
    %c0_i32_0 = arith.constant 0 : i32
    %c0_i32_1 = arith.constant 0 : i32
    return %c0_i32, %c0_i32_0 : i32, i32
  }
  func.func @transform_3(%arg0: i32) -> (i32, i32, i32) {
    %c0_i32 = arith.constant 0 : i32
    %c0_i32_0 = arith.constant 0 : i32
    %c0_i32_1 = arith.constant 0 : i32
    %c0_i32_2 = arith.constant 0 : i32
    return %c0_i32, %c0_i32_0, %c0_i32_1 : i32, i32, i32
  }
  func.func @transform_4(%arg0: i32) -> (i32, i32) {
    %c0_i32 = arith.constant 0 : i32
    %c0_i32_0 = arith.constant 0 : i32
    %c0_i32_1 = arith.constant 0 : i32
    return %c0_i32, %c0_i32_0 : i32, i32
  }
  func.func @transform_5(%arg0: i32) -> (i32, i32, i32) {
    %c0_i32 = arith.constant 0 : i32
    %c0_i32_0 = arith.constant 0 : i32
    %c0_i32_1 = arith.constant 0 : i32
    return %arg0, %c0_i32, %c0_i32_0 : i32, i32, i32
  }
}

</mosaic_0001>

<bundles_post_ra>
// kernel: _basic_block_forward.1
= control target key start
LH: loop header
LB: loop body
LE: loop exit
PB: predicated region body
PF: predicated region fallthrough
CT: control target
= control target key end

     0   :  { %s11961_s18 = smov 0   ;;  %s15481_s0 = inlined_call_operand.vmem [shape: bf16[2,342,128], index: 0, kind: input, shape index: {}]   ;;  %s15482_s1 = inlined_call_operand.vmem [shape: bf16[9,128,128], index: 1, kind: input, shape index: {}]   ;;  %s15483_s2 = inlined_call_operand.vmem [shape: f32[1,128], index: 2, kind: input, shape index: {}]   ;;  %s15484_s3 = inlined_call_operand.vmem [shape: bf16[9,128,128], index: 3, kind: input, shape index: {}]   ;;  %s15485_s4 = inlined_call_operand.vmem [shape: f32[1,128], index: 4, kind: input, shape index: {}]   ;;  %s15486_s5 = inlined_call_operand.vmem [shape: bf16[2,288,128], index: 5, kind: output, shape index: {}]  }
   0x1 LB: > { %s8883_s19 = sadd.s32 4294967295, %s11928_s18   ;;  %p8887_p0 = scmp.ge.s32.totalorder %s11928_s18, 1  ;;  %s11928_s18 = sphi %s11961_s18, %s15_s18  }
   0x2   : > { %p187_p1 = scmp.lt.s32.totalorder %s11928_s18, 3 }
   0x4   : > { %p188_p2 = pnand %p8887_p0, %p187_p1 }
   0x6   : > { %191 = sbr.rel (%p188_p2) target bundleno = 1751 (0x6d7), region = 40 }
   0xd   : > { %v11683_v0 = vld [vmem:[%s15482_s1 + $0x40] sm:$0xff]   ;;  %p215_p3 = scmp.lt.s32.totalorder %s8883_s19, 1  ;;  %v11684_v1 = vld [vmem:[%s15482_s1 + $0x48] sm:$0xff]   ;;  %v11685_v2 = vld [vmem:[%s15482_s1 + $0x50] sm:$0xff]   ;;  %vm15490_vm0 = vsmask.f32 7424 }
   0xe   : > { %10088 = vmatprep.subr.bf16.mxu0 %v11683_v0  ;;  %v11686_v3 = vld [vmem:[%s15482_s1 + $0x58] sm:$0xff]   ;;  %v11687_v11 = vld [vmem:[%s15482_s1 + $0x60] sm:$0xff]   ;;  %v11688_v15 = vld [vmem:[%s15482_s1 + $0x68] sm:$0xff]   ;;  %vm15489_vm1 = vcmask 1046528   ;;  %vm15488_vm2 = vsmask.f32 6400 }
   0xf   : > { %s16335_s19 = smov (!%p215_p3, %s8883_s19), 1  ;;  %10089 = vmatpush3.bf16.msra.mxu0 %v11683_v0  ;;  %v11689_v18 = vld [vmem:[%s15482_s1 + $0x70] sm:$0xff]   ;;  %v11690_v21 = vld [vmem:[%s15482_s1 + $0x78] sm:$0xff]   ;;  %v11694_v28 = vld [vmem:[%s15482_s1] sm:$0xff]   ;;  %vm2966_vm3 = vcmask 1045504   ;;  %vm15487_vm5 = vcmask 1044480  }
  0x10   : > { %10090 = vmatprep.subr.bf16.mxu0 %v11684_v1  ;;  %s11600_s26 = smul.u32 172, %s16335_s19  ;;  %v11697_v38 = vld [vmem:[%s15482_s1 + $0x8] sm:$0xff]   ;;  %v11700_v49 = vld [vmem:[%s15482_s1 + $0x10] sm:$0xff]   ;;  %v11703_v58 = vld [vmem:[%s15482_s1 + $0x18] sm:$0xff]   ;;  %vm3767_vm4 = vsmask.f32 5376 }
  0x11   : > { %vm15491_vm6 = vcmask 1040384   ;;  %s11601_s30 = smul.u32 144, %s16335_s19 }
  0x12   : > { %s11984_s29 = scalar_lea.vmem %s15481_s0, %s11600_s26 }
  0x13   : > { %10091 = vmatpush3.bf16.msra.mxu0 %v11684_v1  ;;  %v875_v4 = vld [vmem:[%s11984_s29] sm:$0xf]  ;;  %v876_v5 = vld [vmem:[%s11984_s29 + $0x4] sm:$0xf]  ;;  %v11994_v7 = vld [vmem:[%s11984_s29 + $0x8] sm:$0xff]   ;;  %s15373_s8 = scalar_lea.vmem %s15486_s5, %s11601_s30 }
  0x14   : > { %10092 = vmatprep.subr.bf16.mxu0 %v11685_v2  ;;  %v11991_v6 = vcombine.low %v875_v4, %v876_v5  ;;  %v1047_v10 = vshll.u32 %v11994_v7, 16  ;;  %v12007_v17 = vld [vmem:[%s11984_s29 + $0x10] sm:$0xff]   ;;  %v12013_v19 = vld [vmem:[%s11984_s29 + $0x18] sm:$0xff]   ;;  %v1051_v22 = vshrl.u32 %v11994_v7, 16  ;;  %v12023_v26 = vld [vmem:[%s11984_s29 + $0x20] sm:$0xff]  }
  0x15   : > { %v1055_v20 = vshll.u32 %v12007_v17, 16  ;;  %v1059_v23 = vshrl.u32 %v12007_v17, 16  ;;  %v1063_v24 = vshll.u32 %v12013_v19, 16  ;;  %v12029_v31 = vld [vmem:[%s11984_s29 + $0x28] sm:$0xff]   ;;  %v1067_v32 = vshrl.u32 %v12013_v19, 16  ;;  %v12034_v34 = vld [vmem:[%s11984_s29 + $0x30] sm:$0xff]  }
  0x16   : > { %v1040_v8 = vshrl.u32 %v11991_v6, 16  ;;  %v1042_v9 = vshll.u32 %v11991_v6, 16  ;;  %v1049_v13 = vrot.slane %v1047_v10, 1  ;;  %v1071_v33 = vshll.u32 %v12023_v26, 16  ;;  %v12038_v36 = vld [vmem:[%s11984_s29 + $0x38] sm:$0xff]   ;;  %v12047_v41 = vld [vmem:[%s11984_s29 + $0x40] sm:$0xff]  }
  0x17   : > { %10093 = vmatpush3.bf16.msra.mxu0 %v11685_v2  ;;  %v1057_v25 = vrot.slane %v1055_v20, 1  ;;  %v1065_v30 = vrot.slane %v1063_v24, 1  ;;  %v1075_v39 = vshrl.u32 %v12023_v26, 16  ;;  %v1079_v40 = vshll.u32 %v12029_v31, 16  ;;  %v12052_v46 = vld [vmem:[%s11984_s29 + $0x48] sm:$0xff]   ;;  %v12060_v52 = vld [vmem:[%s11984_s29 + $0x50] sm:$0xff]  }
  0x18   : > { %10094 = vmatprep.subr.bf16.mxu0 %v11686_v3  ;;  %v1044_v12 = vrot.slane %v1042_v9, 1  ;;  %v1053_v27 = vor.u32 %v1051_v22, %v1049_v13  ;;  %v1073_v43 = vrot.slane %v1071_v33, 1  ;;  %v1087_v44 = vshll.u32 %v12034_v34, 16  ;;  %v12071_v61 = vld [vmem:[%s11984_s29 + $0x58] sm:$0xff]  }
  0x19   : > { %v1061_v29 = vor.u32 %v1059_v23, %v1057_v25  ;;  %v1069_v42 = vor.u32 %v1067_v32, %v1065_v30  ;;  %v1095_v45 = vshll.u32 %v12038_v36, 16  ;;  %v1081_v48 = vrot.slane %v1079_v40, 1 }
  0x1a   : > { %v1045_v14 = vor.u32 %v1044_v12, %v1040_v8  ;;  %v1058_v35 = vsel %vm15490_vm0, %v1053_v27, %v1057_v25  ;;  %v1077_v47 = vor.u32 %v1075_v39, %v1073_v43  ;;  %v1083_v50 = vshrl.u32 %v12029_v31, 16  ;;  %v11706_v8 = vld [vmem:[%s15482_s1 + $0x20] sm:$0xff]   ;;  %v12086_v12 = vld [vmem:[%s11984_s29 + $0x68] sm:$0xff]   ;;  %v11712_v25 = vld [vmem:[%s15482_s1 + $0x30] sm:$0xff]  }
  0x1b   : > { %10095 = vmatpush3.bf16.msra.mxu0 %v11686_v3  ;;  %v1066_v37 = vsel %vm15490_vm0, %v1061_v29, %v1065_v30  ;;  %v1103_v51 = vshll.u32 %v12047_v41, 16  ;;  %v1074_v53 = vsel %vm15490_vm0, %v1069_v42, %v1073_v43  ;;  %v1091_v54 = vshrl.u32 %v12034_v34, 16  ;;  %v12077_v3 = vld [vmem:[%s11984_s29 + $0x60] sm:$0xff]   ;;  %v11716_v29 = vld [vmem:[%s15482_s1 + $0x38] sm:$0xff]  }
  0x1c   : > { %10096 = vmatprep.subr.bf16.mxu0 %v11687_v11  ;;  %v1050_v16 = vsel %vm15490_vm0, %v1045_v14, %v1049_v13  ;;  %v1099_v55 = vshrl.u32 %v12038_v36, 16  ;;  %v1089_v56 = vrot.slane %v1087_v44, 1  ;;  %v1097_v57 = vrot.slane %v1095_v45, 1  ;;  %v11718_v39 = vld [vmem:[%s15482_s1 + $0x80] sm:$0xff]   ;;  %v12113_v42 = vld [vmem:[%s11984_s29 + $0x78] sm:$0xff]  }
  0x1d   : > { %10104 = vmatprep.mubr.bf16.mxu0 %v1050_v16  ;;  %v1107_v59 = vshrl.u32 %v12047_v41, 16  ;;  %v1111_v60 = vshll.u32 %v12052_v46, 16  ;;  %v1082_v62 = vsel %vm15490_vm0, %v1077_v47, %v1081_v48  ;;  %v1105_v63 = vrot.slane %v1103_v51, 1 }
  0x1e   : > { %v1119_v0 = vshll.u32 %v12060_v52, 16  ;;  %v1085_v1 = vor.u32 %v1083_v50, %v1081_v48  ;;  %v1127_v2 = vshll.u32 %v12071_v61, 16  ;;  %v1093_v4 = vor.u32 %v1091_v54, %v1089_v56  ;;  %v12124_v54 = vld [vmem:[%s11984_s29 + $0x88] sm:$0xff]  }
  0x1f   : > { %10097 = vmatpush3.bf16.msra.mxu0 %v11687_v11  ;;  %v1115_v5 = vshrl.u32 %v12052_v46, 16  ;;  %v1113_v9 = vrot.slane %v1111_v60, 1  ;;  %v1123_v10 = vshrl.u32 %v12060_v52, 16  ;;  %v1131_v11 = vshrl.u32 %v12071_v61, 16 }
  0x20   : > { %10098 = vmatprep.subr.bf16.mxu0 %v11688_v15  ;;  %v1090_v13 = vsel %vm15490_vm0, %v1085_v1, %v1089_v56  ;;  %v1121_v14 = vrot.slane %v1119_v0, 1  ;;  %v1135_v16 = vshll.u32 %v12077_v3, 16  ;;  %v1098_v20 = vsel %vm15490_vm0, %v1093_v4, %v1097_v57  ;;  %v12132_v0 = vld [vmem:[%s11984_s29 + $0x90] ss:$0 sps:$4 sm:$0x11]  }
  0x21   : > { %v1143_v22 = vshll.u32 %v12086_v12, 16  ;;  %v1101_v23 = vor.u32 %v1099_v55, %v1097_v57  ;;  %v1109_v27 = vor.u32 %v1107_v59, %v1105_v63  ;;  %v1159_v47 = vshll.u32 %v12113_v42, 16 }
  0x22   : > { %v1137_v24 = vrot.slane %v1135_v16, 1  ;;  %v1125_v40 = vor.u32 %v1123_v10, %v1121_v14  ;;  %v1163_v50 = vshrl.u32 %v12113_v42, 16  ;;  %v1183_v10 = vshll.u32 %v12132_v0, 16 }
  0x23   : > { %10099 = vmatpush3.bf16.msra.mxu0 %v11688_v15  ;;  %v1129_v15 = vrot.slane %v1127_v2, 1  ;;  %v1106_v30 = vsel %vm15490_vm0, %v1101_v23, %v1105_v63  ;;  %v1114_v32 = vsel %vm15490_vm0, %v1109_v27, %v1113_v9  ;;  %v1145_v33 = vrot.slane %v1143_v22, 1  ;;  %v11721_v22 = vld [vmem:[%s15482_s1 + $0x98] sm:$0xff]   ;;  %v11891_v23 = vld [vmem:[%s11984_s29 + $0x10] sm:$0xff]  }
  0x24   : > { %10100 = vmatprep.subr.bf16.mxu0 %v11689_v18  ;;  %v1161_v57 = vrot.slane %v1159_v47, 1  ;;  %v1185_v16 = vrot.slane %v1183_v10, 1  ;;  %v11738_v10 = vld [vmem:[%s15482_s1 + $0x100] sm:$0xff]  }
  0x25   : > { %v1130_v44 = vsel %vm15490_vm0, %v1125_v40, %v1129_v15  ;;  %v1133_v48 = vor.u32 %v1131_v11, %v1129_v15 }
  0x27   : > { %10101 = vmatpush3.bf16.msra.mxu0 %v11689_v18  ;;  %v11709_v18 = vld [vmem:[%s15482_s1 + $0x28] sm:$0xff]   ;;  %v1138_v55 = vsel %vm15490_vm0, %v1133_v48, %v1137_v24  ;;  %v11896_v48 = vld [vmem:[%s11984_s29 + $0x38] sm:$0xff]  }
  0x28   : > { %10102 = vmatprep.subr.bf16.mxu0 %v11690_v21 }
  0x2b   : > { %10103 = vmatpush3.bf16.msra.mxu0 %v11690_v21  ;;  %v1139_v21 = vshrl.u32 %v12077_v3, 16 }
  0x2c   : > { %10140 = vmatprep.subr.bf16.mxu0 %v11694_v28 }
  0x2d   : > { %v1141_v51 = vor.u32 %v1139_v21, %v1137_v24  ;;  %v11720_v21 = vld [vmem:[%s15482_s1 + $0x90] sm:$0xff]   ;;  %v1698_v24 = vrot.slane %v11891_v23, 1  ;;  %v12268_v23 = vld [vmem:[%s11984_s29 + $0x28] sm:$0xff]  }
  0x2e   : > { %10105 = vmatmul.mubr.bf16.vlgmr.msra.gmra.mrb[0].mxu0 %v1058_v35  ;;  %v1147_v35 = vshrl.u32 %v12086_v12, 16 }
  0x2f   : > { %10141 = vmatpush3.bf16.msra.mxu0 %v11694_v28  ;;  %10108 = vmatprep.mubr.bf16.mxu0 %v1066_v37  ;;  %v12100_v28 = vld [vmem:[%s11984_s29 + $0x70] sm:$0xff]   ;;  %v1117_v37 = vor.u32 %v1115_v5, %v1113_v9  ;;  %v1146_v56 = vsel %vm15490_vm0, %v1141_v51, %v1145_v33  ;;  %v1179_v5 = vshrl.u32 %v12124_v54, 16 }
  0x30   : > { %10142 = vmatprep.subr.bf16.mxu0 %v11697_v38  ;;  %v1155_v45 = vshrl.u32 %v12100_v28, 16  ;;  %v1149_v59 = vor.u32 %v1147_v35, %v1145_v33  ;;  %v11893_v33 = vld [vmem:[%s11984_s29 + $0x20] sm:$0xff]  }
  0x31   : > { %v1122_v43 = vsel %vm15490_vm0, %v1117_v37, %v1121_v14  ;;  %v1702_v35 = vrot.slane %v11893_v33, 1  ;;  %v11894_v37 = vld [vmem:[%s11984_s29 + $0x28] sm:$0xff]  }
  0x33   : > { %10143 = vmatpush3.bf16.msra.mxu0 %v11697_v38  ;;  %v1151_v38 = vshll.u32 %v12100_v28, 16 }
  0x34   : > { %10144 = vmatprep.subr.bf16.mxu0 %v11700_v49 }
  0x36   : > { %10109 = vmatmul.mubr.bf16.gmra.mrb[4].mxu0 %v1074_v53  ;;  %v12121_v53 = vld [vmem:[%s11984_s29 + $0x80] sm:$0xff]  }
  0x37   : > { %10112 = vmatprep.mubr.bf16.mxu0 %v1082_v62  ;;  %10145 = vmatpush3.bf16.msra.mxu0 %v11700_v49  ;;  %v1153_v49 = vrot.slane %v1151_v38, 1  ;;  %v1171_v60 = vshrl.u32 %v12121_v53, 16  ;;  %v1175_v62 = vshll.u32 %v12124_v54, 16  ;;  %v1704_v38 = vrot.slane %v11894_v37, 1 }
  0x38   : > { %10146 = vmatprep.subr.bf16.mxu0 %v11703_v58 }
  0x39   : > { %v1157_v63 = vor.u32 %v1155_v45, %v1153_v49  ;;  %v1154_v1 = vsel %vm15490_vm0, %v1149_v59, %v1153_v49  ;;  %v1177_v9 = vrot.slane %v1175_v62, 1  ;;  %v11895_v45 = vld [vmem:[%s11984_s29 + $0x30] sm:$0xff]   ;;  %v1708_v49 = vrot.slane %v11896_v48, 1  ;;  %v11898_v59 = vld [vmem:[%s11984_s29 + $0x48] sm:$0xff]  }
  0x3a   : > { %v1706_v47 = vrot.slane %v11895_v45, 1  ;;  %v11733_v62 = vld [vmem:[%s15482_s1 + $0xf0] sm:$0xff]  }
  0x3b   : > { %10147 = vmatpush3.bf16.msra.mxu0 %v11703_v58  ;;  %v1167_v58 = vshll.u32 %v12121_v53, 16  ;;  %v1162_v2 = vsel %vm15490_vm0, %v1157_v63, %v1161_v57  ;;  %v1181_v15 = vor.u32 %v1179_v5, %v1177_v9 }
  0x3c   : > { %10148 = vmatprep.subr.bf16.mxu0 %v11706_v8  ;;  %v1707_v51 = vsel %vm15489_vm1, %v1704_v38, %v1706_v47 }
  0x3d   : > { %v1169_v4 = vrot.slane %v1167_v58, 1 }
  0x3e   : > { %10113 = vmatmul.mubr.bf16.gmra.mrb[8].mxu0 %v1090_v13 }
  0x3f   : > { %10116 = vmatprep.mubr.bf16.mxu0 %v1098_v20  ;;  %10149 = vmatpush3.bf16.msra.mxu0 %v11706_v8  ;;  %v1165_v8 = vor.u32 %v1163_v50, %v1161_v57  ;;  %v1173_v11 = vor.u32 %v1171_v60, %v1169_v4  ;;  %v11719_v20 = vld [vmem:[%s15482_s1 + $0x88] sm:$0xff]   ;;  %v11731_v50 = vld [vmem:[%s15482_s1 + $0xe0] sm:$0xff]   ;;  %v1712_v60 = vrot.slane %v11898_v59, 1 }
  0x40   : > { %10150 = vmatprep.subr.bf16.mxu0 %v11709_v18  ;;  %v11897_v57 = vld [vmem:[%s11984_s29 + $0x40] sm:$0xff]  }
  0x41   : > { %v1170_v13 = vsel %vm15490_vm0, %v1165_v8, %v1169_v4  ;;  %v1178_v14 = vsel %vm15490_vm0, %v1173_v11, %v1177_v9  ;;  %v1710_v58 = vrot.slane %v11897_v57, 1  ;;  %v11899_v4 = vld [vmem:[%s11984_s29 + $0x50] sm:$0xff]   ;;  %v11900_v8 = vld [vmem:[%s11984_s29 + $0x58] sm:$0xff]  }
  0x42   : > { %v1714_v5 = vrot.slane %v11899_v4, 1  ;;  %v1716_v9 = vrot.slane %v11900_v8, 1 }
  0x43   : > { %10151 = vmatpush3.bf16.msra.mxu0 %v11709_v18  ;;  %v1186_v18 = vsel %vm15490_vm0, %v1181_v15, %v1185_v16  ;;  %v1711_v63 = vsel %vm15489_vm1, %v1708_v49, %v1710_v58  ;;  %v1720_v15 = vrot.slane %v12086_v12, 1 }
  0x44   : > { %10152 = vmatprep.subr.bf16.mxu0 %v11712_v25  ;;  %v1715_v11 = vsel %vm15489_vm1, %v1712_v60, %v1714_v5 }
  0x46   : > { %10117 = vmatmul.mubr.bf16.gmra.mrb[12].mxu0 %v1106_v30 }
  0x47   : > { %10120 = vmatprep.mubr.bf16.mxu0 %v1114_v32  ;;  %10153 = vmatpush3.bf16.msra.mxu0 %v11712_v25  ;;  %v11892_v25 = vld [vmem:[%s11984_s29 + $0x18] sm:$0xff]   ;;  %v11728_v32 = vld [vmem:[%s15482_s1 + $0xc8] sm:$0xff]  }
  0x48   : > { %10154 = vmatprep.subr.bf16.mxu0 %v11716_v29  ;;  %v1700_v27 = vrot.slane %v11892_v25, 1  ;;  %v11741_v25 = vld [vmem:[%s15482_s1 + $0x108] sm:$0xff]  }
  0x4a   : > { %v1701_v30 = vsel %vm15489_vm1, %v1698_v24, %v1700_v27  ;;  %v1703_v40 = vsel %vm15489_vm1, %v1700_v27, %v1702_v35  ;;  %v12275_v27 = vld [vmem:[%s11984_s29 + $0x30] sm:$0xff]  }
  0x4b   : > { %10155 = vmatpush3.bf16.msra.mxu0 %v11716_v29 }
  0x4c   : > { %10192 = vmatprep.subr.bf16.mxu0 %v11718_v39 }
  0x4e   : > { %10121 = vmatmul.mubr.bf16.gmra.mrb[16].mxu0 %v1122_v43  ;;  %v1705_v43 = vsel %vm15489_vm1, %v1702_v35, %v1704_v38  ;;  %v12284_v35 = vld [vmem:[%s11984_s29 + $0x38] sm:$0xff]   ;;  %v12288_v38 = vld [vmem:[%s11984_s29 + $0x40] sm:$0xff]  }
  0x4f   : > { %10124 = vmatprep.mubr.bf16.mxu0 %v1130_v44  ;;  %v11730_v44 = vld [vmem:[%s15482_s1 + $0xd8] sm:$0xff]  }
  0x56   : > { %10125 = vmatmul.mubr.bf16.gmra.mrb[20].mxu0 %v1138_v55  ;;  %v1709_v55 = vsel %vm15489_vm1, %v1706_v47, %v1708_v49  ;;  %v12300_v47 = vld [vmem:[%s11984_s29 + $0x48] sm:$0xff]   ;;  %v12304_v49 = vld [vmem:[%s11984_s29 + $0x50] sm:$0xff]  }
  0x57   : > { %10128 = vmatprep.mubr.bf16.mxu0 %v1146_v56  ;;  %v11732_v56 = vld [vmem:[%s15482_s1 + $0xe8] sm:$0xff]  }
  0x5e   : > { %10129 = vmatmul.mubr.bf16.gmra.mrb[24].mxu0 %v1154_v1  ;;  %v1713_v1 = vsel %vm15489_vm1, %v1710_v58, %v1712_v60  ;;  %v12316_v58 = vld [vmem:[%s11984_s29 + $0x58] sm:$0xff]   ;;  %v12320_v60 = vld [vmem:[%s11984_s29 + $0x60] sm:$0xff]  }
  0x5f   : > { %10132 = vmatprep.mubr.bf16.mxu0 %v1162_v2  ;;  %v11734_v2 = vld [vmem:[%s15482_s1 + $0xf8] sm:$0xff]  }
  0x66   : > { %10133 = vmatmul.mubr.bf16.gmra.mrb[28].mxu0 %v1170_v13  ;;  %v1717_v13 = vsel %vm15489_vm1, %v1714_v5, %v1716_v9  ;;  %v12334_v5 = vld [vmem:[%s11984_s29 + $0x68] sm:$0xff]  }
  0x67   : > { %10136 = vmatprep.mubr.bf16.mxu0 %v1178_v14  ;;  %v1718_v14 = vrot.slane %v12077_v3, 1 }
  0x69   : > { %v1719_v16 = vsel %vm15489_vm1, %v1716_v9, %v1718_v14  ;;  %v12338_v9 = vld [vmem:[%s11984_s29 + $0x70] sm:$0xff]  }
  0x6e   : > { %10137 = vmatmul.mubr.bf16.gmra.mrb[32].mxu0 %v1186_v18  ;;  %v1721_v18 = vsel %vm15489_vm1, %v1718_v14, %v1720_v15  ;;  %v12345_v14 = vld [vmem:[%s11984_s29 + $0x78] sm:$0xff]  }
  0x6f   : > { %10156 = vmatprep.mubr.bf16.mxu0 %v11991_v6  ;;  %v11722_v6 = vld [vmem:[%s15482_s1 + $0xa0] sm:$0xff]  }
  0x76   : > { %10157 = vmatmul.mubr.bf16.vlgmr.msra.gmra.mrb[0].mxu0 %v11994_v7  ;;  %v11723_v7 = vld [vmem:[%s15482_s1 + $0xa8] sm:$0xff]  }
  0x77   : > { %10193 = vmatpush3.bf16.msra.mxu0 %v11718_v39  ;;  %10160 = vmatprep.mubr.bf16.mxu0 %v12007_v17  ;;  %v11724_v17 = vld [vmem:[%s15482_s1 + $0xb0] sm:$0xff]  }
  0x78   : > { %10194 = vmatprep.subr.bf16.mxu0 %v11719_v20  ;;  %v11729_v39 = vld [vmem:[%s15482_s1 + $0xd0] sm:$0xff]  }
  0x7b   : > { %10195 = vmatpush3.bf16.msra.mxu0 %v11719_v20  ;;  %v1722_v20 = vrot.slane %v12100_v28, 1 }
  0x7c   : > { %10196 = vmatprep.subr.bf16.mxu0 %v11720_v21 }
  0x7e   : > { %10161 = vmatmul.mubr.bf16.gmra.mrb[4].mxu0 %v12013_v19  ;;  %v11725_v19 = vld [vmem:[%s15482_s1 + $0xb8] sm:$0xff]  }
  0x7f   : > { %10164 = vmatprep.mubr.bf16.mxu0 %v12023_v26  ;;  %10197 = vmatpush3.bf16.msra.mxu0 %v11720_v21  ;;  %v11727_v26 = vld [vmem:[%s15482_s1 + $0xc0] sm:$0xff]   ;;  %v1724_v21 = vrot.slane %v12113_v42, 1 }
  0x80   : > { %10198 = vmatprep.subr.bf16.mxu0 %v11721_v22 }
  0x83   : > { %10199 = vmatpush3.bf16.msra.mxu0 %v11721_v22  ;;  %v1723_v22 = vsel %vm15489_vm1, %v1720_v15, %v1722_v20 }
  0x84   : > { %10200 = vmatprep.subr.bf16.mxu0 %v11722_v6 }
  0x86   : > { %10165 = vmatmul.mubr.bf16.gmra.mrb[8].mxu0 %v12029_v31  ;;  %v1673_v31 = vld [vmem:[%s11984_s29] sm:$0xe] }
  0x87   : > { %10168 = vmatprep.mubr.bf16.mxu0 %v12034_v34  ;;  %10201 = vmatpush3.bf16.msra.mxu0 %v11722_v6  ;;  %v11889_v34 = vld [vmem:[%s11984_s29 + $0x4] sm:$0xf]  ;;  %v1725_v6 = vsel %vm15489_vm1, %v1722_v20, %v1724_v21 }
  0x88   : > { %10202 = vmatprep.subr.bf16.mxu0 %v11723_v7 }
  0x8b   : > { %10203 = vmatpush3.bf16.msra.mxu0 %v11723_v7  ;;  %v2011_v7 = vld [vmem:[%s11984_s29 + $0x8] sm:$0xe] }
  0x8c   : > { %10204 = vmatprep.subr.bf16.mxu0 %v11724_v17 }
  0x8e   : > { %10169 = vmatmul.mubr.bf16.gmra.mrb[12].mxu0 %v12038_v36  ;;  %v8957_v36 = vcombine.low %v1673_v31, %v11889_v34 }
  0x8f   : > { %10172 = vmatprep.mubr.bf16.mxu0 %v12047_v41  ;;  %10205 = vmatpush3.bf16.msra.mxu0 %v11724_v17  ;;  %v12243_v17 = vld [vmem:[%s11984_s29 + $0xc] sm:$0xf] }
  0x90   : > { %10206 = vmatprep.subr.bf16.mxu0 %v11725_v19  ;;  %v1695_v41 = vrot.slane %v8957_v36, 1  ;;  %v12258_v36 = vld [vmem:[%s11984_s29 + $0x18] sm:$0xff]  }
  0x93   : > { %10207 = vmatpush3.bf16.msra.mxu0 %v11725_v19 }
  0x94   : > { %10244 = vmatprep.subr.bf16.mxu0 %v11727_v26 }
  0x96   : > { %10173 = vmatmul.mubr.bf16.gmra.mrb[16].mxu0 %v12052_v46  ;;  %v11890_v46 = vld [vmem:[%s11984_s29 + $0x8] sm:$0xff]  }
  0x97   : > { %10176 = vmatprep.mubr.bf16.mxu0 %v12060_v52  ;;  %v1696_v52 = vrot.slane %v11890_v46, 1  ;;  %v12262_v46 = vld [vmem:[%s11984_s29 + $0x20] sm:$0xff]  }
  0x99   : > { %v1699_v29 = vsel %vm15489_vm1, %v1696_v52, %v1698_v24 }
  0x9e   : > { %10177 = vmatmul.mubr.bf16.gmra.mrb[20].mxu0 %v12071_v61  ;;  %v1697_v61 = vsel %vm15489_vm1, %v1695_v41, %v1696_v52  ;;  %v2161_v52 = vrot.slane %v12258_v36, 1 }
  0x9f   : > { %10180 = vmatprep.mubr.bf16.mxu0 %v12077_v3  ;;  %v1726_v3 = vrot.slane %v12121_v53, 1 }
  0xa1   : > { %v1727_v19 = vsel %vm15489_vm1, %v1724_v21, %v1726_v3 }
  0xa6   : > { %10181 = vmatmul.mubr.bf16.gmra.mrb[24].mxu0 %v12086_v12  ;;  %v1728_v12 = vrot.slane %v12124_v54, 1 }
  0xa7   : > { %10184 = vmatprep.mubr.bf16.mxu0 %v12100_v28 }
  0xa8   : > { %v1729_v28 = vsel %vm15489_vm1, %v1726_v3, %v1728_v12 }
  0xae   : > { %10185 = vmatmul.mubr.bf16.gmra.mrb[28].mxu0 %v12113_v42  ;;  %v12248_v42 = vcombine.low %v2011_v7, %v12243_v17 }
  0xaf   : > { %10188 = vmatprep.mubr.bf16.mxu0 %v12121_v53  ;;  %v1730_v53 = vrot.slane %v12132_v0, 1 }
  0xb1   : > { %v1731_v34 = vsel %vm15489_vm1, %v1728_v12, %v1730_v53 }
  0xb6   : > { %10189 = vmatmul.mubr.bf16.gmra.mrb[32].mxu0 %v12124_v54  ;;  %v2158_v54 = vrot.slane %v12248_v42, 1 }
  0xb7   : > { %10208 = vmatprep.mubr.bf16.mxu0 %v1697_v61  ;;  %v2163_v61 = vrot.slane %v12262_v46, 1 }
  0xb9   : > { %v2164_v24 = vsel %vm15489_vm1, %v2161_v52, %v2163_v61 }
  0xbe   : > { %10209 = vmatmul.mubr.bf16.vlgmr.msra.gmra.mrb[0].mxu0 %v1699_v29  ;;  %v2165_v29 = vrot.slane %v12268_v23, 1 }
  0xbf   : > { %10245 = vmatpush3.bf16.msra.mxu0 %v11727_v26  ;;  %10212 = vmatprep.mubr.bf16.mxu0 %v1701_v30  ;;  %v12251_v26 = vld [vmem:[%s11984_s29 + $0x10] sm:$0xff]   ;;  %v2167_v30 = vrot.slane %v12275_v27, 1 }
  0xc0   : > { %10246 = vmatprep.subr.bf16.mxu0 %v11728_v32  ;;  %v2159_v31 = vrot.slane %v12251_v26, 1  ;;  %v2166_v33 = vsel %vm15489_vm1, %v2163_v61, %v2165_v29  ;;  %v2505_v53 = vshrl.u32 %v12251_v26, 16 }
  0xc1   : > { %v2168_v37 = vsel %vm15489_vm1, %v2165_v29, %v2167_v30  ;;  %v2514_v29 = vshrl.u32 %v12258_v36, 16 }
  0xc2   : > { %v2160_v41 = vsel %vm15489_vm1, %v2158_v54, %v2159_v31  ;;  %v2162_v0 = vsel %vm15489_vm1, %v2159_v31, %v2161_v52  ;;  %v2508_v54 = vshll.u32 %v12251_v26, 16 }
  0xc3   : > { %10247 = vmatpush3.bf16.msra.mxu0 %v11728_v32  ;;  %v11744_v32 = vld [vmem:[%s15482_s1 + $0x110] sm:$0xff]  }
  0xc4   : > { %10248 = vmatprep.subr.bf16.mxu0 %v11729_v39 }
  0xc6   : > { %10213 = vmatmul.mubr.bf16.gmra.mrb[4].mxu0 %v1703_v40  ;;  %v2169_v40 = vrot.slane %v12284_v35, 1 }
  0xc7   : > { %10216 = vmatprep.mubr.bf16.mxu0 %v1705_v43  ;;  %10249 = vmatpush3.bf16.msra.mxu0 %v11729_v39  ;;  %v11747_v39 = vld [vmem:[%s15482_s1 + $0x118] sm:$0xff]   ;;  %v2171_v43 = vrot.slane %v12288_v38, 1 }
  0xc8   : > { %10250 = vmatprep.subr.bf16.mxu0 %v11730_v44  ;;  %v2170_v45 = vsel %vm15489_vm1, %v2167_v30, %v2169_v40 }
  0xc9   : > { %v2172_v48 = vsel %vm15489_vm1, %v2169_v40, %v2171_v43  ;;  %v2516_v40 = vrot.slane %v2514_v29, 1 }
  0xcb   : > { %10251 = vmatpush3.bf16.msra.mxu0 %v11730_v44  ;;  %v11750_v44 = vld [vmem:[%s15482_s1 + $0x120] sm:$0xff]  }
  0xcc   : > { %10252 = vmatprep.subr.bf16.mxu0 %v11731_v50 }
  0xce   : > { %10217 = vmatmul.mubr.bf16.gmra.mrb[8].mxu0 %v1707_v51  ;;  %v2173_v51 = vrot.slane %v12300_v47, 1 }
  0xcf   : > { %10220 = vmatprep.mubr.bf16.mxu0 %v1709_v55  ;;  %10253 = vmatpush3.bf16.msra.mxu0 %v11731_v50  ;;  %v11753_v50 = vld [vmem:[%s15482_s1 + $0x128] sm:$0xff]   ;;  %v2175_v55 = vrot.slane %v12304_v49, 1 }
  0xd0   : > { %10254 = vmatprep.subr.bf16.mxu0 %v11732_v56  ;;  %v2174_v57 = vsel %vm15489_vm1, %v2171_v43, %v2173_v51 }
  0xd1   : > { %v2176_v59 = vsel %vm15489_vm1, %v2173_v51, %v2175_v55  ;;  %v2532_v51 = vshrl.u32 %v12268_v23, 16 }
  0xd3   : > { %10255 = vmatpush3.bf16.msra.mxu0 %v11732_v56  ;;  %v11756_v56 = vld [vmem:[%s15482_s1 + $0x130] sm:$0xff]  }
  0xd4   : > { %10256 = vmatprep.subr.bf16.mxu0 %v11733_v62 }
  0xd6   : > { %10221 = vmatmul.mubr.bf16.gmra.mrb[12].mxu0 %v1711_v63  ;;  %v2177_v63 = vrot.slane %v12316_v58, 1 }
  0xd7   : > { %10224 = vmatprep.mubr.bf16.mxu0 %v1713_v1  ;;  %10257 = vmatpush3.bf16.msra.mxu0 %v11733_v62  ;;  %v11760_v62 = vld [vmem:[%s15482_s1 + $0x138] sm:$0xff]   ;;  %v2179_v1 = vrot.slane %v12320_v60, 1 }
  0xd8   : > { %10258 = vmatprep.subr.bf16.mxu0 %v11734_v2  ;;  %v2178_v4 = vsel %vm15489_vm1, %v2175_v55, %v2177_v63  ;;  %v2535_v55 = vshll.u32 %v12268_v23, 16 }
  0xd9   : > { %v2180_v8 = vsel %vm15489_vm1, %v2177_v63, %v2179_v1  ;;  %v2534_v63 = vrot.slane %v2532_v51, 1  ;;  %v11768_v51 = vld [vmem:[%s15482_s1 + $0x170] sm:$0xff]  }
  0xdb   : > { %10259 = vmatpush3.bf16.msra.mxu0 %v11734_v2  ;;  %v12330_v2 = vld [vmem:[%s15482_s1 + $0x140] sm:$0xff]  }
  0xdc   : > { %10296 = vmatprep.subr.bf16.mxu0 %v11738_v10 }
  0xde   : > { %10225 = vmatmul.mubr.bf16.gmra.mrb[16].mxu0 %v1715_v11  ;;  %v2183_v11 = vrot.slane %v12338_v9, 1 }
  0xdf   : > { %10228 = vmatprep.mubr.bf16.mxu0 %v1717_v13 }
  0xe6   : > { %10229 = vmatmul.mubr.bf16.gmra.mrb[20].mxu0 %v1719_v16  ;;  %v12349_v16 = vld [vmem:[%s11984_s29 + $0x80] sm:$0xff]  }
  0xe7   : > { %10232 = vmatprep.mubr.bf16.mxu0 %v1721_v18  ;;  %v2185_v18 = vrot.slane %v12345_v14, 1  ;;  %v2187_v20 = vrot.slane %v12349_v16, 1 }
  0xe9   : > { %v2186_v21 = vsel %vm15489_vm1, %v2183_v11, %v2185_v18  ;;  %v2188_v3 = vsel %vm15489_vm1, %v2185_v18, %v2187_v20  ;;  %v2553_v18 = vshll.u32 %v12284_v35, 16 }
  0xee   : > { %10233 = vmatmul.mubr.bf16.gmra.mrb[24].mxu0 %v1723_v22  ;;  %v12355_v22 = vld [vmem:[%s11984_s29 + $0x88] sm:$0xff]  }
  0xef   : > { %10236 = vmatprep.mubr.bf16.mxu0 %v1725_v6  ;;  %v12358_v6 = vld [vmem:[%s11984_s29 + $0x90] sm:$0xff]   ;;  %v2189_v12 = vrot.slane %v12355_v22, 1 }
  0xf0   : > { %v2191_v7 = vrot.slane %v12358_v6, 1 }
  0xf1   : > { %v2190_v31 = vsel %vm15489_vm1, %v2187_v20, %v2189_v12 }
  0xf6   : > { %10237 = vmatmul.mubr.bf16.gmra.mrb[28].mxu0 %v1727_v19  ;;  %v2497_v19 = vshrl.u32 %v12248_v42, 16 }
  0xf7   : > { %10240 = vmatprep.mubr.bf16.mxu0 %v1729_v28  ;;  %v2500_v28 = vshll.u32 %v12248_v42, 16  ;;  %v2517_v42 = vshll.u32 %v12258_v36, 16 }
  0xf8   : > { %v2499_v52 = vrot.slane %v2497_v19, 1  ;;  %v2555_v19 = vrot.slane %v2553_v18, 2  ;;  %v12429_v18 = vld [vmem:[%s15482_s1 + $0x180] sm:$0xff]  }
  0xf9   : > { %v2502_v61 = vrot.slane %v2500_v28, 2  ;;  %v2519_v43 = vrot.slane %v2517_v42, 2 }
  0xfb   : > { %v2503_v30 = vor.u32 %v2502_v61, %v2499_v52  ;;  %v2571_v52 = vshll.u32 %v12300_v47, 16 }
  0xfe   : > { %10241 = vmatmul.mubr.bf16.gmra.mrb[32].mxu0 %v1731_v34  ;;  %v2192_v34 = vsel %vm15489_vm1, %v2189_v12, %v2191_v7  ;;  %v2562_v12 = vshll.u32 %v12288_v38, 16 }
  0xff   : > { %10260 = vmatprep.mubr.bf16.mxu0 %v2160_v41  ;;  %v11761_v41 = vld [vmem:[%s11984_s29 + $0x98] ss:$0 sps:$4 sm:$0x11]  }
 0x106   : > { %10261 = vmatmul.mubr.bf16.vlgmr.msra.gmra.mrb[0].mxu0 %v2162_v0  ;;  %v2507_v0 = vrot.slane %v2505_v53, 1 }
 0x107   : > { %10297 = vmatpush3.bf16.msra.mxu0 %v11738_v10  ;;  %10264 = vmatprep.mubr.bf16.mxu0 %v2164_v24  ;;  %v2181_v10 = vrot.slane %v12334_v5, 1  ;;  %v2510_v24 = vrot.slane %v2508_v54, 2  ;;  %v2564_v54 = vrot.slane %v2562_v12, 2 }
 0x108   : > { %10298 = vmatprep.subr.bf16.mxu0 %v11741_v25 }
 0x109   : > { %v2182_v13 = vsel %vm15489_vm1, %v2179_v1, %v2181_v10  ;;  %v2184_v15 = vsel %vm15489_vm1, %v2181_v10, %v2183_v11  ;;  %v2537_v1 = vrot.slane %v2535_v55, 2 }
 0x10b   : > { %10299 = vmatpush3.bf16.msra.mxu0 %v11741_v25  ;;  %v2193_v25 = vrot.slane %v11761_v41, 1  ;;  %v2568_v41 = vshrl.u32 %v12300_v47, 16 }
 0x10c   : > { %10300 = vmatprep.subr.bf16.mxu0 %v11744_v32 }
 0x10d   : > { %v2570_v42 = vrot.slane %v2568_v41, 1 }
 0x10e   : > { %10265 = vmatmul.mubr.bf16.gmra.mrb[4].mxu0 %v2166_v33  ;;  %v2523_v33 = vshrl.u32 %v12262_v46, 16 }
 0x10f   : > { %10268 = vmatprep.mubr.bf16.mxu0 %v2168_v37  ;;  %10301 = vmatpush3.bf16.msra.mxu0 %v11744_v32  ;;  %v2511_v32 = vor.u32 %v2510_v24, %v2507_v0  ;;  %v2526_v37 = vshll.u32 %v12262_v46, 16  ;;  %v2577_v0 = vshrl.u32 %v12304_v49, 16  ;;  %v2580_v24 = vshll.u32 %v12304_v49, 16 }
 0x110   : > { %10302 = vmatprep.subr.bf16.mxu0 %v11747_v39 }
 0x113   : > { %10303 = vmatpush3.bf16.msra.mxu0 %v11747_v39  ;;  %v2194_v39 = vsel %vm15489_vm1, %v2191_v7, %v2193_v25  ;;  %v11766_v25 = vld [vmem:[%s15482_s1 + $0x160] sm:$0xff]  }
 0x114   : > { %10304 = vmatprep.subr.bf16.mxu0 %v11750_v44 }
 0x116   : > { %10269 = vmatmul.mubr.bf16.gmra.mrb[8].mxu0 %v2170_v45  ;;  %v2525_v45 = vrot.slane %v2523_v33, 1  ;;  %v2579_v33 = vrot.slane %v2577_v0, 1 }
 0x117   : > { %10272 = vmatprep.mubr.bf16.mxu0 %v2172_v48  ;;  %10305 = vmatpush3.bf16.msra.mxu0 %v11750_v44  ;;  %v2512_v44 = vsel %vm15488_vm2, %v2503_v30, %v2511_v32  ;;  %v2528_v48 = vrot.slane %v2526_v37, 2  ;;  %v2573_v30 = vrot.slane %v2571_v52, 2  ;;  %v2582_v37 = vrot.slane %v2580_v24, 2 }
 0x118   : > { %10306 = vmatprep.subr.bf16.mxu0 %v11753_v50 }
 0x11b   : > { %10307 = vmatpush3.bf16.msra.mxu0 %v11753_v50  ;;  %v2520_v50 = vor.u32 %v2519_v43, %v2516_v40  ;;  %v2574_v40 = vor.u32 %v2573_v30, %v2570_v42  ;;  %v2586_v43 = vshrl.u32 %v12316_v58, 16  ;;  %v2640_v42 = vshrl.u32 %v12355_v22, 16 }
 0x11c   : > { %10308 = vmatprep.subr.bf16.mxu0 %v11756_v56  ;;  %v2643_v30 = vshll.u32 %v12355_v22, 16 }
 0x11e   : > { %10273 = vmatmul.mubr.bf16.gmra.mrb[12].mxu0 %v2174_v57  ;;  %v2541_v57 = vshrl.u32 %v12275_v27, 16 }
 0x11f   : > { %10276 = vmatprep.mubr.bf16.mxu0 %v2176_v59  ;;  %10309 = vmatpush3.bf16.msra.mxu0 %v11756_v56  ;;  %v2529_v56 = vor.u32 %v2528_v48, %v2525_v45  ;;  %v2544_v59 = vshll.u32 %v12275_v27, 16  ;;  %v2583_v45 = vor.u32 %v2582_v37, %v2579_v33  ;;  %v2595_v48 = vshrl.u32 %v12320_v60, 16 }
 0x120   : > { %10310 = vmatprep.subr.bf16.mxu0 %v11760_v62  ;;  %v2543_v10 = vrot.slane %v2541_v57, 1  ;;  %v2649_v33 = vshrl.u32 %v12358_v6, 16  ;;  %v2652_v37 = vshll.u32 %v12358_v6, 16 }
 0x121   : > { %v2546_v11 = vrot.slane %v2544_v59, 2  ;;  %v2584_v59 = vsel %vm15488_vm2, %v2574_v40, %v2583_v45 }
 0x123   : > { %10311 = vmatpush3.bf16.msra.mxu0 %v11760_v62  ;;  %v2521_v62 = vsel %vm15488_vm2, %v2511_v32, %v2520_v50  ;;  %v2547_v20 = vor.u32 %v2546_v11, %v2543_v10  ;;  %v2607_v10 = vshll.u32 %v12334_v5, 16 }
 0x124   : > { %10348 = vmatprep.subr.bf16.mxu0 %v12330_v2 }
 0x126   : > { %10277 = vmatmul.mubr.bf16.gmra.mrb[16].mxu0 %v2178_v4  ;;  %v2530_v4 = vsel %vm15488_vm2, %v2520_v50, %v2529_v56  ;;  %v2598_v50 = vshll.u32 %v12320_v60, 16 }
 0x127   : > { %10280 = vmatprep.mubr.bf16.mxu0 %v2180_v8  ;;  %v11763_v8 = vld [vmem:[%s15482_s1 + $0x148] sm:$0xff]  }
 0x12e   : > { %10281 = vmatmul.mubr.bf16.gmra.mrb[20].mxu0 %v2182_v13  ;;  %v2538_v13 = vor.u32 %v2537_v1, %v2534_v63  ;;  %v2600_v63 = vrot.slane %v2598_v50, 2  ;;  %v11769_v1 = vld [vmem:[%s15482_s1 + $0x178] sm:$0xff]   ;;  %v2654_v50 = vrot.slane %v2652_v37, 2 }
 0x12f   : > { %10284 = vmatprep.mubr.bf16.mxu0 %v2184_v15  ;;  %v2550_v15 = vshrl.u32 %v12284_v35, 16 }
 0x130   : > { %v2539_v7 = vsel %vm15488_vm2, %v2529_v56, %v2538_v13  ;;  %v2548_v28 = vsel %vm15488_vm2, %v2538_v13, %v2547_v20  ;;  %v2588_v56 = vrot.slane %v2586_v43, 1  ;;  %v2613_v13 = vshrl.u32 %v12338_v9, 16 }
 0x131   : > { %v2645_v43 = vrot.slane %v2643_v30, 2  ;;  %v2994_v30 = vrot.slane %v12345_v14, 2 }
 0x136   : > { %10285 = vmatmul.mubr.bf16.gmra.mrb[24].mxu0 %v2186_v21  ;;  %v11764_v21 = vld [vmem:[%s15482_s1 + $0x150] sm:$0xff]  }
 0x137   : > { %10288 = vmatprep.mubr.bf16.mxu0 %v2188_v3  ;;  %v2559_v3 = vshrl.u32 %v12288_v38, 16 }
 0x139   : > { %v2561_v53 = vrot.slane %v2559_v3, 1  ;;  %v2609_v3 = vrot.slane %v2607_v10, 2 }
 0x13b   : > { %v2565_v61 = vor.u32 %v2564_v54, %v2561_v53  ;;  %v2625_v53 = vshll.u32 %v12345_v14, 16 }
 0x13d   : > { %v2575_v55 = vsel %vm15488_vm2, %v2565_v61, %v2574_v40  ;;  %v2642_v40 = vrot.slane %v2640_v42, 1 }
 0x13e   : > { %10289 = vmatmul.mubr.bf16.gmra.mrb[28].mxu0 %v2190_v31  ;;  %v11765_v31 = vld [vmem:[%s15482_s1 + $0x158] sm:$0xff]  }
 0x13f   : > { %10292 = vmatprep.mubr.bf16.mxu0 %v2192_v34 }
 0x146   : > { %10293 = vmatmul.mubr.bf16.gmra.mrb[32].mxu0 %v2194_v39  ;;  %v11767_v39 = vld [vmem:[%s15482_s1 + $0x168] sm:$0xff]  }
 0x147   : > { %10312 = vmatprep.mubr.bf16.mxu0 %v2512_v44  ;;  %v2589_v44 = vshll.u32 %v12316_v58, 16 }
 0x149   : > { %v2591_v57 = vrot.slane %v2589_v44, 2  ;;  %v12446_v44 = vld [vmem:[%s11984_s29 + $0x98] ss:$0 sps:$4 sm:$0x33]  }
 0x14e   : > { %10313 = vmatmul.mubr.bf16.vlgmr.msra.gmra.mrb[0].mxu0 %v2521_v62  ;;  %v2597_v62 = vrot.slane %v2595_v48, 1  ;;  %v2651_v48 = vrot.slane %v2649_v33, 1 }
 0x14f   : > { %10349 = vmatpush3.bf16.msra.mxu0 %v12330_v2  ;;  %10316 = vmatprep.mubr.bf16.mxu0 %v2530_v4  ;;  %v2552_v2 = vrot.slane %v2550_v15, 1  ;;  %v2592_v4 = vor.u32 %v2591_v57, %v2588_v56  ;;  %v2616_v15 = vshll.u32 %v12338_v9, 16  ;;  %v2661_v56 = vshll.u32 %v12446_v44, 16 }
 0x150   : > { %10350 = vmatprep.subr.bf16.mxu0 %v11763_v8  ;;  %v2601_v11 = vor.u32 %v2600_v63, %v2597_v62  ;;  %v2655_v57 = vor.u32 %v2654_v50, %v2651_v48 }
 0x151   : > { %v2556_v34 = vor.u32 %v2555_v19, %v2552_v2  ;;  %v2618_v2 = vrot.slane %v2616_v15, 2 }
 0x152   : > { %v2602_v12 = vsel %vm15488_vm2, %v2592_v4, %v2601_v11 }
 0x153   : > { %10351 = vmatpush3.bf16.msra.mxu0 %v11763_v8  ;;  %v2557_v29 = vsel %vm15488_vm2, %v2547_v20, %v2556_v34  ;;  %v2566_v32 = vsel %vm15488_vm2, %v2556_v34, %v2565_v61  ;;  %v2604_v8 = vshrl.u32 %v12334_v5, 16  ;;  %v2593_v20 = vsel %vm15488_vm2, %v2583_v45, %v2592_v4 }
 0x154   : > { %10352 = vmatprep.subr.bf16.mxu0 %v11764_v21  ;;  %v2634_v34 = vshll.u32 %v12349_v16, 16  ;;  %v2627_v61 = vrot.slane %v2625_v53, 2 }
 0x156   : > { %10317 = vmatmul.mubr.bf16.gmra.mrb[4].mxu0 %v2539_v7  ;;  %v2615_v7 = vrot.slane %v2613_v13, 1  ;;  %v2968_v13 = vrot.slane %v12251_v26, 2  ;;  %v2974_v26 = vrot.slane %v12268_v23, 2  ;;  %v2978_v23 = vrot.slane %v12284_v35, 2 }
 0x157   : > { %10320 = vmatprep.mubr.bf16.mxu0 %v2548_v28  ;;  %10353 = vmatpush3.bf16.msra.mxu0 %v11764_v21  ;;  %v2606_v21 = vrot.slane %v2604_v8, 1  ;;  %v2622_v28 = vshrl.u32 %v12345_v14, 16  ;;  %v2982_v35 = vrot.slane %v12300_v47, 2  ;;  %v2986_v47 = vrot.slane %v12316_v58, 2 }
 0x158   : > { %10354 = vmatprep.subr.bf16.mxu0 %v11765_v31  ;;  %v2619_v54 = vor.u32 %v2618_v2, %v2615_v7  ;;  %v11773_v7 = vld [vmem:[%s15482_s1 + $0x188] sm:$0xff]   ;;  %v2976_v2 = vrot.slane %v12275_v27, 2  ;;  %v2980_v27 = vrot.slane %v12288_v38, 2  ;;  %v2984_v38 = vrot.slane %v12304_v49, 2 }
 0x159   : > { %v2610_v19 = vor.u32 %v2609_v3, %v2606_v21  ;;  %v2624_v52 = vrot.slane %v2622_v28, 1  ;;  %v2970_v21 = vrot.slane %v12258_v36, 2  ;;  %v2972_v3 = vrot.slane %v12262_v46, 2  ;;  %v11774_v36 = vld [vmem:[%s15482_s1 + $0x190] sm:$0xff]   ;;  %v11776_v28 = vld [vmem:[%s15482_s1 + $0x1a0] sm:$0xff]  }
 0x15a   : > { %v2979_v53 = vsel %vm2966_vm3, %v2976_v2, %v2978_v23  ;;  %v2988_v49 = vrot.slane %v12320_v60, 2  ;;  %v2990_v58 = vrot.slane %v12334_v5, 2  ;;  %v2998_v5 = vrot.slane %v12355_v22, 2 }
 0x15b   : > { %10355 = vmatpush3.bf16.msra.mxu0 %v11765_v31  ;;  %v2631_v31 = vshrl.u32 %v12349_v16, 16  ;;  %v2611_v41 = vsel %vm15488_vm2, %v2601_v11, %v2610_v19  ;;  %v2620_v0 = vsel %vm15488_vm2, %v2610_v19, %v2619_v54  ;;  %v2975_v46 = vsel %vm2966_vm3, %v2972_v3, %v2974_v26 }
 0x15c   : > { %10356 = vmatprep.subr.bf16.mxu0 %v11766_v25  ;;  %v2977_v19 = vsel %vm2966_vm3, %v2974_v26, %v2976_v2  ;;  %v2991_v60 = vsel %vm2966_vm3, %v2988_v49, %v2990_v58  ;;  %v3002_v22 = vrot.slane %v12446_v44, 2  ;;  %v12572_v2 = vld [vmem:[%s11984_s29 + $0x50] sm:$0xff]  }
 0x15d   : > { %v2633_v24 = vrot.slane %v2631_v31, 1  ;;  %v11777_v31 = vld [vmem:[%s15482_s1 + $0x1a8] sm:$0xff]  }
 0x15e   : > { %10321 = vmatmul.mubr.bf16.gmra.mrb[8].mxu0 %v2557_v29  ;;  %v2628_v29 = vor.u32 %v2627_v61, %v2624_v52  ;;  %v2985_v52 = vsel %vm2966_vm3, %v2982_v35, %v2984_v38  ;;  %v11779_v61 = vld [vmem:[%s15482_s1 + $0x1b8] sm:$0xff]  }
 0x15f   : > { %10324 = vmatprep.mubr.bf16.mxu0 %v2566_v32  ;;  %10357 = vmatpush3.bf16.msra.mxu0 %v11766_v25  ;;  %v2636_v25 = vrot.slane %v2634_v34, 2  ;;  %v11778_v34 = vld [vmem:[%s15482_s1 + $0x1b0] sm:$0xff]  }
 0x160   : > { %10358 = vmatprep.subr.bf16.mxu0 %v11767_v39 }
 0x161   : > { %v2637_v32 = vor.u32 %v2636_v25, %v2633_v24  ;;  %v2987_v24 = vsel %vm2966_vm3, %v2984_v38, %v2986_v47  ;;  %v2989_v25 = vsel %vm2966_vm3, %v2986_v47, %v2988_v49  ;;  %v12610_v49 = vld [vmem:[%s11984_s29 + $0x78] sm:$0xff]  }
 0x163   : > { %10359 = vmatpush3.bf16.msra.mxu0 %v11767_v39  ;;  %v2629_v39 = vsel %vm15488_vm2, %v2619_v54, %v2628_v29  ;;  %v2638_v45 = vsel %vm15488_vm2, %v2628_v29, %v2637_v32  ;;  %v2981_v54 = vsel %vm2966_vm3, %v2978_v23, %v2980_v27  ;;  %v2992_v29 = vrot.slane %v12338_v9, 2 }
 0x164   : > { %10360 = vmatprep.subr.bf16.mxu0 %v11768_v51  ;;  %v3000_v9 = vrot.slane %v12358_v6, 2 }
 0x165   : > { %v2993_v42 = vsel %vm2966_vm3, %v2990_v58, %v2992_v29  ;;  %v2995_v33 = vsel %vm2966_vm3, %v2992_v29, %v2994_v30  ;;  %v12617_v58 = vld [vmem:[%s11984_s29 + $0x80] sm:$0xff]  }
 0x166   : > { %10325 = vmatmul.mubr.bf16.gmra.mrb[12].mxu0 %v2575_v55  ;;  %v2658_v55 = vshrl.u32 %v12446_v44, 16  ;;  %v3001_v14 = vsel %vm2966_vm3, %v2998_v5, %v3000_v9  ;;  %v3003_v50 = vsel %vm2966_vm3, %v3000_v9, %v3002_v22 }
 0x167   : > { %10328 = vmatprep.mubr.bf16.mxu0 %v2584_v59  ;;  %10361 = vmatpush3.bf16.msra.mxu0 %v11768_v51  ;;  %v2646_v51 = vor.u32 %v2645_v43, %v2642_v40  ;;  %v2945_v59 = vld [vmem:[%s11984_s29 + $0x8] sm:$0xc]  ;;  %v12515_v40 = vld [vmem:[%s11984_s29 + $0x14] sm:$0xf] }
 0x168   : > { %10362 = vmatprep.subr.bf16.mxu0 %v11769_v1  ;;  %v2660_v63 = vrot.slane %v2658_v55, 1  ;;  %v9050_v8 = vcombine.low %v2945_v59, %v12243_v17  ;;  %v2973_v17 = vsel %vm2966_vm3, %v2970_v21, %v2972_v3  ;;  %v11792_v3 = vld [vmem:[%s15482_s1 + $0x1d8] sm:$0xff]  }
 0x169   : > { %v2647_v62 = vsel %vm15488_vm2, %v2637_v32, %v2646_v51  ;;  %v2656_v4 = vsel %vm15488_vm2, %v2646_v51, %v2655_v57  ;;  %v2996_v32 = vrot.slane %v12349_v16, 2  ;;  %v12530_v51 = vld [vmem:[%s11984_s29 + $0x20] sm:$0xff]  }
 0x16a   : > { %v2967_v11 = vrot.slane %v9050_v8, 2 }
 0x16b   : > { %10363 = vmatpush3.bf16.msra.mxu0 %v11769_v1  ;;  %v2663_v1 = vrot.slane %v2661_v56, 2  ;;  %v2997_v37 = vsel %vm2966_vm3, %v2994_v30, %v2996_v32  ;;  %v2999_v43 = vsel %vm2966_vm3, %v2996_v32, %v2998_v5  ;;  %v12534_v56 = vld [vmem:[%s11984_s29 + $0x28] sm:$0xff]  }
 0x16c   : > { %10400 = vmatprep.subr.bf16.mxu0 %v12429_v18  ;;  %v3435_v59 = vrot.slane %v12534_v56, 2 }
 0x16d   : > { %v2664_v10 = vor.u32 %v2663_v1, %v2660_v63  ;;  %v11786_v1 = vld [vmem:[%s15482_s1 + $0x1c8] sm:$0xff]  }
 0x16e   : > { %10329 = vmatmul.mubr.bf16.gmra.mrb[16].mxu0 %v2593_v20  ;;  %v2969_v20 = vsel %vm2966_vm3, %v2967_v11, %v2968_v13  ;;  %v11789_v11 = vld [vmem:[%s15482_s1 + $0x1d0] sm:$0xff]  }
 0x16f   : > { %10332 = vmatprep.mubr.bf16.mxu0 %v2602_v12  ;;  %v2665_v15 = vsel %vm15488_vm2, %v2655_v57, %v2664_v10  ;;  %v2971_v12 = vsel %vm2966_vm3, %v2968_v13, %v2970_v21  ;;  %v3433_v57 = vrot.slane %v12530_v51, 2  ;;  %v12560_v21 = vld [vmem:[%s11984_s29 + $0x48] sm:$0xff]  }
 0x171   : > { %v3436_v63 = vsel %vm2966_vm3, %v3433_v57, %v3435_v59 }
 0x176   : > { %10333 = vmatmul.mubr.bf16.gmra.mrb[20].mxu0 %v2611_v41  ;;  %v2983_v41 = vsel %vm2966_vm3, %v2980_v27, %v2982_v35  ;;  %v11801_v27 = vld [vmem:[%s15482_s1 + $0x1f0] sm:$0xff]   ;;  %v11805_v35 = vld [vmem:[%s15482_s1 + $0x1f8] sm:$0xff]  }
 0x177   : > { %10336 = vmatprep.mubr.bf16.mxu0 %v2620_v0  ;;  %v11783_v0 = vld [vmem:[%s15482_s1 + $0x1c0] sm:$0xff]  }
 0x17e   : > { %10337 = vmatmul.mubr.bf16.gmra.mrb[24].mxu0 %v2629_v39  ;;  %v3283_v39 = vld [vmem:[%s11984_s29 + $0x10] sm:$0xc] }
 0x17f   : > { %10340 = vmatprep.mubr.bf16.mxu0 %v2638_v45  ;;  %v12520_v16 = vcombine.low %v3283_v39, %v12515_v40  ;;  %v12523_v45 = vld [vmem:[%s11984_s29 + $0x18] sm:$0xff]  }
 0x180   : > { %v3431_v48 = vrot.slane %v12523_v45, 2  ;;  %v3777_v22 = vshrl.u32 %v12523_v45, 16 }
 0x181   : > { %v3430_v6 = vrot.slane %v12520_v16, 2 }
 0x182   : > { %v3434_v44 = vsel %vm2966_vm3, %v3431_v48, %v3433_v57 }
 0x183   : > { %v3432_v55 = vsel %vm2966_vm3, %v3430_v6, %v3431_v48  ;;  %v3780_v6 = vshll.u32 %v12523_v45, 16 }
 0x186   : > { %10341 = vmatmul.mubr.bf16.gmra.mrb[28].mxu0 %v2647_v62  ;;  %v12540_v62 = vld [vmem:[%s11984_s29 + $0x30] sm:$0xff]  }
 0x187   : > { %10344 = vmatprep.mubr.bf16.mxu0 %v2656_v4  ;;  %v12547_v4 = vld [vmem:[%s11984_s29 + $0x38] sm:$0xff]   ;;  %v3437_v8 = vrot.slane %v12540_v62, 2 }
 0x188   : > { %v3439_v10 = vrot.slane %v12547_v4, 2 }
 0x189   : > { %v3438_v13 = vsel %vm2966_vm3, %v3435_v59, %v3437_v8 }
 0x18e   : > { %10345 = vmatmul.mubr.bf16.gmra.mrb[32].mxu0 %v2665_v15  ;;  %v12556_v15 = vld [vmem:[%s11984_s29 + $0x40] sm:$0xff]  }
 0x18f   : > { %10364 = vmatprep.mubr.bf16.mxu0 %v2969_v20  ;;  %v3440_v20 = vsel %vm2966_vm3, %v3437_v8, %v3439_v10  ;;  %v3786_v8 = vshrl.u32 %v12530_v51, 16 }
 0x196   : > { %10365 = vmatmul.mubr.bf16.vlgmr.msra.gmra.mrb[0].mxu0 %v2971_v12  ;;  %v3441_v12 = vrot.slane %v12556_v15, 2 }
 0x197   : > { %10401 = vmatpush3.bf16.msra.mxu0 %v12429_v18  ;;  %10368 = vmatprep.mubr.bf16.mxu0 %v2973_v17  ;;  %v11775_v18 = vld [vmem:[%s15482_s1 + $0x198] sm:$0xff]   ;;  %v3443_v17 = vrot.slane %v12560_v21, 2 }
 0x198   : > { %10402 = vmatprep.subr.bf16.mxu0 %v11773_v7  ;;  %v3442_v26 = vsel %vm2966_vm3, %v3439_v10, %v3441_v12 }
 0x19b   : > { %10403 = vmatpush3.bf16.msra.mxu0 %v11773_v7  ;;  %v11795_v7 = vld [vmem:[%s15482_s1 + $0x1e0] sm:$0xff]  }
 0x19c   : > { %10404 = vmatprep.subr.bf16.mxu0 %v11774_v36 }
 0x19e   : > { %10369 = vmatmul.mubr.bf16.gmra.mrb[4].mxu0 %v2975_v46  ;;  %v12576_v46 = vld [vmem:[%s11984_s29 + $0x58] sm:$0xff]  }
 0x19f   : > { %10372 = vmatprep.mubr.bf16.mxu0 %v2977_v19  ;;  %10405 = vmatpush3.bf16.msra.mxu0 %v11774_v36  ;;  %v3444_v36 = vsel %vm2966_vm3, %v3441_v12, %v3443_v17  ;;  %v11798_v19 = vld [vmem:[%s15482_s1 + $0x1e8] sm:$0xff]   ;;  %v3447_v23 = vrot.slane %v12576_v46, 2  ;;  %v3788_v12 = vrot.slane %v3786_v8, 2  ;;  %v3852_v8 = vshll.u32 %v12576_v46, 16 }
 0x1a0   : > { %10406 = vmatprep.subr.bf16.mxu0 %v11775_v18 }
 0x1a3   : > { %10407 = vmatpush3.bf16.msra.mxu0 %v11775_v18  ;;  %v3445_v18 = vrot.slane %v12572_v2, 2 }
 0x1a4   : > { %10408 = vmatprep.subr.bf16.mxu0 %v11776_v28 }
 0x1a6   : > { %10373 = vmatmul.mubr.bf16.gmra.mrb[8].mxu0 %v2979_v53  ;;  %v12588_v53 = vld [vmem:[%s11984_s29 + $0x60] sm:$0xff]  }
 0x1a7   : > { %10376 = vmatprep.mubr.bf16.mxu0 %v2981_v54  ;;  %10409 = vmatpush3.bf16.msra.mxu0 %v11776_v28  ;;  %v3446_v28 = vsel %vm2966_vm3, %v3443_v17, %v3445_v18  ;;  %v3448_v54 = vsel %vm2966_vm3, %v3445_v18, %v3447_v23  ;;  %v3449_v38 = vrot.slane %v12588_v53, 2  ;;  %v3804_v18 = vshrl.u32 %v12540_v62, 16 }
 0x1a8   : > { %10410 = vmatprep.subr.bf16.mxu0 %v11777_v31 }
 0x1ab   : > { %10411 = vmatpush3.bf16.msra.mxu0 %v11777_v31  ;;  %v12592_v31 = vld [vmem:[%s11984_s29 + $0x68] sm:$0xff]  }
 0x1ac   : > { %10412 = vmatprep.subr.bf16.mxu0 %v11778_v34 }
 0x1ae   : > { %10377 = vmatmul.mubr.bf16.gmra.mrb[12].mxu0 %v2983_v41  ;;  %v12602_v41 = vld [vmem:[%s15482_s1 + $0x200] sm:$0xff]  }
 0x1af   : > { %10380 = vmatprep.mubr.bf16.mxu0 %v2985_v52  ;;  %10413 = vmatpush3.bf16.msra.mxu0 %v11778_v34  ;;  %v3451_v34 = vrot.slane %v12592_v31, 2  ;;  %v3450_v52 = vsel %vm2966_vm3, %v3447_v23, %v3449_v38  ;;  %v3807_v23 = vshll.u32 %v12540_v62, 16 }
 0x1b0   : > { %10414 = vmatprep.subr.bf16.mxu0 %v11779_v61 }
 0x1b1   : > { %v3452_v47 = vsel %vm2966_vm3, %v3449_v38, %v3451_v34  ;;  %v3806_v38 = vrot.slane %v3804_v18, 2 }
 0x1b3   : > { %10415 = vmatpush3.bf16.msra.mxu0 %v11779_v61  ;;  %v12606_v61 = vld [vmem:[%s11984_s29 + $0x70] sm:$0xff]  }
 0x1b4   : > { %10452 = vmatprep.subr.bf16.mxu0 %v11783_v0 }
 0x1b6   : > { %10381 = vmatmul.mubr.bf16.gmra.mrb[16].mxu0 %v2987_v24  ;;  %v3455_v24 = vrot.slane %v12610_v49, 2 }
 0x1b7   : > { %10384 = vmatprep.mubr.bf16.mxu0 %v2989_v25 }
 0x1be   : > { %10385 = vmatmul.mubr.bf16.gmra.mrb[20].mxu0 %v2991_v60  ;;  %v12621_v60 = vld [vmem:[%s11984_s29 + $0x88] sm:$0xff]  }
 0x1bf   : > { %10388 = vmatprep.mubr.bf16.mxu0 %v2993_v42  ;;  %v3457_v42 = vrot.slane %v12617_v58, 2  ;;  %v3459_v30 = vrot.slane %v12621_v60, 2 }
 0x1c1   : > { %v3458_v32 = vsel %vm2966_vm3, %v3455_v24, %v3457_v42  ;;  %v3460_v5 = vsel %vm2966_vm3, %v3457_v42, %v3459_v30  ;;  %v3825_v42 = vshll.u32 %v12556_v15, 16 }
 0x1c6   : > { %10389 = vmatmul.mubr.bf16.gmra.mrb[24].mxu0 %v2995_v33  ;;  %v12627_v33 = vld [vmem:[%s11984_s29 + $0x90] sm:$0xff]  }
 0x1c7   : > { %10392 = vmatprep.mubr.bf16.mxu0 %v2997_v37  ;;  %v12630_v37 = vld [vmem:[%s11984_s29 + $0x98] sm:$0xff]   ;;  %v3461_v9 = vrot.slane %v12627_v33, 2 }
 0x1c8   : > { %v3463_v39 = vrot.slane %v12630_v37, 2 }
 0x1c9   : > { %v3462_v48 = vsel %vm2966_vm3, %v3459_v30, %v3461_v9 }
 0x1ce   : > { %10393 = vmatmul.mubr.bf16.gmra.mrb[28].mxu0 %v2999_v43  ;;  %v3769_v43 = vshrl.u32 %v12520_v16, 16 }
 0x1cf   : > { %10396 = vmatprep.mubr.bf16.mxu0 %v3001_v14  ;;  %v3772_v14 = vshll.u32 %v12520_v16, 16  ;;  %v3789_v16 = vshll.u32 %v12530_v51, 16 }
 0x1d0   : > { %v3771_v57 = vrot.slane %v3769_v43, 2  ;;  %v3827_v43 = vrot.slane %v3825_v42, 3 }
 0x1d1   : > { %v3774_v59 = vrot.slane %v3772_v14, 3  ;;  %v3791_v17 = vrot.slane %v3789_v16, 3  ;;  %v11811_v16 = vld [vmem:[%s15482_s1 + $0x220] sm:$0xff]  }
 0x1d3   : > { %v3775_v10 = vor.u32 %v3774_v59, %v3771_v57  ;;  %v3840_v59 = vshrl.u32 %v12572_v2, 16 }
 0x1d6   : > { %10397 = vmatmul.mubr.bf16.gmra.mrb[32].mxu0 %v3003_v50  ;;  %v3464_v50 = vsel %vm2966_vm3, %v3461_v9, %v3463_v39  ;;  %v3834_v9 = vshll.u32 %v12560_v21, 16 }
 0x1d7   : > { %10416 = vmatprep.mubr.bf16.mxu0 %v3432_v55  ;;  %v11806_v55 = vld [vmem:[%s11984_s29 + $0xa0] ss:$0 sps:$4 sm:$0x33]  }
 0x1de   : > { %10417 = vmatmul.mubr.bf16.vlgmr.msra.gmra.mrb[0].mxu0 %v3434_v44  ;;  %v3779_v44 = vrot.slane %v3777_v22, 2 }
 0x1df   : > { %10453 = vmatpush3.bf16.msra.mxu0 %v11783_v0  ;;  %10420 = vmatprep.mubr.bf16.mxu0 %v3436_v63  ;;  %v3453_v0 = vrot.slane %v12606_v61, 2  ;;  %v3782_v63 = vrot.slane %v3780_v6, 3  ;;  %v3836_v6 = vrot.slane %v3834_v9, 3 }
 0x1e0   : > { %10454 = vmatprep.subr.bf16.mxu0 %v11786_v1 }
 0x1e1   : > { %v3454_v25 = vsel %vm2966_vm3, %v3451_v34, %v3453_v0  ;;  %v3456_v29 = vsel %vm2966_vm3, %v3453_v0, %v3455_v24  ;;  %v3809_v34 = vrot.slane %v3807_v23, 3  ;;  %v3867_v23 = vshrl.u32 %v12592_v31, 16 }
 0x1e3   : > { %10455 = vmatpush3.bf16.msra.mxu0 %v11786_v1  ;;  %v3465_v1 = vrot.slane %v11806_v55, 2  ;;  %v11818_v55 = vld [vmem:[%s15484_s3 + $0x48] sm:$0xff]  }
 0x1e4   : > { %10456 = vmatprep.subr.bf16.mxu0 %v11789_v11 }
 0x1e6   : > { %10421 = vmatmul.mubr.bf16.gmra.mrb[4].mxu0 %v3438_v13  ;;  %v3795_v13 = vshrl.u32 %v12534_v56, 16 }
 0x1e7   : > { %10424 = vmatprep.mubr.bf16.mxu0 %v3440_v20  ;;  %10457 = vmatpush3.bf16.msra.mxu0 %v11789_v11  ;;  %v3783_v11 = vor.u32 %v3782_v63, %v3779_v44  ;;  %v3798_v20 = vshll.u32 %v12534_v56, 16  ;;  %v3843_v44 = vshll.u32 %v12572_v2, 16 }
 0x1e8   : > { %10458 = vmatprep.subr.bf16.mxu0 %v11792_v3 }
 0x1eb   : > { %10459 = vmatpush3.bf16.msra.mxu0 %v11792_v3  ;;  %v3466_v3 = vsel %vm2966_vm3, %v3463_v39, %v3465_v1  ;;  %v3849_v1 = vshrl.u32 %v12576_v46, 16 }
 0x1ec   : > { %10460 = vmatprep.subr.bf16.mxu0 %v11795_v7 }
 0x1ee   : > { %10425 = vmatmul.mubr.bf16.gmra.mrb[8].mxu0 %v3442_v26  ;;  %v3797_v26 = vrot.slane %v3795_v13, 2  ;;  %v3842_v13 = vrot.slane %v3840_v59, 2 }
 0x1ef   : > { %10428 = vmatprep.mubr.bf16.mxu0 %v3444_v36  ;;  %10461 = vmatpush3.bf16.msra.mxu0 %v11795_v7  ;;  %v3784_v7 = vsel %vm3767_vm4, %v3775_v10, %v3783_v11  ;;  %v3800_v36 = vrot.slane %v3798_v20, 3  ;;  %v11819_v10 = vld [vmem:[%s15484_s3 + $0x50] sm:$0xff]   ;;  %v3845_v20 = vrot.slane %v3843_v44, 3 }
 0x1f0   : > { %10462 = vmatprep.subr.bf16.mxu0 %v11798_v19 }
 0x1f3   : > { %10463 = vmatpush3.bf16.msra.mxu0 %v11798_v19  ;;  %v3792_v19 = vor.u32 %v3791_v17, %v3788_v12  ;;  %v3851_v12 = vrot.slane %v3849_v1, 2  ;;  %v3854_v17 = vrot.slane %v3852_v8, 3 }
 0x1f4   : > { %10464 = vmatprep.subr.bf16.mxu0 %v11801_v27 }
 0x1f5   : > { %v3855_v18 = vor.u32 %v3854_v17, %v3851_v12  ;;  %v3924_v12 = vshll.u32 %v12630_v37, 16 }
 0x1f6   : > { %10429 = vmatmul.mubr.bf16.gmra.mrb[12].mxu0 %v3446_v28  ;;  %v3813_v28 = vshrl.u32 %v12547_v4, 16 }
 0x1f7   : > { %10432 = vmatprep.mubr.bf16.mxu0 %v3448_v54  ;;  %10465 = vmatpush3.bf16.msra.mxu0 %v11801_v27  ;;  %v3801_v27 = vor.u32 %v3800_v36, %v3797_v26  ;;  %v3816_v54 = vshll.u32 %v12547_v4, 16  ;;  %v3846_v26 = vor.u32 %v3845_v20, %v3842_v13  ;;  %v3858_v36 = vshrl.u32 %v12588_v53, 16 }
 0x1f8   : > { %10466 = vmatprep.subr.bf16.mxu0 %v11805_v35  ;;  %v3815_v0 = vrot.slane %v3813_v28, 2  ;;  %v11813_v28 = vld [vmem:[%s15482_s1 + $0x230] sm:$0xff]   ;;  %v3915_v13 = vshll.u32 %v12627_v33, 16 }
 0x1f9   : > { %v3818_v24 = vrot.slane %v3816_v54, 3 }
 0x1fb   : > { %10467 = vmatpush3.bf16.msra.mxu0 %v11805_v35  ;;  %v3793_v35 = vsel %vm3767_vm4, %v3783_v11, %v3792_v19  ;;  %v3819_v30 = vor.u32 %v3818_v24, %v3815_v0  ;;  %v11814_v0 = vld [vmem:[%s15482_s1 + $0x238] sm:$0xff]  }
 0x1fc   : > { %10504 = vmatprep.subr.bf16.mxu0 %v12602_v41 }
 0x1fe   : > { %10433 = vmatmul.mubr.bf16.gmra.mrb[16].mxu0 %v3450_v52  ;;  %v3802_v52 = vsel %vm3767_vm4, %v3792_v19, %v3801_v27  ;;  %v3861_v19 = vshll.u32 %v12588_v53, 16 }
 0x1ff   : > { %10436 = vmatprep.mubr.bf16.mxu0 %v3452_v47  ;;  %v11808_v47 = vld [vmem:[%s15482_s1 + $0x208] sm:$0xff]  }
 0x206   : > { %10437 = vmatmul.mubr.bf16.gmra.mrb[20].mxu0 %v3454_v25  ;;  %v3810_v25 = vor.u32 %v3809_v34, %v3806_v38  ;;  %v3863_v38 = vrot.slane %v3861_v19, 3  ;;  %v3856_v34 = vsel %vm3767_vm4, %v3846_v26, %v3855_v18 }
 0x207   : > { %10440 = vmatprep.mubr.bf16.mxu0 %v3456_v29  ;;  %v3822_v29 = vshrl.u32 %v12556_v15, 16 }
 0x208   : > { %v3811_v39 = vsel %vm3767_vm4, %v3801_v27, %v3810_v25  ;;  %v3820_v14 = vsel %vm3767_vm4, %v3810_v25, %v3819_v30  ;;  %v3870_v27 = vshll.u32 %v12592_v31, 16  ;;  %v3876_v25 = vshrl.u32 %v12606_v61, 16 }
 0x20a   : > { %v3878_v9 = vrot.slane %v3876_v25, 2 }
 0x20e   : > { %10441 = vmatmul.mubr.bf16.gmra.mrb[24].mxu0 %v3458_v32  ;;  %v11809_v32 = vld [vmem:[%s15482_s1 + $0x210] sm:$0xff]  }
 0x20f   : > { %10444 = vmatprep.mubr.bf16.mxu0 %v3460_v5  ;;  %v3831_v5 = vshrl.u32 %v12560_v21, 16 }
 0x211   : > { %v3833_v22 = vrot.slane %v3831_v5, 2 }
 0x213   : > { %v3837_v63 = vor.u32 %v3836_v6, %v3833_v22  ;;  %v3894_v6 = vshrl.u32 %v12617_v58, 16 }
 0x215   : > { %v3847_v54 = vsel %vm3767_vm4, %v3837_v63, %v3846_v26  ;;  %v3896_v44 = vrot.slane %v3894_v6, 2  ;;  %v3917_v26 = vrot.slane %v3915_v13, 3  ;;  %v11824_v13 = vld [vmem:[%s15484_s3 + $0x78] sm:$0xff]  }
 0x216   : > { %10445 = vmatmul.mubr.bf16.gmra.mrb[28].mxu0 %v3462_v48  ;;  %v11810_v48 = vld [vmem:[%s15482_s1 + $0x218] sm:$0xff]  }
 0x217   : > { %10448 = vmatprep.mubr.bf16.mxu0 %v3464_v50  ;;  %v11817_v50 = vld [vmem:[%s15484_s3 + $0x40] sm:$0xff]  }
 0x218   : > { %10556 = vmatprep.subr.bf16.mxu1 %v11817_v50 }
 0x219   : > { %10557 = vmatpush3.bf16.msra.mxu1 %v11817_v50 }
 0x21a   : > { %10558 = vmatprep.subr.bf16.mxu1 %v11818_v55 }
 0x21d   : > { %10559 = vmatpush3.bf16.msra.mxu1 %v11818_v55  ;;  %v3903_v55 = vshrl.u32 %v12621_v60, 16 }
 0x21e   : > { %10449 = vmatmul.mubr.bf16.gmra.mrb[32].mxu0 %v3466_v3  ;;  %10560 = vmatprep.subr.bf16.mxu1 %v11819_v10 }
 0x21f   : > { %10468 = vmatprep.mubr.bf16.mxu0 %v3784_v7  ;;  %v11812_v7 = vld [vmem:[%s15482_s1 + $0x228] sm:$0xff]   ;;  %v3905_v8 = vrot.slane %v3903_v55, 2 }
 0x221   : > { %10561 = vmatpush3.bf16.msra.mxu1 %v11819_v10 }
 0x226   : > { %10469 = vmatmul.mubr.bf16.vlgmr.msra.gmra.mrb[0].mxu0 %v3793_v35  ;;  %v3860_v35 = vrot.slane %v3858_v36, 2  ;;  %v12721_v36 = vld [vmem:[%s11984_s29 + $0xa0] ss:$0 sps:$4 sm:$0x77]  }
 0x227   : > { %10505 = vmatpush3.bf16.msra.mxu0 %v12602_v41  ;;  %10472 = vmatprep.mubr.bf16.mxu0 %v3802_v52  ;;  %v3824_v41 = vrot.slane %v3822_v29, 2  ;;  %v3869_v52 = vrot.slane %v3867_v23, 2  ;;  %v3879_v29 = vshll.u32 %v12606_v61, 16  ;;  %v3926_v23 = vrot.slane %v3924_v12, 3 }
 0x228   : > { %10506 = vmatprep.subr.bf16.mxu0 %v11808_v47  ;;  %v3864_v24 = vor.u32 %v3863_v38, %v3860_v35  ;;  %v4217_v38 = vld [vmem:[%s11984_s29 + $0x10] sm:$0x8] }
 0x229   : > { %v3828_v57 = vor.u32 %v3827_v43, %v3824_v41 }
 0x22a   : > { %v3865_v5 = vsel %vm3767_vm4, %v3855_v18, %v3864_v24 }
 0x22b   : > { %10507 = vmatpush3.bf16.msra.mxu0 %v11808_v47  ;;  %v3829_v11 = vsel %vm3767_vm4, %v3819_v30, %v3828_v57  ;;  %v3838_v3 = vsel %vm3767_vm4, %v3828_v57, %v3837_v63  ;;  %v3872_v47 = vrot.slane %v3870_v27, 3  ;;  %v3885_v30 = vshrl.u32 %v12610_v49, 16 }
 0x22c   : > { %10508 = vmatprep.subr.bf16.mxu0 %v11809_v32  ;;  %v3906_v57 = vshll.u32 %v12621_v60, 16 }
 0x22d   : > { %v3873_v42 = vor.u32 %v3872_v47, %v3869_v52  ;;  %v3887_v43 = vrot.slane %v3885_v30, 2 }
 0x22e   : > { %10473 = vmatmul.mubr.bf16.gmra.mrb[4].mxu0 %v3811_v39  ;;  %v3881_v39 = vrot.slane %v3879_v29, 3 }
 0x22f   : > { %10476 = vmatprep.mubr.bf16.mxu0 %v3820_v14  ;;  %10509 = vmatpush3.bf16.msra.mxu0 %v11809_v32  ;;  %v3888_v32 = vshll.u32 %v12610_v49, 16  ;;  %v3874_v41 = vsel %vm3767_vm4, %v3864_v24, %v3873_v42  ;;  %v9143_v24 = vcombine.low %v4217_v38, %v12515_v40 }
 0x230   : > { %10510 = vmatprep.subr.bf16.mxu0 %v11810_v48  ;;  %v3882_v22 = vor.u32 %v3881_v39, %v3878_v9  ;;  %v4244_v9 = vrot.slane %v12534_v56, 3  ;;  %v4252_v56 = vrot.slane %v12560_v21, 3  ;;  %v4260_v21 = vrot.slane %v12592_v31, 3 }
 0x231   : > { %v3890_v14 = vrot.slane %v3888_v32, 3  ;;  %v4239_v29 = vrot.slane %v9143_v24, 3  ;;  %v4268_v31 = vrot.slane %v12621_v60, 3 }
 0x232   : > { %v3883_v59 = vsel %vm3767_vm4, %v3873_v42, %v3882_v22  ;;  %v4240_v42 = vrot.slane %v12523_v45, 3  ;;  %v4248_v45 = vrot.slane %v12547_v4, 3  ;;  %v4256_v4 = vrot.slane %v12576_v46, 3 }
 0x233   : > { %10511 = vmatpush3.bf16.msra.mxu0 %v11810_v48  ;;  %v3897_v48 = vshll.u32 %v12617_v58, 16  ;;  %v3891_v50 = vor.u32 %v3890_v14, %v3887_v43  ;;  %v4264_v46 = vrot.slane %v12610_v49, 3  ;;  %v4272_v49 = vrot.slane %v12630_v37, 3 }
 0x234   : > { %10512 = vmatprep.subr.bf16.mxu0 %v11811_v16  ;;  %v4241_v32 = vsel %vm15487_vm5, %v4239_v29, %v4240_v42 }
 0x235   : > { %v3899_v63 = vrot.slane %v3897_v48, 3  ;;  %v3892_v1 = vsel %vm3767_vm4, %v3882_v22, %v3891_v50 }
 0x236   : > { %10477 = vmatmul.mubr.bf16.gmra.mrb[8].mxu0 %v3829_v11  ;;  %v3912_v11 = vshrl.u32 %v12627_v33, 16 }
 0x237   : > { %10480 = vmatprep.mubr.bf16.mxu0 %v3838_v3  ;;  %10513 = vmatpush3.bf16.msra.mxu0 %v11811_v16  ;;  %v3908_v16 = vrot.slane %v3906_v57, 3  ;;  %v3900_v10 = vor.u32 %v3899_v63, %v3896_v44  ;;  %v3921_v3 = vshrl.u32 %v12630_v37, 16  ;;  %v11822_v37 = vld [vmem:[%s15484_s3 + $0x68] sm:$0xff]  }
 0x238   : > { %10514 = vmatprep.subr.bf16.mxu0 %v11812_v7 }
 0x239   : > { %v3909_v20 = vor.u32 %v3908_v16, %v3905_v8  ;;  %v3901_v17 = vsel %vm3767_vm4, %v3891_v50, %v3900_v10  ;;  %v3923_v18 = vrot.slane %v3921_v3, 2  ;;  %v226_v3 = vlaneseq }
 0x23b   : > { %10515 = vmatpush3.bf16.msra.mxu0 %v11812_v7  ;;  %v3914_v7 = vrot.slane %v3912_v11, 2  ;;  %v3910_v19 = vsel %vm3767_vm4, %v3900_v10, %v3909_v20  ;;  %v3927_v35 = vor.u32 %v3926_v23, %v3923_v18  ;;  %v11820_v10 = vld [vmem:[%s15484_s3 + $0x58] sm:$0xff]   ;;  %v11823_v11 = vld [vmem:[%s15484_s3 + $0x70] sm:$0xff]   ;;  %v12786_v12 = vshrl.u32 %v226_v3, 7  ;;  %v12800_v18 = vld [vmem:[%s15484_s3] sm:$0xff]  }
 0x23c   : > { %10516 = vmatprep.subr.bf16.mxu0 %v11813_v28  ;;  %10562 = vmatprep.subr.bf16.mxu1 %v11820_v10  ;;  %15661 = vst [vmem:[#allocation5_spill] sm:$0xff] %v12800_v18 }
 0x23d   : > { %v3918_v27 = vor.u32 %v3917_v26, %v3914_v7  ;;  %10563 = vmatpush3.bf16.msra.mxu1 %v11820_v10  ;;  %v229_v26 = vadd.s32 16, %v12786_v12  ;;  %v231_v24 = vadd.s32 32, %v12786_v12 }
 0x23e   : > { %10481 = vmatmul.mubr.bf16.gmra.mrb[12].mxu0 %v3847_v54  ;;  %v3933_v54 = vshll.u32 %v12721_v36, 16 }
 0x23f   : > { %10484 = vmatprep.mubr.bf16.mxu0 %v3856_v34  ;;  %10517 = vmatpush3.bf16.msra.mxu0 %v11813_v28  ;;  %v3930_v28 = vshrl.u32 %v12721_v36, 16  ;;  %v3919_v34 = vsel %vm3767_vm4, %v3909_v20, %v3918_v27  ;;  %v15494_v20 = vmov 0  }
 0x240   : > { %10518 = vmatprep.subr.bf16.mxu0 %v11814_v0  ;;  %v3935_v47 = vrot.slane %v3933_v54, 3  ;;  %4742 = vst [vmem:[#allocation2] sm:$0xff] %v15494_v20  ;;  %4743 = vst [vmem:[#allocation2 + $0x8] sm:$0xff] %v15494_v20  ;;  %v12791_v7 = vrot.slane %v15494_v20, 7  ;;  %v228_v54 = vadd.s32 8, %v12786_v12 }
 0x241   : > { %v3932_v52 = vrot.slane %v3930_v28, 2  ;;  %4744 = vst [vmem:[#allocation2 + $0xa0] sm:$0xff] %v15494_v20  ;;  %4745 = vst [vmem:[#allocation2 + $0xa8] sm:$0xff] %v15494_v20  ;;  %v230_v28 = vadd.s32 24, %v12786_v12 }
 0x242   : > { %15660 = vst [vmem:[#allocation4_spill] sm:$0xff] %v12791_v7 }
 0x243   : > { %10519 = vmatpush3.bf16.msra.mxu0 %v11814_v0  ;;  %v3928_v0 = vsel %vm3767_vm4, %v3918_v27, %v3927_v35  ;;  %v3936_v25 = vor.u32 %v3935_v47, %v3932_v52  ;;  %v12802_v23 = vmul.u32.u64.low 3817748708, %v229_v26  ;;  %v12803_v27 = vmul.u32.u64.high 3817748708, %v229_v26, %v12802_v23 }
 0x244   : > { %v233_v52 = vadd.s32 48, %v12786_v12 }
 0x245   : > { %v3937_v30 = vsel %vm3767_vm4, %v3927_v35, %v3936_v25  ;;  %v291_v35 = vshrl.u32 %v12803_v27, 4  ;;  %v12818_v25 = vmul.u32.u64.low 3817748708, %v228_v54  ;;  %v12819_v29 = vmul.u32.u64.high 3817748708, %v228_v54, %v12818_v25 }
 0x246   : > { %10485 = vmatmul.mubr.bf16.gmra.mrb[16].mxu0 %v3865_v5  ;;  %v4242_v5 = vrot.slane %v12530_v51, 3  ;;  %v4250_v51 = vrot.slane %v12556_v15, 3  ;;  %v4258_v15 = vrot.slane %v12588_v53, 3  ;;  %v4266_v53 = vrot.slane %v12617_v58, 3 }
 0x247   : > { %10488 = vmatprep.mubr.bf16.mxu0 %v3874_v41  ;;  %v4246_v41 = vrot.slane %v12540_v62, 3  ;;  %v4254_v62 = vrot.slane %v12572_v2, 3  ;;  %v4262_v2 = vrot.slane %v12606_v61, 3  ;;  %v4270_v61 = vrot.slane %v12627_v33, 3  ;;  %v11821_v33 = vld [vmem:[%s15484_s3 + $0x60] sm:$0xff]  }
 0x248   : > { %v4243_v39 = vsel %vm15487_vm5, %v4240_v42, %v4242_v5  ;;  %v4245_v40 = vsel %vm15487_vm5, %v4242_v5, %v4244_v9  ;;  %v4251_v22 = vsel %vm15487_vm5, %v4248_v45, %v4250_v51  ;;  %v4253_v6 = vsel %vm15487_vm5, %v4250_v51, %v4252_v56  ;;  %10564 = vmatprep.subr.bf16.mxu1 %v11821_v33 }
 0x249   : > { %v4247_v43 = vsel %vm15487_vm5, %v4244_v9, %v4246_v41  ;;  %v4249_v14 = vsel %vm15487_vm5, %v4246_v41, %v4248_v45  ;;  %v4255_v48 = vsel %vm15487_vm5, %v4252_v56, %v4254_v62  ;;  %v4257_v50 = vsel %vm15487_vm5, %v4254_v62, %v4256_v4  ;;  %10565 = vmatpush3.bf16.msra.mxu1 %v11821_v33 }
 0x24a   : > { %v4259_v55 = vsel %vm15487_vm5, %v4256_v4, %v4258_v15  ;;  %v4261_v57 = vsel %vm15487_vm5, %v4258_v15, %v4260_v21  ;;  %v4265_v44 = vsel %vm15487_vm5, %v4262_v2, %v4264_v46  ;;  %v4267_v63 = vsel %vm15487_vm5, %v4264_v46, %v4266_v53  ;;  %10566 = vmatprep.subr.bf16.mxu1 %v11822_v37 }
 0x24b   : > { %v4271_v8 = vsel %vm15487_vm5, %v4268_v31, %v4270_v61  ;;  %v4273_v16 = vsel %vm15487_vm5, %v4270_v61, %v4272_v49  ;;  %v4274_v58 = vrot.slane %v12721_v36, 3  ;;  %v234_v42 = vadd.s32 56, %v12786_v12 }
 0x24c   : > { %v280_v51 = vshrl.u32 %v12819_v29, 4  ;;  %v12837_v56 = vadd.s32 40, %v12786_v12  ;;  %v12874_v61 = vadd.s32 72, %v12786_v12 }
 0x24d   : > { %v4275_v60 = vsel %vm15487_vm5, %v4272_v49, %v4274_v58  ;;  %10567 = vmatpush3.bf16.msra.mxu1 %v11822_v37  ;;  %v12889_v37 = vadd.s32 112, %v12786_v12 }
 0x24e   : > { %10489 = vmatmul.mubr.bf16.gmra.mrb[20].mxu0 %v3883_v59  ;;  %v4263_v59 = vsel %vm15487_vm5, %v4260_v21, %v4262_v2  ;;  %10568 = vmatprep.subr.bf16.mxu1 %v11823_v11  ;;  %v12847_v15 = vmul.u32.u64.low 3817748708, %v12837_v56  ;;  %v12848_v21 = vmul.u32.u64.high 3817748708, %v12837_v56, %v12847_v15  ;;  %v12855_v2 = vadd.s32 88, %v12786_v12 }
 0x24f   : > { %10492 = vmatprep.mubr.bf16.mxu0 %v3892_v1  ;;  %v4269_v1 = vsel %vm15487_vm5, %v4266_v53, %v4268_v31 }
 0x250   : > { %v12885_v10 = vmul.u32.u64.low 3817748708, %v12855_v2  ;;  %v12886_v33 = vmul.u32.u64.high 3817748708, %v12855_v2, %v12885_v10 }
 0x251   : > { %10569 = vmatpush3.bf16.msra.mxu1 %v11823_v11 }
 0x252   : > { %10570 = vmatprep.subr.bf16.mxu1 %v11824_v13 }
 0x255   : > { %10571 = vmatpush3.bf16.msra.mxu1 %v11824_v13 }
 0x256   : > { %10493 = vmatmul.mubr.bf16.gmra.mrb[24].mxu0 %v3901_v17  ;;  %v12788_v17 = vld [vmem:[#allocation2] sm:$0x80]  ;;  %10608 = vmatprep.subr.bf16.mxu1 %v12800_v18 }
 0x257   : > { %10496 = vmatprep.mubr.bf16.mxu0 %v3910_v19  ;;  %15659 = vst [vmem:[#allocation3_spill] sm:$0xff] %v12788_v17  ;;  %v4855_v36 = vrot.slane %v12788_v17, 7 }
 0x259   : > { %v4857_v19 = vsel %vm15491_vm6, %v4855_v36, %v12791_v7 }
 0x25a   : > { %10572 = vmatprep.mubr.bf16.mxu1 %v4857_v19  ;;  %v324_v19 = vshrl.u32 %v12848_v21, 4  ;;  %v13010_v21 = vadd.s32 104, %v12786_v12 }
 0x25e   : > { %10497 = vmatmul.mubr.bf16.gmra.mrb[28].mxu0 %v3919_v34  ;;  %v12810_v38 = vmul.u32.u64.low 3817748708, %v12786_v12  ;;  %v12811_v34 = vmul.u32.u64.high 3817748708, %v12786_v12, %v12810_v38 }
 0x25f   : > { %10500 = vmatprep.mubr.bf16.mxu0 %v3928_v0  ;;  %v12814_v47 = vmul.u32.u64.low 3817748708, %v230_v28  ;;  %v12815_v0 = vmul.u32.u64.high 3817748708, %v230_v28, %v12814_v47 }
 0x260   : > { %v12938_v47 = vadd.s32 96, %v12786_v12 }
 0x266   : > { %10501 = vmatmul.mubr.bf16.gmra.mrb[32].mxu0 %v3937_v30  ;;  %v292_v30 = vmul.u32 18, %v291_v35 }
 0x267   : > { %10520 = vmatprep.mubr.bf16.mxu0 %v4241_v32  ;;  %v12822_v32 = vmul.u32.u64.low 3817748708, %v233_v52  ;;  %v12823_v5 = vmul.u32.u64.high 3817748708, %v233_v52, %v12822_v32 }
 0x268   : > { %v12831_v45 = vsub.s32 %v229_v26, %v292_v30  ;;  %v12902_v26 = vmul.u32.u64.low 3817748708, %v12874_v61  ;;  %v12903_v36 = vmul.u32.u64.high 3817748708, %v12874_v61, %v12902_v26  ;;  %v15673_v30 = vmov 0 }
 0x269   : > { %v13035_v26 = vadd.s32 152, %v12786_v12 }
 0x26a   : > { %vm661_vm7 = vcmp.ne.s32.totalorder %v12831_v45, 0  ;;  %vm697_vm8 = vcmp.lt.s32.totalorder %v12831_v45, 0  ;;  %v12858_v46 = vadd.s32 18, %v12831_v45 }
 0x26b   : > { %vm12865_vm9 = vmand %vm697_vm8, %vm661_vm7 }
 0x26e   : > { %10521 = vmatmul.mubr.bf16.vlgmr.msra.gmra.mrb[0].mxu0 %v4243_v39  ;;  %v12825_v9 = vmul.u32.u64.low 3817748708, %v231_v24  ;;  %v12826_v39 = vmul.u32.u64.high 3817748708, %v231_v24, %v12825_v9 }
 0x26f   : > { %10524 = vmatprep.mubr.bf16.mxu0 %v4245_v40  ;;  %v12828_v40 = vmul.u32.u64.low 3817748708, %v234_v42  ;;  %v12829_v41 = vmul.u32.u64.high 3817748708, %v234_v42, %v12828_v40 }
 0x270   : > { %v313_v4 = vshrl.u32 %v12826_v39, 4  ;;  %v15675_v40 = vmov 0 }
 0x272   : > { %v314_v31 = vmul.u32 18, %v313_v4 }
 0x274   : > { %v12899_v3 = vsub.s32 %v231_v24, %v314_v31 }
 0x276   : > { %10525 = vmatmul.mubr.bf16.gmra.mrb[4].mxu0 %v4247_v43  ;;  %v269_v43 = vshrl.u32 %v12811_v34, 4  ;;  %15664 = vst [vmem:[#allocation6_spill] sm:$0xff] %v12899_v3  ;;  %vm663_vm5 = vcmp.ne.s32.totalorder %v12899_v3, 0  ;;  %v12955_v29 = vadd.s32 18, %v12899_v3  ;;  %v13641_v34 = vld [vmem:[%s15483_s2] ss:$0 sm:$0xff] }
 0x277   : > { %10528 = vmatprep.mubr.bf16.mxu0 %v4249_v14  ;;  %v302_v14 = vshrl.u32 %v12815_v0, 4  ;;  %v15670_v0 = vmov 0 }
 0x278   : > { %15672 = vst [vmem:[#allocation8_spill] sm:$0xff] %v12955_v29 }
 0x279   : > { %v303_v62 = vmul.u32 18, %v302_v14 }
 0x27b   : > { %v12876_v49 = vsub.s32 %v230_v28, %v303_v62  ;;  %v12913_v27 = vmul.u32.u64.low 3817748708, %v12889_v37  ;;  %v12914_v28 = vmul.u32.u64.high 3817748708, %v12889_v37, %v12913_v27 }
 0x27d   : > { %vm662_vm12 = vcmp.ne.s32.totalorder %v12876_v49, 0  ;;  %vm698_vm13 = vcmp.lt.s32.totalorder %v12876_v49, 0  ;;  %v12926_v38 = vadd.s32 18, %v12876_v49 }
 0x27e   : > { %10529 = vmatmul.mubr.bf16.gmra.mrb[8].mxu0 %v4251_v22  ;;  %v270_v22 = vmul.u32 18, %v269_v43  ;;  %vm12930_vm8 = vmand %vm698_vm13, %vm662_vm12  ;;  %v12985_v43 = vadd.s32 120, %v12786_v12 }
 0x27f   : > { %10532 = vmatprep.mubr.bf16.mxu0 %v4253_v6  ;;  %v335_v6 = vshrl.u32 %v12823_v5, 4  ;;  %v390_v5 = vshrl.u32 %v12886_v33, 4 }
 0x281   : > { %v391_v31 = vmul.u32 18, %v390_v5 }
 0x286   : > { %10533 = vmatmul.mubr.bf16.gmra.mrb[12].mxu0 %v4255_v48  ;;  %v12844_v48 = vadd.s32 80, %v12786_v12 }
 0x287   : > { %10536 = vmatprep.mubr.bf16.mxu0 %v4257_v50  ;;  %v281_v50 = vmul.u32 18, %v280_v51  ;;  %v368_v51 = vshrl.u32 %v12903_v36, 4 }
 0x289   : > { %v369_v33 = vmul.u32 18, %v368_v51 }
 0x28b   : > { %v13061_v51 = vsub.s32 %v12874_v61, %v369_v33  ;;  %v15692_v33 = vmov 0 }
 0x28d   : > { %15685 = vst [vmem:[#allocation15_spill] sm:$0xff] %v13061_v51 }
 0x28e   : > { %10537 = vmatmul.mubr.bf16.gmra.mrb[16].mxu0 %v4259_v55  ;;  %v12851_v55 = vadd.s32 64, %v12786_v12 }
 0x28f   : > { %10540 = vmatprep.mubr.bf16.mxu0 %v4261_v57  ;;  %v346_v57 = vshrl.u32 %v12829_v41, 4 }
 0x296   : > { %10541 = vmatmul.mubr.bf16.gmra.mrb[20].mxu0 %v4263_v59  ;;  %v12861_v59 = vsub.s32 %v12786_v12, %v270_v22 }
 0x297   : > { %10544 = vmatprep.mubr.bf16.mxu0 %v4265_v44  ;;  %v336_v44 = vmul.u32 18, %v335_v6  ;;  %v12989_v22 = vmul.u32.u64.low 3817748708, %v12938_v47  ;;  %v12990_v6 = vmul.u32.u64.high 3817748708, %v12938_v47, %v12989_v22 }
 0x298   : > { %vm659_vm10 = vcmp.ne.s32.totalorder %v12861_v59, 0  ;;  %vm695_vm11 = vcmp.lt.s32.totalorder %v12861_v59, 0  ;;  %v12923_v35 = vadd.s32 18, %v12861_v59 }
 0x299   : > { %v12896_v13 = vsub.s32 %v233_v52, %v336_v44  ;;  %vm12918_vm3 = vmand %vm695_vm11, %vm659_vm10  ;;  %vm699_vm10 = vcmp.lt.s32.totalorder %v12899_v3, 0  ;;  %v401_v22 = vshrl.u32 %v12990_v6, 4  ;;  %v13082_v6 = vadd.s32 176, %v12786_v12 }
 0x29b   : > { %vm665_vm4 = vcmp.ne.s32.totalorder %v12896_v13, 0  ;;  %vm701_vm7 = vcmp.lt.s32.totalorder %v12896_v13, 0  ;;  %v12952_v25 = vadd.s32 18, %v12896_v13 }
 0x29c   : > { %vm12957_vm12 = vmand %vm701_vm7, %vm665_vm4 }
 0x29d   : > { %v15674_v30 = vsel %vm12957_vm12, 4294967295, %v15673_v30 }
 0x29e   : > { %10545 = vmatmul.mubr.bf16.gmra.mrb[24].mxu0 %v4267_v63 }
 0x29f   : > { %10548 = vmatprep.mubr.bf16.mxu0 %v4269_v1  ;;  %v12870_v63 = vmul.u32.u64.low 3817748708, %v12844_v48  ;;  %v12871_v1 = vmul.u32.u64.high 3817748708, %v12844_v48, %v12870_v63 }
 0x2a0   : > { %v423_v63 = vshrl.u32 %v12914_v28, 4 }
 0x2a1   : > { %v379_v52 = vshrl.u32 %v12871_v1, 4 }
 0x2a3   : > { %v380_v14 = vmul.u32 18, %v379_v52  ;;  %v424_v52 = vmul.u32 18, %v423_v63  ;;  %v15688_v63 = vmov 0 }
 0x2a5   : > { %v13032_v10 = vsub.s32 %v12844_v48, %v380_v14  ;;  %v13050_v48 = vsub.s32 %v12855_v2, %v391_v31  ;;  %v13074_v31 = vadd.s32 136, %v12786_v12  ;;  %v13079_v61 = vsub.s32 %v12889_v37, %v424_v52 }
 0x2a6   : > { %10549 = vmatmul.mubr.bf16.gmra.mrb[28].mxu0 %v4271_v8  ;;  %v12878_v8 = vsub.s32 %v228_v54, %v281_v50  ;;  %v15666_v54 = vmov 0  ;;  %v15678_v50 = vmov 0  ;;  %v402_v52 = vmul.u32 18, %v401_v22 }
 0x2a7   : > { %10552 = vmatprep.mubr.bf16.mxu0 %v4273_v16  ;;  %v12881_v16 = vmul.u32.u64.low 3817748708, %v12851_v55  ;;  %v12882_v58 = vmul.u32.u64.high 3817748708, %v12851_v55, %v12881_v16  ;;  %v15667_v54 = vsel %vm12918_vm3, 4294967295, %v15666_v54  ;;  %15681 = vst [vmem:[#allocation11_spill] sm:$0xff] %v13032_v10  ;;  %15684 = vst [vmem:[#allocation14_spill] sm:$0xff] %v13050_v48  ;;  %v13071_v2 = vadd.s32 18, %v13032_v10 }
 0x2a8   : > { %vm660_vm14 = vcmp.ne.s32.totalorder %v12878_v8, 0  ;;  %vm696_vm15 = vcmp.lt.s32.totalorder %v12878_v8, 0  ;;  %v12949_v24 = vadd.s32 18, %v12878_v8  ;;  %15687 = vst [vmem:[#allocation17_spill] sm:$0xff] %v13079_v61  ;;  %vm706_vm6 = vcmp.lt.s32.totalorder %v13050_v48, 0 }
 0x2a9   : > { %vm12944_vm11 = vmand %vm696_vm15, %vm660_vm14  ;;  %v357_v32 = vshrl.u32 %v12882_v58, 4  ;;  %v13018_v1 = vmul.u32.u64.low 3817748708, %v12985_v43  ;;  %v13019_v16 = vmul.u32.u64.high 3817748708, %v12985_v43, %v13018_v1  ;;  %v13022_v58 = vadd.s32 144, %v12786_v12  ;;  %15686 = vst [vmem:[#allocation16_spill] sm:$0xff] %v13071_v2 }
 0x2aa   : > { %v15671_v0 = vsel %vm12944_vm11, 4294967295, %v15670_v0  ;;  %vm12977_vm15 = vmand %vm699_vm10, %vm663_vm5  ;;  %vm669_vm10 = vcmp.ne.s32.totalorder %v13032_v10, 0  ;;  %v15702_v22 = vmov 0  ;;  %v13146_v9 = vadd.s32 18, %v13079_v61 }
 0x2ab   : > { %v15676_v40 = vsel %vm12977_vm15, 4294967295, %v15675_v40  ;;  %v358_v44 = vmul.u32 18, %v357_v32  ;;  %v434_v37 = vshrl.u32 %v13019_v16, 4  ;;  %v15697_v16 = vmov 0 }
 0x2ac   : > { %15677 = vst [vmem:[#allocation9_spill] sm:$0xff] %v15676_v40  ;;  %15708 = vst [vmem:[#allocation26_spill] sm:$0xff] %v13146_v9  ;;  %v13149_v39 = vsub.s32 %v12938_v47, %v402_v52  ;;  %v13165_v47 = vadd.s32 160, %v12786_v12  ;;  %v15755_v40 = vmov 0 }
 0x2ad   : > { %v13047_v28 = vsub.s32 %v12851_v55, %v358_v44  ;;  %v13065_v55 = vmul.u32.u64.low 3817748708, %v13035_v26  ;;  %v13066_v44 = vmul.u32.u64.high 3817748708, %v13035_v26, %v13065_v55  ;;  %v435_v20 = vmul.u32 18, %v434_v37 }
 0x2ae   : > { %10553 = vmatmul.mubr.bf16.gmra.mrb[32].mxu0 %v4275_v60  ;;  %v347_v60 = vmul.u32 18, %v346_v57  ;;  %v13124_v55 = vmul.u32.u64.low 3817748708, %v13074_v31  ;;  %v13125_v57 = vmul.u32.u64.high 3817748708, %v13074_v31, %v13124_v55 }
 0x2af   : > { %15683 = vst [vmem:[#allocation13_spill] sm:$0xff] %v13047_v28  ;;  %v13093_v1 = vadd.s32 18, %v13047_v28  ;;  %vm15696_vm0 = vcmp.lt.s32.totalorder %v13047_v28, 0  ;;  %v478_v11 = vshrl.u32 %v13066_v44, 4 }
 0x2b0   : > { %v12910_v23 = vsub.s32 %v234_v42, %v347_v60  ;;  %v325_v42 = vmul.u32 18, %v324_v19  ;;  %v13040_v36 = vmul.u32.u64.low 3817748708, %v13010_v21  ;;  %v13041_v19 = vmul.u32.u64.high 3817748708, %v13010_v21, %v13040_v36 }
 0x2b1   : > { %15691 = vst [vmem:[#allocation19_spill] sm:$0xff] %v13093_v1  ;;  %v13107_v36 = vadd.s32 18, %v13050_v48  ;;  %v13136_v60 = vmul.u32.u64.low 3817748708, %v13082_v6  ;;  %v13137_v4 = vmul.u32.u64.high 3817748708, %v13082_v6, %v13136_v60  ;;  %v479_v44 = vmul.u32 18, %v478_v11 }
 0x2b2   : > { %15665 = vst [vmem:[#allocation7_spill] sm:$0xff] %v12910_v23  ;;  %vm666_vm13 = vcmp.ne.s32.totalorder %v12910_v23, 0  ;;  %vm702_vm14 = vcmp.lt.s32.totalorder %v12910_v23, 0  ;;  %v12982_v41 = vadd.s32 18, %v12910_v23  ;;  %v13007_v15 = vsub.s32 %v12837_v56, %v325_v42 }
 0x2b3   : > { %vm13002_vm5 = vmand %vm702_vm14, %vm666_vm13  ;;  %v13025_v56 = vadd.s32 128, %v12786_v12  ;;  %v13053_v42 = vmul.u32.u64.low 3817748708, %v13022_v58  ;;  %v13054_v32 = vmul.u32.u64.high 3817748708, %v13022_v58, %v13053_v42  ;;  %vm705_vm13 = vcmp.lt.s32.totalorder %v13032_v10, 0  ;;  %15695 = vst [vmem:[#allocation21_spill] sm:$0xff] %v13107_v36 }
 0x2b4   : > { %v15679_v50 = vsel %vm13002_vm5, 4294967295, %v15678_v50  ;;  %15680 = vst [vmem:[#allocation10_spill] sm:$0xff] %v13007_v15  ;;  %vm664_vm4 = vcmp.ne.s32.totalorder %v13007_v15, 0  ;;  %vm700_vm7 = vcmp.lt.s32.totalorder %v13007_v15, 0  ;;  %v13044_v27 = vadd.s32 18, %v13007_v15  ;;  %vm13102_vm2 = vmand %vm705_vm13, %vm669_vm10 }
 0x2b5   : > { %v13057_v5 = vmul.u32.u64.low 3817748708, %v13025_v56  ;;  %v13058_v14 = vmul.u32.u64.high 3817748708, %v13025_v56, %v13057_v5  ;;  %vm667_vm14 = vcmp.ne.s32.totalorder %v13047_v28, 0  ;;  %vm13088_vm1 = vmand %vm700_vm7, %vm664_vm4  ;;  %v15693_v33 = vsel %vm13102_vm2, 4294967295, %v15692_v33 }
 0x2b6   : > { %15682 = vst [vmem:[#allocation12_spill] sm:$0xff] %v13044_v27  ;;  %v15689_v63 = vsel %vm13088_vm1, 4294967295, %v15688_v63  ;;  %15694 = vst [vmem:[#allocation20_spill] sm:$0xff] %v15693_v33  ;;  %vm668_vm4 = vcmp.ne.s32.totalorder %v13061_v51, 0  ;;  %vm704_vm7 = vcmp.lt.s32.totalorder %v13061_v51, 0  ;;  %v13120_v42 = vadd.s32 18, %v13061_v51 }
 0x2b7   : > { %15690 = vst [vmem:[#allocation18_spill] sm:$0xff] %v15689_v63  ;;  %vm13115_vm15 = vmand %vm15696_vm0, %vm667_vm14  ;;  %v412_v5 = vshrl.u32 %v13041_v19, 4  ;;  %vm15701_vm10 = vcmp.ne.s32.totalorder %v13050_v48, 0  ;;  %vm673_vm0 = vcmp.ne.s32.totalorder %v13079_v61, 0  ;;  %vm709_vm14 = vcmp.lt.s32.totalorder %v13079_v61, 0 }
 0x2b8   : > { %v15698_v16 = vsel %vm13115_vm15, 4294967295, %v15697_v16  ;;  %15700 = vst [vmem:[#allocation23_spill] sm:$0xff] %v13120_v42  ;;  %vm13129_vm13 = vmand %vm706_vm6, %vm15701_vm10  ;;  %v15705_v19 = vmov 0  ;;  %v467_v55 = vshrl.u32 %v13054_v32, 4  ;;  %v445_v62 = vshrl.u32 %v13058_v14, 4 }
 0x2b9   : > { %15699 = vst [vmem:[#allocation22_spill] sm:$0xff] %v15698_v16  ;;  %v15703_v22 = vsel %vm13129_vm13, 4294967295, %v15702_v22  ;;  %vm13139_vm5 = vmand %vm704_vm7, %vm668_vm4  ;;  %v15709_v14 = vmov 0  ;;  %v413_v37 = vmul.u32 18, %v412_v5  ;;  %v13181_v60 = vsub.s32 %v12985_v43, %v435_v20 }
 0x2ba   : > { %15704 = vst [vmem:[#allocation24_spill] sm:$0xff] %v15703_v22  ;;  %v15706_v19 = vsel %vm13139_vm5, 4294967295, %v15705_v19  ;;  %vm13160_vm6 = vmand %vm709_vm14, %vm673_vm0  ;;  %v468_v18 = vmul.u32 18, %v467_v55  ;;  %v446_v7 = vmul.u32 18, %v445_v62  ;;  %v13184_v16 = vadd.s32 184, %v12786_v12 }
 0x2bb   : > { %15707 = vst [vmem:[#allocation25_spill] sm:$0xff] %v15706_v19  ;;  %v15710_v14 = vsel %vm13160_vm6, 4294967295, %v15709_v14  ;;  %15712 = vst [vmem:[#allocation28_spill] sm:$0xff] %v13181_v60  ;;  %v13192_v32 = vadd.s32 168, %v12786_v12  ;;  %v13195_v5 = vsub.s32 %v13010_v21, %v413_v37  ;;  %v456_v20 = vshrl.u32 %v13125_v57, 4 }
 0x2bc   : > { %15711 = vst [vmem:[#allocation27_spill] sm:$0xff] %v15710_v14  ;;  %v13199_v43 = vmul.u32.u64.low 3817748708, %v13165_v47  ;;  %v13200_v62 = vmul.u32.u64.high 3817748708, %v13165_v47, %v13199_v43  ;;  %v13204_v55 = vadd.s32 18, %v13149_v39  ;;  %v511_v52 = vshrl.u32 %v13137_v4, 4 }
 0x2bd   : > { %15713 = vst [vmem:[#allocation29_spill] sm:$0xff] %v13195_v5  ;;  %v13208_v11 = vadd.s32 208, %v12786_v12  ;;  %v13213_v21 = vsub.s32 %v13022_v58, %v468_v18  ;;  %v13216_v57 = vsub.s32 %v13025_v56, %v446_v7  ;;  %v13219_v37 = vadd.s32 18, %v13181_v60 }
 0x2be   : > { %v13222_v43 = vsub.s32 %v13035_v26, %v479_v44  ;;  %v13225_v4 = vmul.u32.u64.low 3817748708, %v13184_v16  ;;  %v13226_v17 = vmul.u32.u64.high 3817748708, %v13184_v16, %v13225_v4  ;;  %v457_v61 = vmul.u32 18, %v456_v20 }
 0x2bf   : > { %15714 = vst [vmem:[#allocation30_spill] sm:$0xff] %v13216_v57  ;;  %v13230_v9 = vmul.u32.u64.low 3817748708, %v13192_v32  ;;  %v13231_v18 = vmul.u32.u64.high 3817748708, %v13192_v32, %v13230_v9  ;;  %v13235_v7 = vadd.s32 18, %v13195_v5  ;;  %v512_v58 = vmul.u32 18, %v511_v52 }
 0x2c0   : > { %15715 = vst [vmem:[#allocation31_spill] sm:$0xff] %v13222_v43  ;;  %v13238_v56 = vadd.s32 192, %v12786_v12  ;;  %v13243_v26 = vadd.s32 18, %v13213_v21  ;;  %v13248_v9 = vadd.s32 18, %v13216_v57  ;;  %v13252_v44 = vadd.s32 216, %v12786_v12 }
 0x2c1   : > { %15716 = vst [vmem:[#allocation32_spill] sm:$0xff] %v13235_v7  ;;  %v13256_v52 = vadd.s32 18, %v13222_v43  ;;  %v13259_v20 = vsub.s32 %v13074_v31, %v457_v61  ;;  %v489_v4 = vshrl.u32 %v13200_v62, 4  ;;  %v13263_v14 = vsub.s32 %v13082_v6, %v512_v58 }
 0x2c2   : > { %v13266_v51 = vmul.u32.u64.low 3817748708, %v13208_v11  ;;  %v13267_v42 = vmul.u32.u64.high 3817748708, %v13208_v11, %v13266_v51  ;;  %v13270_v19 = vadd.s32 200, %v12786_v12  ;;  %vm15720_vm6 = vcmp.ne.s32.totalorder %v13149_v39, 0 }
 0x2c3   : > { %15717 = vst [vmem:[#allocation33_spill] sm:$0xff] %v13256_v52  ;;  %15718 = vst [vmem:[#allocation34_spill] sm:$0xff] %v13259_v20  ;;  %vm15721_vm0 = vcmp.lt.s32.totalorder %v13149_v39, 0  ;;  %v15722_v48 = vmov 0  ;;  %v13281_v31 = vmul.u32.u64.low 3817748708, %v13238_v56  ;;  %v13282_v61 = vmul.u32.u64.high 3817748708, %v13238_v56, %v13281_v31 }
 0x2c4   : > { %15719 = vst [vmem:[#allocation35_spill] sm:$0xff] %v13263_v14  ;;  %vm13276_vm4 = vmand %vm15721_vm0, %vm15720_vm6  ;;  %v13285_v6 = vadd.s32 240, %v12786_v12  ;;  %v13288_v51 = vadd.s32 224, %v12786_v12  ;;  %vm15724_vm14 = vcmp.ne.s32.totalorder %v13181_v60, 0  ;;  %vm15725_vm7 = vcmp.lt.s32.totalorder %v13181_v60, 0 }
 0x2c5   : > { %v15723_v48 = vsel %vm13276_vm4, 4294967295, %v15722_v48  ;;  %vm13294_vm10 = vmand %vm15725_vm7, %vm15724_vm14  ;;  %v15726_v62 = vmov 0  ;;  %v522_v58 = vshrl.u32 %v13226_v17, 4  ;;  %v13304_v31 = vadd.s32 248, %v12786_v12 }
 0x2c6   : > { %v15727_v62 = vsel %vm13294_vm10, 4294967295, %v15726_v62  ;;  %v13300_v36 = vmul.u32.u64.low 3817748708, %v13252_v44  ;;  %v13301_v22 = vmul.u32.u64.high 3817748708, %v13252_v44, %v13300_v36  ;;  %vm15728_vm6 = vcmp.ne.s32.totalorder %v13195_v5, 0 }
 0x2c7   : > { %vm15729_vm0 = vcmp.lt.s32.totalorder %v13195_v5, 0  ;;  %v15730_v28 = vmov 0  ;;  %v490_v17 = vmul.u32 18, %v489_v4  ;;  %v500_v1 = vshrl.u32 %v13231_v18, 4 }
 0x2c8   : > { %vm13310_vm5 = vmand %vm15729_vm0, %vm15728_vm6  ;;  %vm15733_vm13 = vcmp.ne.s32.totalorder %v13213_v21, 0  ;;  %vm15734_vm15 = vcmp.lt.s32.totalorder %v13213_v21, 0  ;;  %v15735_v36 = vmov 0  ;;  %v13326_v10 = vadd.s32 18, %v13259_v20 }
 0x2c9   : > { %v15731_v28 = vsel %vm13310_vm5, 4294967295, %v15730_v28  ;;  %vm13321_vm2 = vmand %vm15734_vm15, %vm15733_vm13  ;;  %v13330_v2 = vmul.u32.u64.low 3817748708, %v13270_v19  ;;  %v13331_v33 = vmul.u32.u64.high 3817748708, %v13270_v19, %v13330_v2  ;;  %vm15738_vm0 = vcmp.ne.s32.totalorder %v13216_v57, 0 }
 0x2ca   : > { %15732 = vst [vmem:[#allocation36_spill] sm:$0xff] %v15731_v28  ;;  %v15736_v36 = vsel %vm13321_vm2, 4294967295, %v15735_v36  ;;  %15737 = vst [vmem:[#allocation37_spill] sm:$0xff] %v13326_v10  ;;  %vm15739_vm14 = vcmp.lt.s32.totalorder %v13216_v57, 0  ;;  %v15740_v18 = vmov 0  ;;  %vm15742_vm15 = vcmp.ne.s32.totalorder %v13222_v43, 0 }
 0x2cb   : > { %vm13337_vm7 = vmand %vm15739_vm14, %vm15738_vm0  ;;  %v13342_v4 = vmul.u32.u64.low 3817748708, %v13285_v6  ;;  %v13343_v15 = vmul.u32.u64.high 3817748708, %v13285_v6, %v13342_v4  ;;  %v13346_v27 = vmul.u32.u64.low 3817748708, %v13288_v51  ;;  %v13347_v63 = vmul.u32.u64.high 3817748708, %v13288_v51, %v13346_v27 }
 0x2cc   : > { %v15741_v18 = vsel %vm13337_vm7, 4294967295, %v15740_v18  ;;  %vm15743_vm13 = vcmp.lt.s32.totalorder %v13222_v43, 0  ;;  %v15744_v2 = vmov 0  ;;  %vm717_vm14 = vcmp.lt.s32.totalorder %v13263_v14, 0 }
 0x2cd   : > { %vm13353_vm6 = vmand %vm15743_vm13, %vm15742_vm15  ;;  %v13359_v3 = vmul.u32.u64.low 3817748708, %v13304_v31  ;;  %v13360_v29 = vmul.u32.u64.high 3817748708, %v13304_v31, %v13359_v3  ;;  %v13363_v4 = vadd.s32 232, %v12786_v12  ;;  %vm15747_vm0 = vcmp.ne.s32.totalorder %v13259_v20, 0 }
 0x2ce   : > { %v15745_v2 = vsel %vm13353_vm6, 4294967295, %v15744_v2  ;;  %vm15748_vm15 = vcmp.lt.s32.totalorder %v13259_v20, 0  ;;  %v15749_v3 = vmov 0  ;;  %v13386_v27 = vadd.s32 272, %v12786_v12 }
 0x2cf   : > { %15746 = vst [vmem:[#allocation38_spill] sm:$0xff] %v15745_v2  ;;  %vm13381_vm13 = vmand %vm15748_vm15, %vm15747_vm0  ;;  %v13393_v60 = vadd.s32 18, %v13263_v14  ;;  %v13396_v23 = vsub.s32 %v13165_v47, %v490_v17  ;;  %v523_v5 = vmul.u32 18, %v522_v58  ;;  %vm15754_vm0 = vcmp.ne.s32.totalorder %v13263_v14, 0 }
 0x2d0   : > { %v15750_v3 = vsel %vm13381_vm13, 4294967295, %v15749_v3  ;;  %vm13410_vm15 = vmand %vm717_vm14, %vm15754_vm0  ;;  %v555_v47 = vshrl.u32 %v13267_v42, 4  ;;  %v533_v58 = vshrl.u32 %v13282_v61, 4  ;;  %v501_v7 = vmul.u32 18, %v500_v1 }
 0x2d1   : > { %15751 = vst [vmem:[#allocation39_spill] sm:$0xff] %v15750_v3  ;;  %15752 = vst [vmem:[#allocation40_spill] sm:$0xff] %v13393_v60  ;;  %v15756_v40 = vsel %vm13410_vm15, 4294967295, %v15755_v40  ;;  %v13421_v28 = vmul.u32.u64.low 3817748708, %v13363_v4  ;;  %v13422_v43 = vmul.u32.u64.high 3817748708, %v13363_v4, %v13421_v28  ;;  %v566_v52 = vshrl.u32 %v13301_v22, 4 }
 0x2d2   : > { %15753 = vst [vmem:[#allocation41_spill] sm:$0xff] %v13396_v23  ;;  %15757 = vst [vmem:[#allocation42_spill] sm:$0xff] %v15756_v40  ;;  %v13426_v2 = vmul.u32.u64.low 3817748708, %v13386_v27  ;;  %v13427_v57 = vmul.u32.u64.high 3817748708, %v13386_v27, %v13426_v2  ;;  %v13430_v42 = vadd.s32 256, %v12786_v12  ;;  %v13438_v1 = vsub.s32 %v13184_v16, %v523_v5 }
 0x2d3   : > { %v544_v28 = vshrl.u32 %v13331_v33, 4  ;;  %v556_v22 = vmul.u32 18, %v555_v47  ;;  %v534_v17 = vmul.u32 18, %v533_v58  ;;  %v599_v2 = vshrl.u32 %v13343_v15, 4 }
 0x2d4   : > { %v13444_v20 = vadd.s32 18, %v13396_v23  ;;  %v13447_v10 = vsub.s32 %v13192_v32, %v501_v7  ;;  %v577_v61 = vshrl.u32 %v13347_v63, 4  ;;  %v610_v14 = vshrl.u32 %v13360_v29, 4 }
 0x2d5   : > { %v567_v16 = vmul.u32 18, %v566_v52  ;;  %v13452_v5 = vmul.u32.u64.low 3817748708, %v13430_v42  ;;  %v13453_v33 = vmul.u32.u64.high 3817748708, %v13430_v42, %v13452_v5  ;;  %v13456_v47 = vadd.s32 280, %v12786_v12 }
 0x2d6   : > { %15758 = vst [vmem:[#allocation43_spill] sm:$0xff] %v13444_v20  ;;  %v545_v15 = vmul.u32 18, %v544_v28  ;;  %v13461_v32 = vadd.s32 264, %v12786_v12  ;;  %v13464_v63 = vadd.s32 18, %v13438_v1  ;;  %v13467_v29 = vsub.s32 %v13208_v11, %v556_v22 }
 0x2d7   : > { %v13470_v7 = vsub.s32 %v13238_v56, %v534_v17  ;;  %v600_v52 = vmul.u32 18, %v599_v2  ;;  %v578_v58 = vmul.u32 18, %v577_v61  ;;  %v588_v60 = vshrl.u32 %v13422_v43, 4 }
 0x2d8   : > { %v611_v5 = vmul.u32 18, %v610_v14  ;;  %v13475_v28 = vsub.s32 %v13252_v44, %v567_v16  ;;  %v643_v12 = vshrl.u32 %v13427_v57, 4  ;;  %vm716_vm14 = vcmp.lt.s32.totalorder %v13447_v10, 0 }
 0x2d9   : > { %v13479_v40 = vmul.u32.u64.low 3817748708, %v13456_v47  ;;  %v13480_v3 = vmul.u32.u64.high 3817748708, %v13456_v47, %v13479_v40  ;;  %v13484_v11 = vsub.s32 %v13270_v19, %v545_v15  ;;  %vm15759_vm15 = vcmp.ne.s32.totalorder %v13396_v23, 0 }
 0x2da   : > { %v13487_v56 = vmul.u32.u64.low 3817748708, %v13461_v32  ;;  %v13488_v17 = vmul.u32.u64.high 3817748708, %v13461_v32, %v13487_v56  ;;  %vm15760_vm0 = vcmp.lt.s32.totalorder %v13396_v23, 0  ;;  %v15761_v14 = vmov 0 }
 0x2db   : > { %vm13494_vm13 = vmand %vm15760_vm0, %vm15759_vm15  ;;  %vm685_vm6 = vcmp.ne.s32.totalorder %v13467_v29, 0  ;;  %vm721_vm7 = vcmp.lt.s32.totalorder %v13467_v29, 0  ;;  %v13502_v40 = vsub.s32 %v13285_v6, %v600_v52  ;;  %vm15764_vm5 = vcmp.ne.s32.totalorder %v13438_v1, 0 }
 0x2dc   : > { %v15762_v14 = vsel %vm13494_vm13, 4294967295, %v15761_v14  ;;  %vm15765_vm10 = vcmp.lt.s32.totalorder %v13438_v1, 0  ;;  %v15766_v19 = vmov 0  ;;  %vm719_vm15 = vcmp.lt.s32.totalorder %v13470_v7, 0 }
 0x2dd   : > { %15763 = vst [vmem:[#allocation44_spill] sm:$0xff] %v13502_v40  ;;  %vm13508_vm4 = vmand %vm15765_vm10, %vm15764_vm5  ;;  %v13514_v57 = vsub.s32 %v13288_v51, %v578_v58  ;;  %v13517_v43 = vsub.s32 %v13304_v31, %v611_v5  ;;  %v589_v44 = vmul.u32 18, %v588_v60  ;;  %vm15770_vm0 = vcmp.ne.s32.totalorder %v13447_v10, 0 }
 0x2de   : > { %v15767_v19 = vsel %vm13508_vm4, 4294967295, %v15766_v19  ;;  %vm13521_vm2 = vmand %vm716_vm14, %vm15770_vm0  ;;  %v15771_v6 = vmov 0  ;;  %v644_v61 = vmul.u32 18, %v643_v12  ;;  %v621_v22 = vshrl.u32 %v13453_v33, 4 }
 0x2df   : > { %15768 = vst [vmem:[#allocation45_spill] sm:$0xff] %v13514_v57  ;;  %15769 = vst [vmem:[#allocation46_spill] sm:$0xff] %v13517_v43  ;;  %v15772_v6 = vsel %vm13521_vm2, 4294967295, %v15771_v6  ;;  %v13533_v60 = vadd.s32 18, %v13447_v10  ;;  %v15773_v31 = vmov 0  ;;  %vm684_vm0 = vcmp.ne.s32.totalorder %v13484_v11, 0 }
 0x2e0   : > { %vm13539_vm14 = vmand %vm721_vm7, %vm685_vm6  ;;  %vm720_vm10 = vcmp.lt.s32.totalorder %v13484_v11, 0  ;;  %v13546_v2 = vadd.s32 18, %v13467_v29  ;;  %vm15775_vm5 = vcmp.ne.s32.totalorder %v13470_v7, 0  ;;  %v15776_v16 = vmov 0 }
 0x2e1   : > { %v15774_v31 = vsel %vm13539_vm14, 4294967295, %v15773_v31  ;;  %vm13552_vm13 = vmand %vm719_vm15, %vm15775_vm5  ;;  %v13557_v33 = vadd.s32 18, %v13470_v7  ;;  %vm689_vm7 = vcmp.ne.s32.totalorder %v13502_v40, 0  ;;  %vm725_vm6 = vcmp.lt.s32.totalorder %v13502_v40, 0 }
 0x2e2   : > { %v15777_v16 = vsel %vm13552_vm13, 4294967295, %v15776_v16  ;;  %vm15778_vm1 = vcmp.ne.s32.totalorder %v13475_v28, 0  ;;  %vm15779_vm12 = vcmp.lt.s32.totalorder %v13475_v28, 0  ;;  %vm687_vm15 = vcmp.ne.s32.totalorder %v13514_v57, 0  ;;  %vm13575_vm11 = vmand %vm720_vm10, %vm684_vm0 }
 0x2e3   : > { %vm13565_vm14 = vmand %vm15779_vm12, %vm15778_vm1  ;;  %vm723_vm5 = vcmp.lt.s32.totalorder %v13514_v57, 0  ;;  %vm690_vm13 = vcmp.ne.s32.totalorder %v13517_v43, 0  ;;  %v13573_v52 = vsub.s32 %v13363_v4, %v589_v44  ;;  %v15783_v58 = vmov 0 }
 0x2e4   : > { %v15784_v58 = vsel %vm13575_vm11, 4294967295, %v15783_v58  ;;  %vm726_vm3 = vcmp.lt.s32.totalorder %v13517_v43, 0  ;;  %v13581_v5 = vsub.s32 %v13386_v27, %v644_v61  ;;  %v622_v12 = vmul.u32 18, %v621_v22  ;;  %vm13590_vm1 = vmand %vm725_vm6, %vm689_vm7 }
 0x2e5   : > { %15782 = vst [vmem:[#allocation47_spill] sm:$0xff] %v13573_v52  ;;  %v654_v56 = vshrl.u32 %v13480_v3, 4  ;;  %v13585_v51 = vadd.s32 18, %v13475_v28  ;;  %v13588_v23 = vadd.s32 18, %v13484_v11  ;;  %v15786_v4 = vmov 0 }
 0x2e6   : > { %15785 = vst [vmem:[#allocation48_spill] sm:$0xff] %v13581_v5  ;;  %v15787_v4 = vsel %vm13590_vm1, 4294967295, %v15786_v4  ;;  %v13595_v44 = vadd.s32 18, %v13502_v40  ;;  %v632_v20 = vshrl.u32 %v13488_v17, 4  ;;  %v15790_v27 = vsel %vm12865_vm9, %v12858_v46, %v12831_v45  ;;  %vm13628_vm9 = vmand %vm723_vm5, %vm687_vm15 }
 0x2e7   : > { %15788 = vst [vmem:[#allocation49_spill] sm:$0xff] %v15787_v4  ;;  %vm13603_vm12 = vcmp.lt.s32.totalorder %v15790_v27, 16  ;;  %v15793_v61 = vsel %vm12930_vm8, %v12926_v38, %v12876_v49  ;;  %v15796_v46 = vmov 0  ;;  %v13633_v49 = vadd.s32 18, %v13514_v57 }
 0x2e8   : > { %15789 = vst [vmem:[#allocation50_spill] sm:$0xff] %v13595_v44  ;;  %vm13612_vm10 = vcmp.lt.s32.totalorder %v15793_v61, 16  ;;  %v15797_v46 = vsel %vm13628_vm9, 4294967295, %v15796_v46  ;;  %v13636_v38 = vadd.s32 18, %v13517_v43  ;;  %vm15801_vm8 = vnez %v15667_v54 }
 0x2e9   : > { %15798 = vst [vmem:[#allocation51_spill] sm:$0xff] %v15797_v46  ;;  %15799 = vst [vmem:[#allocation52_spill] sm:$0xff] %v13633_v49  ;;  %v15802_v17 = vsel %vm15801_vm8, %v12923_v35, %v12861_v59  ;;  %vm15805_vm7 = vnez %v15671_v0  ;;  %vm15810_vm5 = vnez %v15777_v16  ;;  %vm724_vm2 = vcmp.lt.s32.totalorder %v13573_v52, 0 }
 0x2ea   : > { %15800 = vst [vmem:[#allocation53_spill] sm:$0xff] %v13636_v38  ;;  %vm13648_vm0 = vcmp.lt.s32.totalorder %v15802_v17, 16  ;;  %v15806_v61 = vsel %vm15805_vm7, %v12949_v24, %v12878_v8  ;;  %vm13673_vm8 = vmand %vm726_vm3, %vm690_vm13  ;;  %v15811_v8 = vmov 0  ;;  %vm688_vm7 = vcmp.ne.s32.totalorder %v13573_v52, 0  ;;  %v4782_v24 = vld [vmem:[#allocation2] sm:$0xc0] }
 0x2eb   : > { %vm13657_vm6 = vcmp.lt.s32.totalorder %v15806_v61, 16  ;;  %v15812_v8 = vsel %vm13673_vm8, 4294967295, %v15811_v8  ;;  %vm693_vm4 = vcmp.ne.s32.totalorder %v13581_v5, 0  ;;  %vm729_vm15 = vcmp.lt.s32.totalorder %v13581_v5, 0  ;;  %vm13704_vm3 = vmand %vm724_vm2, %vm688_vm7 }
 0x2ec   : > { %15813 = vst [vmem:[#allocation54_spill] sm:$0xff] %v15812_v8  ;;  %v13682_v35 = vsub.s32 %v13430_v42, %v622_v12  ;;  %v655_v0 = vmul.u32 18, %v654_v56  ;;  %v633_v54 = vmul.u32 18, %v632_v20  ;;  %v15815_v17 = vmov 0  ;;  %vm13719_vm13 = vmand %vm729_vm15, %vm693_vm4 }
 0x2ed   : > { %v15816_v17 = vsel %vm13704_vm3, 4294967295, %v15815_v17  ;;  %v13709_v61 = vadd.s32 18, %v13573_v52  ;;  %v13712_v20 = vadd.s32 18, %v13581_v5  ;;  %v15820_v12 = vmov 0 }
 0x2ee   : > { %15814 = vst [vmem:[#allocation55_spill] sm:$0xff] %v13682_v35  ;;  %15817 = vst [vmem:[#allocation56_spill] sm:$0xff] %v15816_v17  ;;  %v15821_v12 = vsel %vm13719_vm13, 4294967295, %v15820_v12  ;;  %v5137_v56 = vshrl.u32 %v4782_v24, 16  ;;  %v15823_v43 = vmov 0   ;;  %v5140_v49 = vshll.u32 %v4782_v24, 16 }
 0x2ef   : > { %15818 = vst [vmem:[#allocation57_spill] sm:$0xff] %v13709_v61  ;;  %15819 = vst [vmem:[#allocation58_spill] sm:$0xff] %v13712_v20  ;;  %v13724_v38 = vrot.slane %v15823_v43, 6  ;;  %vm727_vm4 = vcmp.lt.s32.totalorder %v13682_v35, 0  ;;  %v13734_v4 = vsub.s32 %v13461_v32, %v633_v54  ;;  %vm15827_vm15 = vnez %v15674_v30  ;;  %v15839_v54 = vld [vmem:[#allocation6_spill] sm:$0xff]  ;;  %v15845_v24 = vld [vmem:[#allocation12_spill] sm:$0xff] }
 0x2f0   : > { %15822 = vst [vmem:[#allocation59_spill] sm:$0xff] %v15821_v12  ;;  %vm15831_vm2 = vnez %v15679_v50  ;;  %v15838_v50 = vld [vmem:[#allocation8_spill] sm:$0xff]  ;;  %v15857_v45 = vmov 0  ;;  %v11826_v20 = vld [vmem:[%s15484_s3 + $0x8] sm:$0xff]   ;;  %v15885_v12 = vld [vmem:[#allocation23_spill] sm:$0xff] }
 0x2f1   : > { %15824 = vst [vmem:[#allocation60_spill] sm:$0xff] %v13724_v38  ;;  %15826 = vst [vmem:[#allocation62_spill] sm:$0xff] %v13734_v4  ;;  %v13825_v27 = vadd.s32 18, %v13734_v4  ;;  %v15876_v30 = vld [vmem:[#allocation24_spill] sm:$0xff] }
 0x341   : > { %v10522_v42 = vpop.f32.mrb[0].mxu0 }
 0x342   : > { %v4564_v59 = vadd.f32 %v10522_v42, %v13641_v34  ;;  %v4376_v53 = vpop.f32.mrb[1].mxu0  ;;  %v13729_v42 = vsub.s32 %v13456_v47, %v655_v0  ;;  %v15843_v0 = vld [vmem:[#allocation18_spill] sm:$0xff] }
 0x343   : > { %v4562_v8 = vadd.f32 %v13641_v34, %v4376_v53  ;;  %v10523_v57 = vpop.f32.mrb[2].mxu0  ;;  %v15828_v53 = vsel %vm15827_vm15, %v12952_v25, %v12896_v13  ;;  %vm15844_vm9 = vnez %v15843_v0 }
 0x344   : > { %15825 = vst [vmem:[#allocation61_spill] sm:$0xff] %v13729_v42  ;;  %v4600_v46 = vmax.f32 %v4564_v59, 0.0  ;;  %v4565_v40 = vadd.f32 %v10523_v57, %v13641_v34  ;;  %v4379_v44 = vpop.f32.mrb[3].mxu0  ;;  %vm13742_vm7 = vcmp.lt.s32.totalorder %v15828_v53, 16  ;;  %v15832_v57 = vld [vmem:[#allocation7_spill] sm:$0xff]  ;;  %v15846_v53 = vld [vmem:[#allocation10_spill] sm:$0xff] }
 0x345   : > { %v4598_v43 = vmax.f32 %v4562_v8, 0.0  ;;  %v4563_v38 = vadd.f32 %v13641_v34, %v4379_v44  ;;  %v15833_v59 = vsel %vm15831_vm2, %v12982_v41, %v15832_v57  ;;  %v15836_v44 = vld [vmem:[#allocation9_spill] sm:$0xff]  ;;  %v15847_v57 = vsel %vm15844_vm9, %v15845_v24, %v15846_v53 }
 0x346   : > { %vm13751_vm8 = vcmp.lt.s32.totalorder %v15833_v59, 16  ;;  %v4601_v25 = vmax.f32 %v4565_v40, 0.0  ;;  %vm15837_vm15 = vnez %v15836_v44  ;;  %vm13777_vm3 = vcmp.lt.s32.totalorder %v15847_v57, 16  ;;  %v15860_v57 = vld [vmem:[#allocation20_spill] sm:$0xff] }
 0x347   : > { %v15840_v41 = vsel %vm15837_vm15, %v15838_v50, %v15839_v54  ;;  %v13782_v40 = vadd.s32 18, %v13682_v35  ;;  %v13784_v44 = vrot.slane %v5137_v56, 6  ;;  %v4599_v13 = vmax.f32 %v4563_v38, 0.0 }
 0x348   : > { %vm13768_vm2 = vcmp.lt.s32.totalorder %v15840_v41, 16  ;;  %vm15852_vm15 = vcmp.ne.s32.totalorder %v13682_v35, 0  ;;  %v15853_v50 = vmov 0  ;;  %vm694_vm1 = vcmp.ne.s32.totalorder %v13729_v42, 0  ;;  %v15867_v35 = vld [vmem:[#allocation22_spill] sm:$0xff] }
 0x349   : > { %15850 = vst [vmem:[#allocation7_spill] sm:$0xff] %v13782_v40  ;;  %15851 = vst [vmem:[#allocation9_spill] sm:$0xff] %v13784_v44  ;;  %vm730_vm9 = vcmp.lt.s32.totalorder %v13729_v42, 0  ;;  %v13794_v54 = vrot.slane %v5140_v49, 7  ;;  %v4708_v41 = vsel %vm13603_vm12, %v4600_v46, 0.0  ;;  %v4709_v56 = vsel %vm13612_vm10, %v4601_v25, 0.0 }
 0x34a   : > { %vm13788_vm13 = vmand %vm727_vm4, %vm15852_vm15  ;;  %v13801_v38 = vadd.s32 18, %v13729_v42  ;;  %vm692_vm4 = vcmp.ne.s32.totalorder %v13734_v4, 0  ;;  %v4706_v0 = vsel %vm13648_vm0, %v4598_v43, 0.0  ;;  %v13806_v24 = vpack.c.bf16 %v4709_v56, %v4708_v41  ;;  %v10526_v53 = vpop.f32.mrb[4].mxu0  ;;  %v15862_v41 = vld [vmem:[#allocation16_spill] sm:$0xff]  ;;  %v15863_v56 = vld [vmem:[#allocation11_spill] sm:$0xff] }
 0x34b   : > { %v15854_v50 = vsel %vm13788_vm13, 4294967295, %v15853_v50  ;;  %15856 = vst [vmem:[#allocation6_spill] sm:$0xff] %v13794_v54  ;;  %v4707_v49 = vsel %vm13657_vm6, %v4599_v13, 0.0  ;;  %vm728_vm15 = vcmp.lt.s32.totalorder %v13734_v4, 0  ;;  %v4568_v22 = vadd.f32 %v10526_v53, %v13641_v34  ;;  %v4392_v46 = vpop.f32.mrb[5].mxu0  ;;  %vm13820_vm10 = vmand %vm730_vm9, %vm694_vm1  ;;  %v15870_v40 = vld [vmem:[#allocation13_spill] sm:$0xff] }
 0x34c   : > { %15855 = vst [vmem:[#allocation8_spill] sm:$0xff] %v15854_v50  ;;  %v4746_v3 = vpack.c.bf16 %v4707_v49, %v4706_v0  ;;  %v15858_v45 = vsel %vm13820_vm10, 4294967295, %v15857_v45  ;;  %4765 = vst [vmem:[#allocation2 + $0x18] sm:$0xff] %v13806_v24  ;;  %v4566_v43 = vadd.f32 %v13641_v34, %v4392_v46  ;;  %v10527_v13 = vpop.f32.mrb[6].mxu0  ;;  %vm15861_vm0 = vnez %v15860_v57  ;;  %v15869_v57 = vld [vmem:[#allocation19_spill] sm:$0xff]  ;;  %v15894_v42 = vld [vmem:[#allocation5_spill] sm:$0xff] }
 0x34d   : > { %15859 = vst [vmem:[#allocation18_spill] sm:$0xff] %v15858_v45  ;;  %v15864_v0 = vsel %vm15861_vm0, %v15862_v41, %v15863_v56  ;;  %v5163_v25 = vshrl.u32 %v13806_v24, 16  ;;  %v4604_v54 = vmax.f32 %v4568_v22, 0.0  ;;  %v4569_v46 = vadd.f32 %v10527_v13, %v13641_v34  ;;  %v4395_v44 = vpop.f32.mrb[7].mxu0  ;;  %vm13855_vm0 = vmand %vm728_vm15, %vm692_vm4  ;;  %v11829_v50 = vld [vmem:[%s15484_s3 + $0x20] sm:$0xff]  }
 0x34e   : > { %vm13834_vm6 = vcmp.lt.s32.totalorder %v15864_v0, 16  ;;  %4764 = vst [vmem:[#allocation2 + $0x10] sm:$0xff] %v4746_v3  ;;  %vm15868_vm1 = vnez %v15867_v35  ;;  %v4858_v0 = vrot.slane %v4746_v3, 7  ;;  %v5154_v53 = vshrl.u32 %v4746_v3, 16 }
 0x34f   : > { %v15871_v41 = vsel %vm15868_vm1, %v15869_v57, %v15870_v40  ;;  %v4602_v13 = vmax.f32 %v4566_v43, 0.0  ;;  %v4567_v35 = vadd.f32 %v13641_v34, %v4395_v44  ;;  %vm15877_vm12 = vnez %v15876_v30  ;;  %v15878_v40 = vld [vmem:[#allocation21_spill] sm:$0xff]  ;;  %v15879_v57 = vld [vmem:[#allocation14_spill] sm:$0xff] }
 0x350   : > { %vm13847_vm9 = vcmp.lt.s32.totalorder %v15871_v41, 16  ;;  %v15880_v41 = vsel %vm15877_vm12, %v15878_v40, %v15879_v57  ;;  %v5157_v5 = vshll.u32 %v4746_v3, 16  ;;  %vm5567_vm4 = vsmask.f32 256  ;;  %v15883_v30 = vld [vmem:[#allocation25_spill] sm:$0xff]  ;;  %v15886_v40 = vld [vmem:[#allocation15_spill] sm:$0xff] }
 0x351   : > { %vm13865_vm1 = vcmp.lt.s32.totalorder %v15880_v41, 16  ;;  %v4605_v44 = vmax.f32 %v4569_v46, 0.0  ;;  %vm15884_vm15 = vnez %v15883_v30  ;;  %v15890_v3 = vld [vmem:[#allocation4_spill] sm:$0xff]  ;;  %vm15891_vm13 = vcmask 1040384  }
 0x352   : > { %v15887_v57 = vsel %vm15884_vm15, %v15885_v12, %v15886_v40  ;;  %v4859_v52 = vsel %vm15891_vm13, %v15890_v3, %v4858_v0  ;;  %v15892_v61 = vrot.slane %v13806_v24, 7  ;;  %vm15893_vm11 = vmmov %vm15891_vm13  ;;  %v5165_v45 = vrot.slane %v5163_v25, 6 }
 0x353   : > { %vm13881_vm12 = vcmp.lt.s32.totalorder %v15887_v57, 16  ;;  %v4603_v43 = vmax.f32 %v4567_v35, 0.0  ;;  %10573 = vmatmul.mubr.bf16.vlgmr.msra.gmra.mrb[0].mxu1 %v4859_v52  ;;  %v5156_v12 = vrot.slane %v5154_v53, 6  ;;  %v5159_v30 = vrot.slane %v5157_v5, 7 }
 0x354   : > { %v4861_v17 = vsel %vm15893_vm11, %v4858_v0, %v15892_v61  ;;  %v4712_v40 = vsel %vm13742_vm7, %v4604_v54, 0.0  ;;  %v4713_v57 = vsel %vm13751_vm8, %v4605_v44, 0.0  ;;  %10609 = vmatpush3.bf16.msra.mxu1 %v15894_v42  ;;  %v15895_v61 = vshll.u32 %v13806_v24, 16  ;;  %v10530_v54 = vpop.f32.mrb[8].mxu0 }
 0x355   : > { %10576 = vmatprep.mubr.bf16.mxu1 %v4861_v17  ;;  %v13901_v52 = vrot.slane %v5154_v53, 7  ;;  %v4710_v35 = vsel %vm13768_vm2, %v4602_v13, 0.0  ;;  %v13905_v46 = vpack.c.bf16 %v4713_v57, %v4712_v40  ;;  %v4711_v47 = vsel %vm13777_vm3, %v4603_v43, 0.0  ;;  %10610 = vmatprep.subr.bf16.mxu1 %v11826_v20  ;;  %v11827_v17 = vld [vmem:[%s15484_s3 + $0x10] sm:$0xff]   ;;  %v4408_v44 = vpop.f32.mrb[9].mxu0  ;;  %v15898_v57 = vld [vmem:[#allocation26_spill] sm:$0xff] }
 0x356   : > { %v5168_v0 = vrot.slane %v15895_v61, 7  ;;  %v13912_v42 = vor.u32 %v5159_v30, %v5156_v12  ;;  %v13914_v32 = vpack.c.bf16 %v4711_v47, %v4710_v35  ;;  %v4572_v53 = vadd.f32 %v10530_v54, %v13641_v34  ;;  %v10531_v43 = vpop.f32.mrb[10].mxu0  ;;  %v15896_v40 = vld [vmem:[#allocation27_spill] sm:$0xff]  ;;  %v15899_v61 = vld [vmem:[#allocation17_spill] sm:$0xff] }
 0x357   : > { %v5576_v13 = vor.u32 %v13901_v52, %v5157_v5  ;;  %4767 = vst [vmem:[#allocation2 + $0x28] sm:$0xff] %v13905_v46  ;;  %v4570_v59 = vadd.f32 %v13641_v34, %v4408_v44  ;;  %vm15897_vm11 = vnez %v15896_v40  ;;  %v4864_v30 = vrot.slane %v13905_v46, 7  ;;  %v4411_v47 = vpop.f32.mrb[11].mxu0 }
 0x358   : > { %v5169_v8 = vor.u32 %v5168_v0, %v5165_v45  ;;  %v15900_v4 = vsel %vm15897_vm11, %v15898_v57, %v15899_v61  ;;  %v13931_v0 = vrot.slane %v5163_v25, 7  ;;  %4766 = vst [vmem:[#allocation2 + $0x20] sm:$0xff] %v13914_v32  ;;  %v4608_v5 = vmax.f32 %v4572_v53, 0.0  ;;  %10611 = vmatpush3.bf16.msra.mxu1 %v11826_v20  ;;  %v15914_v61 = vld [vmem:[#allocation36_spill] sm:$0xff] }
 0x359   : > { %vm13925_vm8 = vcmp.lt.s32.totalorder %v15900_v4, 16  ;;  %v4573_v35 = vadd.f32 %v10531_v43, %v13641_v34  ;;  %vm15903_vm3 = vnez %v15723_v48  ;;  %v4862_v44 = vrot.slane %v13914_v32, 7  ;;  %v15910_v48 = vld [vmem:[#allocation28_spill] sm:$0xff]  ;;  %10612 = vmatprep.subr.bf16.mxu1 %v11827_v17 }
 0x35a   : > { %v15904_v4 = vsel %vm15903_vm3, %v13204_v55, %v13149_v39  ;;  %vm15907_vm7 = vsmask.f32 1280  ;;  %v4606_v53 = vmax.f32 %v4570_v59, 0.0  ;;  %v4571_v43 = vadd.f32 %v13641_v34, %v4411_v47  ;;  %v11828_v55 = vld [vmem:[%s15484_s3 + $0x18] sm:$0xff]   ;;  %v15917_v47 = vld [vmem:[#allocation29_spill] sm:$0xff]  ;;  %v11831_v39 = vld [vmem:[%s15484_s3 + $0x30] sm:$0xff]  }
 0x35b   : > { %vm13940_vm13 = vcmp.lt.s32.totalorder %v15904_v4, 16  ;;  %v13947_v25 = vsel %vm15907_vm7, %v13912_v42, %v5169_v8  ;;  %vm15909_vm2 = vnez %v15727_v62  ;;  %v5172_v20 = vshrl.u32 %v13914_v32, 16 }
 0x35c   : > { %15908 = vst [vmem:[#allocation12_spill] sm:$0xff] %v13947_v25  ;;  %v15911_v40 = vsel %vm15909_vm2, %v13219_v37, %v15910_v48  ;;  %v4716_v57 = vsel %vm13834_vm6, %v4608_v5, 0.0  ;;  %v4609_v62 = vmax.f32 %v4573_v35, 0.0  ;;  %vm15915_vm11 = vnez %v15914_v61  ;;  %v15916_v37 = vld [vmem:[#allocation32_spill] sm:$0xff]  ;;  %10613 = vmatpush3.bf16.msra.mxu1 %v11827_v17 }
 0x35d   : > { %vm13955_vm15 = vcmp.lt.s32.totalorder %v15911_v40, 16  ;;  %v15918_v4 = vsel %vm15915_vm11, %v15916_v37, %v15917_v47  ;;  %v15921_v40 = vrot.slane %v13806_v24, 7  ;;  %vm15922_vm7 = vcmask 1040384   ;;  %10614 = vmatprep.subr.bf16.mxu1 %v11828_v55 }
 0x35e   : > { %vm13971_vm3 = vcmp.lt.s32.totalorder %v15918_v4, 16  ;;  %vm15923_vm2 = vmmov %vm15922_vm7  ;;  %v4714_v49 = vsel %vm13847_vm9, %v4606_v53, 0.0  ;;  %v4607_v5 = vmax.f32 %v4571_v43, 0.0  ;;  %v5174_v35 = vrot.slane %v5172_v20, 6  ;;  %v10534_v53 = vpop.f32.mrb[12].mxu0 }
 0x35f   : > { %v4863_v45 = vsel %vm15922_vm7, %v15921_v40, %v4862_v44  ;;  %v4865_v59 = vsel %vm15923_vm2, %v4862_v44, %v4864_v30  ;;  %v15924_v61 = vshll.u32 %v13914_v32, 16  ;;  %v4717_v47 = vsel %vm13865_vm1, %v4609_v62, 0.0 }
 0x360   : > { %10577 = vmatmul.mubr.bf16.gmra.mrb[4].mxu1 %v4863_v45  ;;  %v15925_v4 = vshrl.u32 %v13905_v46, 16  ;;  %v15587_v25 = vshll.u32 %v13905_v46, 16  ;;  %v13992_v56 = vsel %vm5567_vm4, %v15890_v3, %v5576_v13  ;;  %v13994_v44 = vpack.c.bf16 %v4717_v47, %v4716_v57  ;;  %v4424_v57 = vpop.f32.mrb[13].mxu0 }
 0x361   : > { %v5177_v37 = vrot.slane %v15924_v61, 7  ;;  %10580 = vmatprep.mubr.bf16.mxu1 %v4865_v59  ;;  %v4715_v45 = vsel %vm13881_vm12, %v4607_v5, 0.0  ;;  %v15926_v43 = vshll.u32 %v13806_v24, 16  ;;  %v4576_v13 = vadd.f32 %v10534_v53, %v13641_v34  ;;  %10615 = vmatpush3.bf16.msra.mxu1 %v11828_v55 }
 0x362   : > { %v5183_v40 = vrot.slane %v15925_v4, 6  ;;  %v14006_v62 = vpack.c.bf16 %v4715_v45, %v4714_v49  ;;  %v5186_v41 = vrot.slane %v15587_v25, 7  ;;  %v14011_v5 = vrot.slane %v5172_v20, 7  ;;  %4769 = vst [vmem:[#allocation2 + $0x38] sm:$0xff] %v13994_v44  ;;  %v15940_v25 = vld [vmem:[#allocation31_spill] sm:$0xff]  ;;  %10616 = vmatprep.subr.bf16.mxu1 %v11829_v50 }
 0x363   : > { %v5178_v17 = vor.u32 %v5177_v37, %v5174_v35  ;;  %v14004_v59 = vor.u32 %v13931_v0, %v15926_v43  ;;  %v4574_v61 = vadd.f32 %v13641_v34, %v4424_v57  ;;  %v10535_v35 = vpop.f32.mrb[14].mxu0  ;;  %vm15927_vm6 = vnez %v15736_v36 }
 0x364   : > { %v15928_v24 = vsel %vm15927_vm6, %v13243_v26, %v13213_v21  ;;  %v15590_v37 = vrot.slane %v13994_v44, 7  ;;  %vm15931_vm1 = vsmask.f32 1280  ;;  %4768 = vst [vmem:[#allocation2 + $0x30] sm:$0xff] %v14006_v62  ;;  %v4612_v4 = vmax.f32 %v4576_v13, 0.0  ;;  %v4427_v36 = vpop.f32.mrb[15].mxu0 }
 0x365   : > { %vm14020_vm9 = vcmp.lt.s32.totalorder %v15928_v24, 16  ;;  %v14026_v47 = vsel %vm15931_vm1, %v5169_v8, %v5178_v17  ;;  %v4577_v45 = vadd.f32 %v10535_v35, %v13641_v34  ;;  %vm15932_vm12 = vnez %v15741_v18  ;;  %v15933_v21 = vld [vmem:[#allocation30_spill] sm:$0xff]  ;;  %v15939_v35 = vld [vmem:[#allocation33_spill] sm:$0xff]  ;;  %10617 = vmatpush3.bf16.msra.mxu1 %v11829_v50  ;;  %v15955_v50 = vld [vmem:[#allocation3_spill] sm:$0xff] }
 0x366   : > { %v15934_v26 = vsel %vm15932_vm12, %v13248_v9, %v15933_v21  ;;  %v4866_v8 = vrot.slane %v14006_v62, 7  ;;  %v5187_v43 = vor.u32 %v5186_v41, %v5183_v40  ;;  %v4610_v57 = vmax.f32 %v4574_v61, 0.0  ;;  %v15937_v13 = vld [vmem:[#allocation38_spill] sm:$0xff]  ;;  %v14182_v18 = vld [vmem:[%s15484_s3 + $0x80] sm:$0xff]  }
 0x367   : > { %vm14036_vm11 = vcmp.lt.s32.totalorder %v15934_v26, 16  ;;  %v4575_v24 = vadd.f32 %v13641_v34, %v4427_v36  ;;  %vm15938_vm7 = vnez %v15937_v13  ;;  %v11830_v9 = vld [vmem:[%s15484_s3 + $0x28] sm:$0xff]   ;;  %v15589_v55 = vshrl.u32 %v14006_v62, 16  ;;  %v15944_v36 = vld [vmem:[#allocation39_spill] sm:$0xff] }
 0x368   : > { %v15941_v20 = vsel %vm15938_vm7, %v15939_v35, %v15940_v25  ;;  %v15588_v40 = vshll.u32 %v14006_v62, 16  ;;  %v4720_v41 = vsel %vm13925_vm8, %v4612_v4, 0.0  ;;  %v4613_v61 = vmax.f32 %v4577_v45, 0.0  ;;  %v15946_v25 = vld [vmem:[#allocation37_spill] sm:$0xff]  ;;  %10618 = vmatprep.subr.bf16.mxu1 %v11830_v9 }
 0x369   : > { %vm14047_vm2 = vcmp.lt.s32.totalorder %v15941_v20, 16  ;;  %vm15945_vm6 = vnez %v15944_v36  ;;  %v15947_v20 = vld [vmem:[#allocation34_spill] sm:$0xff]  ;;  %vm15951_vm12 = vcmask 1040384   ;;  %v4718_v12 = vsel %vm13940_vm13, %v4610_v57, 0.0  ;;  %10619 = vmatpush3.bf16.msra.mxu1 %v11830_v9  ;;  %v11832_v9 = vld [vmem:[%s15484_s3 + $0x38] sm:$0xff]  }
 0x36a   : > { %v15948_v21 = vsel %vm15945_vm6, %v15946_v25, %v15947_v20  ;;  %v4867_v13 = vsel %vm15951_vm12, %v4864_v30, %v4866_v8  ;;  %vm15952_vm7 = vmmov %vm15951_vm12  ;;  %v4611_v4 = vmax.f32 %v4575_v24, 0.0  ;;  %vm15953_vm8 = vsmask.f32 1280  ;;  %v10538_v20 = vpop.f32.mrb[16].mxu0  ;;  %10620 = vmatprep.subr.bf16.mxu1 %v11831_v39 }
 0x36b   : > { %vm14063_vm1 = vcmp.lt.s32.totalorder %v15948_v21, 16  ;;  %v4869_v35 = vsel %vm15952_vm7, %v4866_v8, %v15590_v37  ;;  %10581 = vmatmul.mubr.bf16.gmra.mrb[8].mxu1 %v4867_v13  ;;  %v14076_v45 = vsel %vm15953_vm8, %v5178_v17, %v5187_v43  ;;  %v5192_v36 = vrot.slane %v15589_v55, 6  ;;  %v15959_v55 = vld [vmem:[#allocation40_spill] sm:$0xff]  ;;  %v15960_v37 = vld [vmem:[#allocation35_spill] sm:$0xff]  ;;  %vm15970_vm12 = vmmov %vm15953_vm8 }
 0x36c   : > { %v4721_v25 = vsel %vm13955_vm15, %v4613_v61, 0.0  ;;  %10584 = vmatprep.mubr.bf16.mxu1 %v4869_v35  ;;  %v5195_v30 = vrot.slane %v15588_v40, 7  ;;  %v15954_v8 = vshrl.u32 %v13994_v44, 16  ;;  %v15591_v57 = vshll.u32 %v13994_v44, 16 }
 0x36d   : > { %v14087_v24 = vpack.c.bf16 %v4721_v25, %v4720_v41  ;;  %v4719_v17 = vsel %vm13971_vm3, %v4611_v4, 0.0  ;;  %v15956_v61 = vshrl.u32 %v15955_v50, 16  ;;  %v4580_v35 = vadd.f32 %v10538_v20, %v13641_v34  ;;  %v15957_v25 = vld [vmem:[#allocation42_spill] sm:$0xff]  ;;  %10621 = vmatpush3.bf16.msra.mxu1 %v11831_v39 }
 0x36e   : > { %v5201_v54 = vrot.slane %v15954_v8, 6  ;;  %v14096_v13 = vpack.c.bf16 %v4719_v17, %v4718_v12  ;;  %v4440_v8 = vpop.f32.mrb[17].mxu0  ;;  %v5196_v40 = vor.u32 %v5195_v30, %v5192_v36  ;;  %v5204_v41 = vrot.slane %v15591_v57, 7  ;;  %10622 = vmatprep.subr.bf16.mxu1 %v11832_v9 }
 0x36f   : > { %v5571_v21 = vrot.slane %v15956_v61, 7  ;;  %4771 = vst [vmem:[#allocation2 + $0x48] sm:$0xff] %v14087_v24  ;;  %v4578_v48 = vadd.f32 %v13641_v34, %v4440_v8  ;;  %v10539_v4 = vpop.f32.mrb[18].mxu0  ;;  %vm15958_vm13 = vnez %v15957_v25  ;;  %v4872_v17 = vrot.slane %v14087_v24, 7  ;;  %v15965_v25 = vld [vmem:[#allocation43_spill] sm:$0xff] }
 0x370   : > { %v15961_v50 = vsel %vm15958_vm13, %v15959_v55, %v15960_v37  ;;  %4770 = vst [vmem:[#allocation2 + $0x40] sm:$0xff] %v14096_v13  ;;  %v4616_v20 = vmax.f32 %v4580_v35, 0.0  ;;  %v4581_v61 = vadd.f32 %v10539_v4, %v13641_v34  ;;  %v4443_v8 = vpop.f32.mrb[19].mxu0  ;;  %vm15964_vm3 = vnez %v15762_v14  ;;  %v15966_v37 = vld [vmem:[#allocation41_spill] sm:$0xff] }
 0x371   : > { %vm14108_vm15 = vcmp.lt.s32.totalorder %v15961_v50, 16  ;;  %v15967_v55 = vsel %vm15964_vm3, %v15965_v25, %v15966_v37  ;;  %v4870_v57 = vrot.slane %v14096_v13, 7  ;;  %v14128_v30 = vsel %vm15970_vm12, %v5187_v43, %v5196_v40  ;;  %10623 = vmatpush3.bf16.msra.mxu1 %v11832_v9 }
 0x372   : > { %vm14122_vm6 = vcmp.lt.s32.totalorder %v15967_v55, 16  ;;  %v4614_v36 = vmax.f32 %v4578_v48, 0.0  ;;  %v4579_v35 = vadd.f32 %v13641_v34, %v4443_v8  ;;  %vm15971_vm7 = vnez %v15767_v19  ;;  %10660 = vmatprep.subr.bf16.mxu1 %v14182_v18 }
 0x373   : > { %v15972_v14 = vsel %vm15971_vm7, %v13464_v63, %v13438_v1  ;;  %v5205_v25 = vor.u32 %v5204_v41, %v5201_v54  ;;  %v5208_v43 = vshrl.u32 %v14096_v13, 16  ;;  %v4724_v48 = vsel %vm14020_vm9, %v4616_v20, 0.0 }
 0x374   : > { %vm14136_vm8 = vcmp.lt.s32.totalorder %v15972_v14, 16  ;;  %v4617_v8 = vmax.f32 %v4581_v61, 0.0  ;;  %vm15975_vm13 = vnez %v15772_v6  ;;  %v15979_v19 = vrot.slane %v13994_v44, 7 }
 0x375   : > { %v15976_v1 = vsel %vm15975_vm13, %v13533_v60, %v13447_v10  ;;  %vm15980_vm12 = vcmask 1040384   ;;  %v4722_v49 = vsel %vm14036_vm11, %v4614_v36, 0.0  ;;  %v4615_v41 = vmax.f32 %v4579_v35, 0.0  ;;  %v10542_v35 = vpop.f32.mrb[20].mxu0 }
 0x376   : > { %vm14151_vm3 = vcmp.lt.s32.totalorder %v15976_v1, 16  ;;  %v4871_v37 = vsel %vm15980_vm12, %v15979_v19, %v4870_v57  ;;  %vm15981_vm7 = vmmov %vm15980_vm12  ;;  %vm15982_vm9 = vsmask.f32 1280  ;;  %v5210_v10 = vrot.slane %v5208_v43, 6 }
 0x377   : > { %v4873_v54 = vsel %vm15981_vm7, %v4870_v57, %v4872_v17  ;;  %10585 = vmatmul.mubr.bf16.gmra.mrb[12].mxu1 %v4871_v37  ;;  %v14164_v6 = vsel %vm15982_vm9, %v5196_v40, %v5205_v25  ;;  %v4725_v60 = vsel %vm14047_vm2, %v4617_v8, 0.0  ;;  %v15598_v20 = vshll.u32 %v14096_v13, 16  ;;  %v4456_v8 = vpop.f32.mrb[21].mxu0  ;;  %vm15999_vm12 = vmmov %vm15981_vm7 }
 0x378   : > { %10588 = vmatprep.mubr.bf16.mxu1 %v4873_v54  ;;  %v15983_v57 = vshrl.u32 %v14087_v24, 16  ;;  %v15984_v53 = vshll.u32 %v14087_v24, 16  ;;  %v14175_v55 = vpack.c.bf16 %v4725_v60, %v4724_v48  ;;  %v4723_v40 = vsel %vm14063_vm1, %v4615_v41, 0.0 }
 0x379   : > { %v14186_v39 = vsel %vm5567_vm4, %v5571_v21, %v15890_v3  ;;  %v14191_v14 = vsel %vm5567_vm4, %v13901_v52, %v14004_v59  ;;  %v14193_v48 = vpack.c.bf16 %v4723_v40, %v4722_v49  ;;  %v4584_v26 = vadd.f32 %v10542_v35, %v13641_v34  ;;  %v10543_v21 = vpop.f32.mrb[22].mxu0 }
 0x37a   : > { %v5219_v61 = vrot.slane %v15983_v57, 6  ;;  %v5222_v36 = vrot.slane %v15984_v53, 7  ;;  %v5213_v1 = vrot.slane %v15598_v20, 7  ;;  %4773 = vst [vmem:[#allocation2 + $0x58] sm:$0xff] %v14175_v55  ;;  %v4582_v37 = vadd.f32 %v13641_v34, %v4456_v8  ;;  %v16059_v20 = vld [vmem:[#allocation62_spill] sm:$0xff] }
 0x37b   : > { %vm15985_vm11 = vnez %v15774_v31  ;;  %v4876_v54 = vrot.slane %v14175_v55, 7  ;;  %v5235_v49 = vshrl.u32 %v14175_v55, 16  ;;  %v15595_v41 = vshll.u32 %v14175_v55, 16  ;;  %4772 = vst [vmem:[#allocation2 + $0x50] sm:$0xff] %v14193_v48 }
 0x37c   : > { %v5223_v19 = vor.u32 %v5222_v36, %v5219_v61  ;;  %v15986_v52 = vsel %vm15985_vm11, %v13546_v2, %v13467_v29  ;;  %v4620_v60 = vmax.f32 %v4584_v26, 0.0  ;;  %v4585_v57 = vadd.f32 %v10543_v21, %v13641_v34  ;;  %v4459_v61 = vpop.f32.mrb[23].mxu0 }
 0x37d   : > { %vm14205_vm2 = vcmp.lt.s32.totalorder %v15986_v52, 16  ;;  %v15989_v29 = vsel %vm15810_vm5, %v13557_v33, %v13470_v7  ;;  %v4874_v2 = vrot.slane %v14193_v48, 7  ;;  %v5214_v53 = vor.u32 %v5213_v1, %v5210_v10  ;;  %v10546_v21 = vpop.f32.mrb[24].mxu0 }
 0x37e   : > { %vm14219_vm1 = vcmp.lt.s32.totalorder %v15989_v29, 16  ;;  %v4618_v36 = vmax.f32 %v4582_v37, 0.0  ;;  %v4583_v40 = vadd.f32 %v13641_v34, %v4459_v61  ;;  %v15992_v35 = vsel %vm13565_vm14, %v13585_v51, %v13475_v28  ;;  %v4472_v29 = vpop.f32.mrb[25].mxu0 }
 0x37f   : > { %vm14230_vm13 = vcmp.lt.s32.totalorder %v15992_v35, 16  ;;  %v5226_v7 = vshrl.u32 %v14193_v48, 16  ;;  %v15596_v33 = vshll.u32 %v14193_v48, 16  ;;  %v4728_v9 = vsel %vm14108_vm15, %v4620_v60, 0.0  ;;  %vm16000_vm15 = vmmov %vm15982_vm9  ;;  %v16003_v35 = vld [vmem:[#allocation49_spill] sm:$0xff] }
 0x380   : > { %v4621_v10 = vmax.f32 %v4585_v57, 0.0  ;;  %vm15995_vm5 = vnez %v15784_v58  ;;  %v4875_v51 = vsel %vm15999_vm12, %v4872_v17, %v4874_v2  ;;  %v4877_v26 = vsel %vm15981_vm7, %v4874_v2, %v4876_v54 }
 0x381   : > { %v15996_v15 = vsel %vm15995_vm5, %v13588_v23, %v13484_v11  ;;  %v4726_v12 = vsel %vm14122_vm6, %v4618_v36, 0.0  ;;  %v4619_v8 = vmax.f32 %v4583_v40, 0.0  ;;  %10589 = vmatmul.mubr.bf16.gmra.mrb[16].mxu1 %v4875_v51  ;;  %v14257_v58 = vsel %vm16000_vm15, %v5205_v25, %v5214_v53  ;;  %v10547_v40 = vpop.f32.mrb[26].mxu0  ;;  %vm16017_vm5 = vmmov %vm15982_vm9 }
 0x382   : > { %vm14244_vm14 = vcmp.lt.s32.totalorder %v15996_v15, 16  ;;  %v14260_v23 = vsel %vm15982_vm9, %v5214_v53, %v5223_v19  ;;  %v4729_v11 = vsel %vm14136_vm8, %v4621_v10, 0.0  ;;  %10592 = vmatprep.mubr.bf16.mxu1 %v4877_v26  ;;  %v5228_v17 = vrot.slane %v5226_v7, 6  ;;  %vm16025_vm15 = vmmov %vm16017_vm5 }
 0x383   : > { %v5231_v1 = vrot.slane %v15596_v33, 7  ;;  %v5237_v50 = vrot.slane %v5235_v49, 6  ;;  %v14270_v37 = vpack.c.bf16 %v4729_v11, %v4728_v9  ;;  %v4727_v25 = vsel %vm14151_vm3, %v4619_v8, 0.0  ;;  %v16006_v9 = vld [vmem:[#allocation44_spill] sm:$0xff]  ;;  %v16048_v33 = vld [vmem:[#allocation55_spill] sm:$0xff] }
 0x384   : > { %v5240_v4 = vrot.slane %v15595_v41, 7  ;;  %v16001_v52 = vshll.u32 %v13914_v32, 16  ;;  %v14279_v57 = vpack.c.bf16 %v4727_v25, %v4726_v12  ;;  %v4588_v61 = vadd.f32 %v10546_v21, %v13641_v34  ;;  %v16005_v32 = vld [vmem:[#allocation50_spill] sm:$0xff]  ;;  %v16012_v25 = vld [vmem:[#allocation52_spill] sm:$0xff]  ;;  %v16013_v21 = vld [vmem:[#allocation45_spill] sm:$0xff] }
 0x385   : > { %v5232_v2 = vor.u32 %v5231_v1, %v5228_v17  ;;  %v16002_v53 = vshrl.u32 %v13905_v46, 16  ;;  %4775 = vst [vmem:[#allocation2 + $0x68] sm:$0xff] %v14270_v37  ;;  %v4586_v63 = vadd.f32 %v13641_v34, %v4472_v29  ;;  %vm16004_vm6 = vnez %v16003_v35  ;;  %v4475_v17 = vpop.f32.mrb[27].mxu0  ;;  %v16010_v1 = vld [vmem:[#allocation51_spill] sm:$0xff]  ;;  %v16018_v35 = vld [vmem:[#allocation54_spill] sm:$0xff]  ;;  %v16045_v41 = vld [vmem:[#allocation8_spill] sm:$0xff] }
 0x386   : > { %v5582_v60 = vor.u32 %v14011_v5, %v16001_v52  ;;  %v16007_v10 = vsel %vm16004_vm6, %v16005_v32, %v16006_v9  ;;  %v4880_v51 = vrot.slane %v14270_v37, 7  ;;  %v5241_v26 = vor.u32 %v5240_v4, %v5237_v50  ;;  %4774 = vst [vmem:[#allocation2 + $0x60] sm:$0xff] %v14279_v57  ;;  %v16021_v32 = vld [vmem:[#allocation46_spill] sm:$0xff] }
 0x387   : > { %v14284_v36 = vrot.slane %v16002_v53, 7  ;;  %vm14293_vm8 = vcmp.lt.s32.totalorder %v16007_v10, 16  ;;  %v15594_v12 = vshrl.u32 %v14270_v37, 16  ;;  %v4624_v8 = vmax.f32 %v4588_v61, 0.0 }
 0x388   : > { %v4589_v11 = vadd.f32 %v10547_v40, %v13641_v34  ;;  %vm16011_vm3 = vnez %v16010_v1  ;;  %v4878_v53 = vrot.slane %v14279_v57, 7  ;;  %v14312_v50 = vsel %vm16017_vm5, %v5223_v19, %v5232_v2  ;;  %v16020_v40 = vld [vmem:[#allocation53_spill] sm:$0xff] }
 0x389   : > { %v16014_v52 = vsel %vm16011_vm3, %v16012_v25, %v16013_v21  ;;  %v4622_v4 = vmax.f32 %v4586_v63, 0.0  ;;  %v4587_v61 = vadd.f32 %v13641_v34, %v4475_v17  ;;  %vm16019_vm12 = vnez %v16018_v35  ;;  %v16026_v21 = vld [vmem:[#allocation56_spill] sm:$0xff]  ;;  %v16028_v17 = vld [vmem:[#allocation57_spill] sm:$0xff] }
 0x38a   : > { %vm14306_vm11 = vcmp.lt.s32.totalorder %v16014_v52, 16  ;;  %v16022_v9 = vsel %vm16019_vm12, %v16020_v40, %v16021_v32  ;;  %v14325_v1 = vsel %vm16025_vm15, %v5232_v2, %v5241_v26  ;;  %v15597_v25 = vshrl.u32 %v14279_v57, 16  ;;  %v16029_v52 = vld [vmem:[#allocation47_spill] sm:$0xff] }
 0x38b   : > { %vm14320_vm7 = vcmp.lt.s32.totalorder %v16022_v9, 16  ;;  %v4732_v19 = vsel %vm14205_vm2, %v4624_v8, 0.0  ;;  %v4625_v63 = vmax.f32 %v4589_v11, 0.0  ;;  %vm16027_vm9 = vnez %v16026_v21 }
 0x38c   : > { %v16030_v35 = vsel %vm16027_vm9, %v16028_v17, %v16029_v52  ;;  %vm16033_vm3 = vcmask 1040384   ;;  %v4730_v59 = vsel %vm14219_vm1, %v4622_v4, 0.0  ;;  %v4623_v8 = vmax.f32 %v4587_v61, 0.0  ;;  %v10550_v61 = vpop.f32.mrb[28].mxu0 }
 0x38d   : > { %vm14335_vm6 = vcmp.lt.s32.totalorder %v16030_v35, 16  ;;  %v4879_v2 = vsel %vm16033_vm3, %v4876_v54, %v4878_v53  ;;  %vm16034_vm5 = vmmov %vm16033_vm3  ;;  %v5246_v11 = vrot.slane %v15597_v25, 6  ;;  %v15593_v9 = vshll.u32 %v14279_v57, 16 }
 0x38e   : > { %v4881_v32 = vsel %vm16034_vm5, %v4878_v53, %v4880_v51  ;;  %10593 = vmatmul.mubr.bf16.gmra.mrb[20].mxu1 %v4879_v2  ;;  %v4733_v21 = vsel %vm14230_vm13, %v4625_v63, 0.0  ;;  %v5255_v54 = vrot.slane %v15594_v12, 6  ;;  %v15592_v17 = vshll.u32 %v14270_v37, 16 }
 0x38f   : > { %10596 = vmatprep.mubr.bf16.mxu1 %v4881_v32  ;;  %v14357_v31 = vsel %vm5567_vm4, %v13931_v0, %v5582_v60  ;;  %v14359_v53 = vpack.c.bf16 %v4733_v21, %v4732_v19  ;;  %v4731_v4 = vsel %vm14244_vm14, %v4623_v8, 0.0  ;;  %v5249_v16 = vrot.slane %v15593_v9, 7  ;;  %v4488_v32 = vpop.f32.mrb[29].mxu0  ;;  %v16039_v21 = vld [vmem:[#allocation58_spill] sm:$0xff] }
 0x390   : > { %v16035_v63 = vshll.u32 %v13905_v46, 16  ;;  %v14368_v35 = vpack.c.bf16 %v4731_v4, %v4730_v59  ;;  %v4592_v2 = vadd.f32 %v10550_v61, %v13641_v34  ;;  %v5258_v0 = vrot.slane %v15592_v17, 7  ;;  %v10551_v8 = vpop.f32.mrb[30].mxu0  ;;  %v16037_v46 = vld [vmem:[#allocation59_spill] sm:$0xff]  ;;  %v16040_v59 = vld [vmem:[#allocation48_spill] sm:$0xff] }
 0x391   : > { %v16036_v60 = vshrl.u32 %v14006_v62, 16  ;;  %4777 = vst [vmem:[#allocation2 + $0x78] sm:$0xff] %v14359_v53  ;;  %v4590_v19 = vadd.f32 %v13641_v34, %v4488_v32  ;;  %vm16038_vm2 = vnez %v16037_v46  ;;  %v16042_v61 = vmov 0  ;;  %v4491_v12 = vpop.f32.mrb[31].mxu0  ;;  %v16047_v46 = vld [vmem:[#allocation7_spill] sm:$0xff] }
 0x392   : > { %v5585_v52 = vor.u32 %v14284_v36, %v16035_v63  ;;  %v16041_v4 = vsel %vm16038_vm2, %v16039_v21, %v16040_v59  ;;  %v4884_v63 = vrot.slane %v14359_v53, 7  ;;  %v5250_v17 = vor.u32 %v5249_v16, %v5246_v11  ;;  %4776 = vst [vmem:[#allocation2 + $0x70] sm:$0xff] %v14368_v35 }
 0x393   : > { %v14375_v28 = vrot.slane %v16036_v60, 7  ;;  %vm14384_vm1 = vcmp.lt.s32.totalorder %v16041_v4, 16  ;;  %v15601_v60 = vshrl.u32 %v14359_v53, 16  ;;  %v4628_v9 = vmax.f32 %v4592_v2, 0.0  ;;  %v16054_v2 = vld [vmem:[#allocation61_spill] sm:$0xff] }
 0x394   : > { %v16043_v61 = vsel %vm14384_vm1, 4294967295, %v16042_v61  ;;  %v4593_v32 = vadd.f32 %v10551_v8, %v13641_v34  ;;  %vm16046_vm13 = vnez %v16045_v41  ;;  %v16050_v59 = vmov 0 }
 0x395   : > { %16044 = vst [vmem:[#allocation10_spill] sm:$0xff] %v16043_v61  ;;  %v16049_v21 = vsel %vm16046_vm13, %v16047_v46, %v16048_v33  ;;  %v4882_v4 = vrot.slane %v14368_v35, 7  ;;  %v5259_v11 = vor.u32 %v5258_v0, %v5255_v54  ;;  %v4626_v16 = vmax.f32 %v4590_v19, 0.0 }
 0x396   : > { %vm14397_vm14 = vcmp.lt.s32.totalorder %v16049_v21, 16  ;;  %v4591_v25 = vadd.f32 %v13641_v34, %v4491_v12  ;;  %v16055_v8 = vsel %vm13820_vm10, %v13801_v38, %v16054_v2  ;;  %v16056_v41 = vmov 0  ;;  %vm16064_vm10 = vmmov %vm16033_vm3 }
 0x397   : > { %v16051_v59 = vsel %vm14397_vm14, 4294967295, %v16050_v59  ;;  %vm14408_vm12 = vcmp.lt.s32.totalorder %v16055_v8, 16  ;;  %v14413_v33 = vsel %vm16025_vm15, %v5241_v26, %v5250_v17  ;;  %v15609_v46 = vshrl.u32 %v14368_v35, 16 }
 0x398   : > { %16052 = vst [vmem:[#allocation20_spill] sm:$0xff] %v16051_v59  ;;  %v16057_v41 = vsel %vm14408_vm12, 4294967295, %v16056_v41  ;;  %v4736_v54 = vsel %vm14293_vm8, %v4628_v9, 0.0  ;;  %v4629_v0 = vmax.f32 %v4593_v32, 0.0  ;;  %v16060_v12 = vsel %vm13855_vm0, %v13825_v27, %v16059_v20  ;;  %vm16065_vm8 = vmmov %vm16025_vm15 }
 0x399   : > { %16058 = vst [vmem:[#allocation16_spill] sm:$0xff] %v16057_v41  ;;  %vm14423_vm9 = vcmp.lt.s32.totalorder %v16060_v12, 16  ;;  %v16061_v38 = vmov 0  ;;  %v4883_v26 = vsel %vm16064_vm10, %v4880_v51, %v4882_v4  ;;  %v4885_v19 = vsel %vm16033_vm3, %v4882_v4, %v4884_v63  ;;  %vm16071_vm0 = vmmov %vm16033_vm3  ;;  %v14689_v41 = vld [vmem:[#allocation2 + $0x68] sm:$0xff]  ;;  %v14707_v59 = vld [vmem:[#allocation2 + $0x70] sm:$0xff] }
 0x39a   : > { %v16062_v38 = vsel %vm14423_vm9, 4294967295, %v16061_v38  ;;  %v4734_v15 = vsel %vm14306_vm11, %v4626_v16, 0.0  ;;  %v4627_v9 = vmax.f32 %v4591_v25, 0.0  ;;  %10597 = vmatmul.mubr.bf16.gmra.mrb[24].mxu1 %v4883_v26  ;;  %v14434_v22 = vsel %vm16065_vm8, %v5250_v17, %v5259_v11  ;;  %v10554_v17 = vpop.f32.mrb[32].mxu0  ;;  %vm16072_vm11 = vmmov %vm16071_vm0  ;;  %16128 = vst [vmem:[#allocation43_spill] sm:$0xff] %v14689_v41 }
 0x39b   : > { %16063 = vst [vmem:[#allocation11_spill] sm:$0xff] %v16062_v38  ;;  %v5264_v27 = vrot.slane %v15609_v46, 6  ;;  %v4737_v32 = vsel %vm14320_vm7, %v4629_v0, 0.0  ;;  %10600 = vmatprep.mubr.bf16.mxu1 %v4885_v19  ;;  %v15600_v21 = vshll.u32 %v14368_v35, 16  ;;  %v5273_v51 = vrot.slane %v15601_v60, 6  ;;  %v4504_v20 = vpop.f32.mrb[33].mxu0  ;;  %vm16073_vm7 = vmmov %vm16065_vm8 }
 0x39c   : > { %v15599_v29 = vshll.u32 %v14359_v53, 16  ;;  %v14444_v4 = vpack.c.bf16 %v4737_v32, %v4736_v54  ;;  %v4735_v25 = vsel %vm14335_vm6, %v4627_v9, 0.0  ;;  %v14450_v16 = vsel %vm5567_vm4, %v14011_v5, %v5585_v52  ;;  %vm16074_vm6 = vmmov %vm16073_vm7  ;;  %16129 = vst [vmem:[#allocation41_spill] sm:$0xff] %v14707_v59 }
 0x39d   : > { %v16066_v10 = vshll.u32 %v14006_v62, 16  ;;  %v14455_v8 = vpack.c.bf16 %v4735_v25, %v4734_v15  ;;  %v14458_v0 = vadd.f32 %v10554_v17, %v13641_v34  ;;  %v5267_v54 = vrot.slane %v15600_v21, 7  ;;  %v10555_v62 = vpop.f32.mrb[34].mxu0  ;;  %vm16086_vm5 = vmmov %vm16074_vm6 }
 0x39e   : > { %v5276_v40 = vrot.slane %v15599_v29, 7  ;;  %4779 = vst [vmem:[#allocation2 + $0x88] sm:$0xff] %v14444_v4  ;;  %v14466_v5 = vadd.f32 %v13641_v34, %v4504_v20  ;;  %v15605_v52 = vrot.slane %v14444_v4, 7  ;;  %v15607_v12 = vshrl.u32 %v14444_v4, 16  ;;  %v4507_v9 = vpop.f32.mrb[35].mxu0  ;;  %vm16087_vm2 = vmmov %vm16086_vm5 }
 0x39f   : > { %v5588_v2 = vor.u32 %v14375_v28, %v16066_v10  ;;  %16067 = vst [vmem:[#allocation22_spill] sm:$0xff] %v14458_v0  ;;  %v15608_v26 = vshll.u32 %v14444_v4, 16  ;;  %4778 = vst [vmem:[#allocation2 + $0x80] sm:$0xff] %v14455_v8  ;;  %v15602_v19 = vmax.f32 %v14458_v0, 0.0  ;;  %v14474_v15 = vadd.f32 %v10555_v62, %v13641_v34 }
 0x3a0   : > { %16068 = vst [vmem:[#allocation19_spill] sm:$0xff] %v14466_v5  ;;  %v4886_v32 = vrot.slane %v14455_v8, 7  ;;  %v5268_v25 = vor.u32 %v5267_v54, %v5264_v27  ;;  %v15603_v17 = vmax.f32 %v14466_v5, 0.0  ;;  %v14479_v10 = vadd.f32 %v13641_v34, %v4507_v9  ;;  %vm16108_vm13 = vmmov %vm16087_vm2 }
 0x3a1   : > { %16069 = vst [vmem:[#allocation13_spill] sm:$0xff] %v14474_v15  ;;  %v5277_v20 = vor.u32 %v5276_v40, %v5273_v51  ;;  %v5280_v29 = vshrl.u32 %v14455_v8, 16  ;;  %v4740_v21 = vsel %vm14384_vm1, %v15602_v19, 0.0  ;;  %v15604_v62 = vmax.f32 %v14474_v15, 0.0  ;;  %vm16113_vm15 = vmmov %vm16071_vm0 }
 0x3a2   : > { %16070 = vst [vmem:[#allocation24_spill] sm:$0xff] %v14479_v10  ;;  %v4887_v60 = vsel %vm16071_vm0, %v4884_v63, %v4886_v32  ;;  %v4889_v27 = vsel %vm16072_vm11, %v4886_v32, %v15605_v52  ;;  %v4738_v34 = vsel %vm14397_vm14, %v15603_v17, 0.0  ;;  %v15606_v51 = vmax.f32 %v14479_v10, 0.0  ;;  %vm16114_vm10 = vmmov %vm16087_vm2 }
 0x3a3   : > { %10601 = vmatmul.mubr.bf16.gmra.mrb[28].mxu1 %v4887_v60  ;;  %v14497_v54 = vsel %vm16073_vm7, %v5259_v11, %v5268_v25  ;;  %v14500_v40 = vsel %vm16074_vm6, %v5268_v25, %v5277_v20  ;;  %v4741_v63 = vsel %vm14408_vm12, %v15604_v62, 0.0  ;;  %v5282_v9 = vrot.slane %v5280_v29, 6  ;;  %vm16115_vm3 = vmmov %vm16087_vm2 }
 0x3a4   : > { %10604 = vmatprep.mubr.bf16.mxu1 %v4889_v27  ;;  %v5283_v32 = vshll.u32 %v14455_v8, 16  ;;  %v5291_v19 = vrot.slane %v15607_v12, 6  ;;  %v14509_v17 = vpack.c.bf16 %v4741_v63, %v4740_v21  ;;  %v4739_v60 = vsel %vm14423_vm9, %v15606_v51, 0.0 }
 0x3a5   : > { %v5294_v11 = vrot.slane %v15608_v26, 7  ;;  %v14519_v25 = vsel %vm5567_vm4, %v14284_v36, %v5588_v2  ;;  %v14521_v27 = vpack.c.bf16 %v4739_v60, %v4738_v34  ;;  %v16077_v62 = vshrl.u32 %v13994_v44, 16 }
 0x3a6   : > { %16075 = vst [vmem:[#allocation21_spill] sm:$0xff] %v14509_v17  ;;  %v5285_v8 = vrot.slane %v5283_v32, 7  ;;  %v5593_v21 = vrot.slane %v5208_v43, 7  ;;  %4781 = vst [vmem:[#allocation2 + $0x98] sm:$0xff] %v14509_v17  ;;  %v16078_v51 = vshrl.u32 %v14087_v24, 16  ;;  %v5599_v26 = vrot.slane %v5226_v7, 7 }
 0x3a7   : > { %16076 = vst [vmem:[#allocation14_spill] sm:$0xff] %v14521_v27  ;;  %v5590_v52 = vrot.slane %v16077_v62, 7  ;;  %v5295_v63 = vor.u32 %v5294_v11, %v5291_v19  ;;  %v5602_v36 = vrot.slane %v5235_v49, 7  ;;  %4780 = vst [vmem:[#allocation2 + $0x90] sm:$0xff] %v14521_v27  ;;  %v16079_v62 = vshll.u32 %v13994_v44, 16 }
 0x3a8   : > { %v5596_v12 = vrot.slane %v16078_v51, 7  ;;  %v5286_v2 = vor.u32 %v5285_v8, %v5282_v9  ;;  %v16080_v43 = vshll.u32 %v14096_v13, 16  ;;  %v16081_v19 = vshrl.u32 %v14279_v57, 16 }
 0x3a9   : > { %v5591_v34 = vor.u32 %v5590_v52, %v16079_v62  ;;  %v16082_v51 = vshll.u32 %v14087_v24, 16  ;;  %v16083_v7 = vshll.u32 %v14193_v48, 16  ;;  %v16084_v49 = vshll.u32 %v14175_v55, 16 }
 0x3aa   : > { %v5594_v60 = vor.u32 %v5593_v21, %v16080_v43  ;;  %v5605_v11 = vrot.slane %v16081_v19, 7  ;;  %v16085_v9 = vshrl.u32 %v14270_v37, 16  ;;  %v14550_v44 = vsel %vm16086_vm5, %v5277_v20, %v5286_v2 }
 0x3ab   : > { %v5597_v46 = vor.u32 %v5596_v12, %v16082_v51  ;;  %v5600_v15 = vor.u32 %v5599_v26, %v16083_v7  ;;  %v5603_v0 = vor.u32 %v5602_v36, %v16084_v49  ;;  %v14553_v13 = vsel %vm16087_vm2, %v5286_v2, %v5295_v63  ;;  %v16098_v7 = vld [vmem:[#allocation6_spill] sm:$0xff] }
 0x3ac   : > { %v5608_v8 = vrot.slane %v16085_v9, 7  ;;  %v14557_v62 = vsel %vm5567_vm4, %v14375_v28, %v5591_v34  ;;  %v14560_v24 = vsel %vm5567_vm4, %v5590_v52, %v5594_v60  ;;  %v16093_v20 = vshll.u32 %v14279_v57, 16 }
 0x3ad   : > { %16088 = vst [vmem:[#allocation25_spill] sm:$0xff] %v14557_v62  ;;  %16089 = vst [vmem:[#allocation23_spill] sm:$0xff] %v14560_v24  ;;  %v14563_v48 = vsel %vm5567_vm4, %v5593_v21, %v5597_v46  ;;  %v14566_v55 = vsel %vm5567_vm4, %v5596_v12, %v5600_v15  ;;  %v14569_v43 = vsel %vm5567_vm4, %v5599_v26, %v5603_v0  ;;  %v16094_v19 = vshll.u32 %v14270_v37, 16  ;;  %v16097_v21 = vld [vmem:[#allocation9_spill] sm:$0xff] }
 0x3ae   : > { %16090 = vst [vmem:[#allocation15_spill] sm:$0xff] %v14563_v48  ;;  %16091 = vst [vmem:[#allocation4_spill] sm:$0xff] %v14566_v55  ;;  %v5606_v2 = vor.u32 %v5605_v11, %v16093_v20  ;;  %v16095_v28 = vshrl.u32 %v14368_v35, 16  ;;  %v16096_v52 = vshrl.u32 %v14359_v53, 16  ;;  %v5617_v46 = vrot.slane %v5280_v29, 7 }
 0x3af   : > { %16092 = vst [vmem:[#allocation5_spill] sm:$0xff] %v14569_v43  ;;  %v5609_v51 = vor.u32 %v5608_v8, %v16094_v19  ;;  %v5143_v12 = vor.u32 %v16098_v7, %v16097_v21  ;;  %v16100_v0 = vshrl.u32 %v14444_v4, 16  ;;  %v16103_v26 = vshll.u32 %v14368_v35, 16  ;;  %v4800_v19 = vld [vmem:[#allocation2 + $0x90] sm:$0x7f] }
 0x3b0   : > { %v5611_v34 = vrot.slane %v16095_v28, 7  ;;  %v5614_v60 = vrot.slane %v16096_v52, 7  ;;  %v14582_v15 = vsel %vm5567_vm4, %v5602_v36, %v5606_v2  ;;  %v16104_v9 = vshll.u32 %v14359_v53, 16  ;;  %v16105_v28 = vld [vmem:[#allocation60_spill] sm:$0xff] }
 0x3b1   : > { %16099 = vst [vmem:[#allocation27_spill] sm:$0xff] %v14582_v15  ;;  %v14586_v57 = vrot.slane %v16100_v0, 7  ;;  %v14589_v37 = vsel %vm5567_vm4, %v5605_v11, %v5609_v51  ;;  %v5618_v29 = vor.u32 %v5617_v46, %v5283_v32  ;;  %v5151_v52 = vor.u32 %v16105_v28, %v15890_v3  ;;  %v14637_v28 = vld [vmem:[#allocation2 + $0x30] sm:$0xff] }
 0x3b2   : > { %16102 = vst [vmem:[#allocation17_spill] sm:$0xff] %v14589_v37  ;;  %v5612_v49 = vor.u32 %v5611_v34, %v16103_v26  ;;  %v5615_v20 = vor.u32 %v5614_v60, %v16104_v9  ;;  %v16106_v36 = vshll.u32 %v14444_v4, 16  ;;  %v4890_v21 = vrot.slane %v4800_v19, 7  ;;  %16121 = vst [vmem:[#allocation39_spill] sm:$0xff] %v14637_v28  ;;  %v11838_v37 = vld [vmem:[%s15484_s3 + $0xa8] sm:$0xff]  }
 0x3b3   : > { %16101 = vst [vmem:[#allocation26_spill] sm:$0xff] %v14586_v57  ;;  %v5298_v7 = vshrl.u32 %v4800_v19, 16  ;;  %v5301_v0 = vshll.u32 %v4800_v19, 16  ;;  %v5152_v35 = vsel %vm16108_vm13, %v5143_v12, %v5151_v52  ;;  %v14608_v32 = vsel %vm5567_vm4, %v5614_v60, %v5618_v29  ;;  %v14635_v29 = vld [vmem:[#allocation2 + $0x28] sm:$0xff] }
 0x3b4   : > { %v5621_v2 = vor.u32 %v14586_v57, %v16106_v36  ;;  %v14601_v11 = vsel %vm5567_vm4, %v5608_v8, %v5612_v49  ;;  %v14605_v53 = vsel %vm5567_vm4, %v5611_v34, %v5615_v20  ;;  %16110 = vst [vmem:[#allocation32_spill] sm:$0xff] %v14608_v32  ;;  %v16112_v51 = vrot.slane %v14444_v4, 7  ;;  %v11834_v34 = vld [vmem:[%s15484_s3 + $0x88] sm:$0xff]   ;;  %v11835_v4 = vld [vmem:[%s15484_s3 + $0x90] sm:$0xff]   ;;  %v14633_v20 = vld [vmem:[#allocation2 + $0x20] sm:$0xff] }
 0x3b5   : > { %16107 = vst [vmem:[#allocation28_spill] sm:$0xff] %v14601_v11  ;;  %16109 = vst [vmem:[#allocation36_spill] sm:$0xff] %v14605_v53  ;;  %v5300_v9 = vrot.slane %v5298_v7, 6  ;;  %v5303_v19 = vrot.slane %v5301_v0, 7  ;;  %v5161_v60 = vsel %vm16115_vm3, %v5151_v52, %v13912_v42  ;;  %v14629_v49 = vld [vmem:[#allocation2 + $0x10] sm:$0xff]  ;;  %v11836_v42 = vld [vmem:[%s15484_s3 + $0x98] sm:$0xff]  }
 0x3b6   : > { %v14611_v3 = vsel %vm5567_vm4, %v5617_v46, %v5621_v2  ;;  %v4891_v26 = vsel %vm16113_vm15, %v16112_v51, %v4890_v21  ;;  %v16116_v46 = vld [vmem:[#allocation12_spill] sm:$0xff]  ;;  %16117 = vst [vmem:[#allocation30_spill] sm:$0xff] %v14629_v49  ;;  %16119 = vst [vmem:[#allocation33_spill] sm:$0xff] %v14633_v20  ;;  %v14646_v2 = vld [vmem:[#allocation2 + $0x40] sm:$0xff]  ;;  %v14651_v0 = vshrl.u32 %v14633_v20, 16  ;;  %v16135_v11 = vshrl.u32 %v14629_v49, 16 }
 0x3b7   : > { %16111 = vst [vmem:[#allocation29_spill] sm:$0xff] %v14611_v3  ;;  %10605 = vmatmul.mubr.bf16.gmra.mrb[32].mxu1 %v4891_v26  ;;  %v5304_v8 = vor.u32 %v5303_v19, %v5300_v9  ;;  %16120 = vst [vmem:[#allocation31_spill] sm:$0xff] %v14635_v29  ;;  %v14644_v36 = vld [vmem:[#allocation2 + $0x38] sm:$0xff]  ;;  %v14656_v51 = vld [vmem:[#allocation2 + $0x48] sm:$0xff]  ;;  %v14661_v9 = vshrl.u32 %v14635_v29, 16  ;;  %v14664_v19 = vshll.u32 %v14635_v29, 16 }
 0x3b8   : > { %10624 = vmatprep.mubr.bf16.mxu1 %v5152_v35  ;;  %16122 = vst [vmem:[#allocation37_spill] sm:$0xff] %v14644_v36  ;;  %16123 = vst [vmem:[#allocation34_spill] sm:$0xff] %v14646_v2  ;;  %v14654_v35 = vshll.u32 %v14633_v20, 16  ;;  %v14658_v26 = vld [vmem:[#allocation2 + $0x50] sm:$0xff]  ;;  %v14678_v21 = vshrl.u32 %v14644_v36, 16  ;;  %v14684_v7 = vshrl.u32 %v14646_v2, 16 }
 0x3b9   : > { %v14617_v12 = vsel %vm16114_vm10, %v5295_v63, %v5304_v8  ;;  %v14631_v63 = vld [vmem:[#allocation2 + $0x18] sm:$0xff]  ;;  %16124 = vst [vmem:[#allocation3_spill] sm:$0xff] %v14656_v51  ;;  %16125 = vst [vmem:[#allocation42_spill] sm:$0xff] %v14658_v26  ;;  %v14667_v8 = vshrl.u32 %v14637_v28, 16  ;;  %v14687_v52 = vshll.u32 %v14646_v2, 16  ;;  %v14696_v61 = vshrl.u32 %v14656_v51, 16 }
 0x3ba   : > { %16118 = vst [vmem:[#allocation38_spill] sm:$0xff] %v14631_v63  ;;  %v14699_v10 = vshll.u32 %v14656_v51, 16  ;;  %v14702_v5 = vshrl.u32 %v14658_v26, 16  ;;  %v14705_v38 = vshll.u32 %v14658_v26, 16  ;;  %v14726_v26 = vshrl.u32 %v14689_v41, 16  ;;  %v14741_v32 = vld [vmem:[#allocation2 + $0x88] sm:$0xff] }
 0x3bb   : > { %v14729_v29 = vshll.u32 %v14689_v41, 16  ;;  %v16132_v20 = vshll.u32 %v14629_v49, 16  ;;  %v16133_v17 = vshll.u32 %v14631_v63, 16  ;;  %v14736_v3 = vshrl.u32 %v14707_v59, 16  ;;  %16134 = vst [vmem:[#allocation44_spill] sm:$0xff] %v14741_v32 }
 0x3bc   : > { %v6705_v27 = vrot.slane %v14654_v35, 1  ;;  %v6713_v53 = vrot.slane %v14664_v19, 1  ;;  %v14767_v48 = vshrl.u32 %v14741_v32, 16  ;;  %vm16137_vm8 = vsmask.f32 7424 }
 0x3bd   : > { %v6697_v57 = vrot.slane %v16133_v17, 1  ;;  %vm16139_vm0 = vmmov %vm16137_vm8  ;;  %v6737_v24 = vrot.slane %v14687_v52, 1 }
 0x3be   : > { %v6717_v55 = vor.u32 %v6713_v53, %v14661_v9  ;;  %vm16141_vm11 = vmmov %vm16139_vm0 }
 0x3bf   : > { %10625 = vmatmul.mubr.bf16.vlgmr.msra.gmra.mrb[0].mxu1 %v5161_v60  ;;  %v14672_v60 = vld [vmem:[#allocation2 + $0x58] sm:$0xff]  ;;  %vm16143_vm7 = vmmov %vm16139_vm0 }
 0x3c0   : > { %10628 = vmatprep.mubr.bf16.mxu1 %v16116_v46  ;;  %10661 = vmatpush3.bf16.msra.mxu1 %v14182_v18  ;;  %16126 = vst [vmem:[#allocation40_spill] sm:$0xff] %v14672_v60  ;;  %v14674_v46 = vld [vmem:[#allocation2 + $0x60] sm:$0xff]  ;;  %v14681_v18 = vshll.u32 %v14644_v36, 16  ;;  %v14721_v36 = vld [vmem:[#allocation2 + $0x78] sm:$0xff]  ;;  %vm16145_vm6 = vmmov %vm16139_vm0 }
 0x3c1   : > { %10662 = vmatprep.subr.bf16.mxu1 %v11834_v34  ;;  %16127 = vst [vmem:[#allocation35_spill] sm:$0xff] %v14674_v46  ;;  %v14716_v2 = vshrl.u32 %v14674_v46, 16  ;;  %v14719_v51 = vshll.u32 %v14674_v46, 16  ;;  %16130 = vst [vmem:[#allocation49_spill] sm:$0xff] %v14721_v36  ;;  %v14739_v46 = vshll.u32 %v14707_v59, 16  ;;  %v14746_v41 = vshrl.u32 %v14721_v36, 16 }
 0x3c2   : > { %v6729_v49 = vrot.slane %v14681_v18, 1  ;;  %vm16147_vm5 = vmmov %vm16139_vm0 }
 0x3c3   : > { %vm16149_vm2 = vmmov %vm16139_vm0 }
 0x3c4   : > { %10663 = vmatpush3.bf16.msra.mxu1 %v11834_v34  ;;  %v14670_v34 = vshll.u32 %v14637_v28, 16  ;;  %v14723_v28 = vld [vmem:[#allocation2 + $0x80] sm:$0xff]  ;;  %vm16151_vm13 = vmmov %vm16139_vm0 }
 0x3c5   : > { %10664 = vmatprep.subr.bf16.mxu1 %v11835_v4  ;;  %16131 = vst [vmem:[#allocation50_spill] sm:$0xff] %v14723_v28  ;;  %v14752_v17 = vshrl.u32 %v14723_v28, 16  ;;  %v14760_v15 = vshll.u32 %v14723_v28, 16  ;;  %v14776_v28 = vshll.u32 %v14741_v32, 16  ;;  %vm16153_vm15 = vmmov %vm16139_vm0 }
 0x3c6   : > { %vm16154_vm10 = vmmov %vm16139_vm0 }
 0x3c7   : > { %10629 = vmatmul.mubr.bf16.gmra.mrb[4].mxu1 %v14026_v47  ;;  %v11837_v47 = vld [vmem:[%s15484_s3 + $0xa0] sm:$0xff]   ;;  %vm16155_vm3 = vmmov %vm16139_vm0 }
 0x3c8   : > { %10632 = vmatprep.mubr.bf16.mxu1 %v14076_v45  ;;  %10665 = vmatpush3.bf16.msra.mxu1 %v11835_v4  ;;  %v14710_v45 = vshrl.u32 %v14672_v60, 16  ;;  %v14713_v4 = vshll.u32 %v14672_v60, 16  ;;  %v6692_v60 = vrot.slane %v16132_v20, 1  ;;  %v14749_v20 = vshll.u32 %v14721_v36, 16 }
 0x3c9   : > { %10666 = vmatprep.subr.bf16.mxu1 %v11836_v42  ;;  %v6709_v36 = vor.u32 %v6705_v27, %v14651_v0 }
 0x3ca   : > { %v6693_v59 = vor.u32 %v6692_v60, %v16135_v11  ;;  %v6721_v60 = vrot.slane %v14670_v34, 1 }
 0x3cc   : > { %10667 = vmatpush3.bf16.msra.mxu1 %v11836_v42  ;;  %v16136_v42 = vshrl.u32 %v14631_v63, 16  ;;  %v14770_v11 = vsel %vm16137_vm8, %v6693_v59, %v6697_v57  ;;  %v14782_v63 = vsel %vm16141_vm11, %v6709_v36, %v6713_v53  ;;  %v14787_v59 = vsel %vm16143_vm7, %v6717_v55, %v6721_v60  ;;  %vm16157_vm8 = vmmov %vm16139_vm0 }
 0x3cd   : > { %10668 = vmatprep.subr.bf16.mxu1 %v11837_v47  ;;  %16138 = vst [vmem:[#allocation51_spill] sm:$0xff] %v14770_v11  ;;  %16142 = vst [vmem:[#allocation45_spill] sm:$0xff] %v14782_v63  ;;  %v6745_v11 = vrot.slane %v14699_v10, 1  ;;  %v6753_v53 = vrot.slane %v14705_v38, 1  ;;  %v6769_v55 = vrot.slane %v14719_v51, 1 }
 0x3ce   : > { %v6701_v43 = vor.u32 %v6697_v57, %v16136_v42  ;;  %16144 = vst [vmem:[#allocation54_spill] sm:$0xff] %v14787_v59  ;;  %v6725_v57 = vor.u32 %v6721_v60, %v14667_v8  ;;  %v6777_v59 = vrot.slane %v14729_v29, 1  ;;  %vm16160_vm11 = vmmov %vm16139_vm0 }
 0x3cf   : > { %10633 = vmatmul.mubr.bf16.gmra.mrb[8].mxu1 %v14128_v30  ;;  %v6733_v30 = vor.u32 %v6729_v49, %v14678_v21  ;;  %v6749_v60 = vor.u32 %v6745_v11, %v14696_v61  ;;  %v6773_v62 = vor.u32 %v6769_v55, %v14716_v2  ;;  %vm16162_vm7 = vmmov %vm16139_vm0 }
 0x3d0   : > { %v14779_v42 = vsel %vm16139_vm0, %v6701_v43, %v6705_v27  ;;  %10636 = vmatprep.mubr.bf16.mxu1 %v14164_v6  ;;  %10669 = vmatpush3.bf16.msra.mxu1 %v11837_v47  ;;  %v11839_v27 = vld [vmem:[%s15484_s3 + $0xb0] sm:$0xff]   ;;  %v6741_v43 = vor.u32 %v6737_v24, %v14684_v7  ;;  %v6761_v6 = vrot.slane %v14713_v4, 1  ;;  %v14800_v36 = vsel %vm16145_vm6, %v6725_v57, %v6729_v49  ;;  %vm16165_vm6 = vmmov %vm16139_vm0 }
 0x3d1   : > { %16140 = vst [vmem:[#allocation52_spill] sm:$0xff] %v14779_v42  ;;  %10670 = vmatprep.subr.bf16.mxu1 %v11838_v37  ;;  %16146 = vst [vmem:[#allocation53_spill] sm:$0xff] %v14800_v36  ;;  %v14803_v47 = vsel %vm16147_vm5, %v6733_v30, %v6737_v24  ;;  %v6757_v42 = vor.u32 %v6753_v53, %v14702_v5  ;;  %v14814_v49 = vsel %vm16151_vm13, %v6749_v60, %v6753_v53  ;;  %vm16168_vm5 = vcmask 1046528  }
 0x3d2   : > { %16148 = vst [vmem:[#allocation46_spill] sm:$0xff] %v14803_v47  ;;  %v14808_v63 = vsel %vm16149_vm2, %v6741_v43, %v6745_v11  ;;  %v6765_v32 = vor.u32 %v6761_v6, %v14710_v45  ;;  %16152 = vst [vmem:[#allocation57_spill] sm:$0xff] %v14814_v49  ;;  %v6781_v24 = vor.u32 %v6777_v59, %v14726_v26  ;;  %v6785_v57 = vrot.slane %v14739_v46, 1  ;;  %v11840_v11 = vld [vmem:[%s15484_s3 + $0xb8] sm:$0xff]  }
 0x3d3   : > { %16150 = vst [vmem:[#allocation56_spill] sm:$0xff] %v14808_v63  ;;  %v6793_v30 = vrot.slane %v14749_v20, 1  ;;  %v14823_v43 = vsel %vm16153_vm15, %v6757_v42, %v6761_v6  ;;  %v6801_v53 = vrot.slane %v14760_v15, 1  ;;  %v6809_v36 = vrot.slane %v14776_v28, 1  ;;  %v14851_v6 = vld [vmem:[%s15484_s3 + $0xc0] sm:$0xff]  }
 0x3d4   : > { %10671 = vmatpush3.bf16.msra.mxu1 %v11838_v37  ;;  %v14826_v63 = vsel %vm16154_vm10, %v6765_v32, %v6769_v55  ;;  %v14829_v37 = vsel %vm16155_vm3, %v6773_v62, %v6777_v59  ;;  %v14833_v60 = vsel %vm16157_vm8, %v6781_v24, %v6785_v57  ;;  %v6789_v49 = vor.u32 %v6785_v57, %v14736_v3  ;;  %v14856_v55 = vld [vmem:[#allocation2 + $0x90] sm:$0xff] }
 0x3d5   : > { %10672 = vmatprep.subr.bf16.mxu1 %v11839_v27  ;;  %16156 = vst [vmem:[#allocation47_spill] sm:$0xff] %v14829_v37  ;;  %16158 = vst [vmem:[#allocation59_spill] sm:$0xff] %v14833_v60  ;;  %v6797_v47 = vor.u32 %v6793_v30, %v14746_v41  ;;  %v6805_v42 = vor.u32 %v6801_v53, %v14752_v17  ;;  %v6813_v59 = vor.u32 %v6809_v36, %v14767_v48  ;;  %vm16170_vm2 = vsmask.f32 6400 }
 0x3d6   : > { %v14842_v62 = vsel %vm16139_vm0, %v6789_v49, %v6793_v30  ;;  %v14874_v49 = vld [vmem:[#allocation2 + $0x18] sm:$0xfe]  ;;  %v7960_v30 = vrot.slane %v14661_v9, 1  ;;  %v7980_v60 = vrot.slane %v14702_v5, 1  ;;  %vm16171_vm13 = vmmov %vm16170_vm2 }
 0x3d7   : > { %10637 = vmatmul.mubr.bf16.gmra.mrb[12].mxu1 %v14257_v58  ;;  %16159 = vst [vmem:[#allocation58_spill] sm:$0xff] %v14842_v62  ;;  %v14845_v32 = vsel %vm16160_vm11, %v6797_v47, %v6801_v53  ;;  %v14854_v58 = vsel %vm16162_vm7, %v6805_v42, %v6809_v36  ;;  %v14872_v47 = vld [vmem:[#allocation2 + $0x98] sm:$0xff]  ;;  %16167 = vst [vmem:[#allocation18_spill] sm:$0xff] %v14874_v49  ;;  %v7949_v57 = vshrl.u32 %v14874_v49, 16  ;;  %v7952_v42 = vshll.u32 %v14874_v49, 16 }
 0x3d8   : > { %10640 = vmatprep.mubr.bf16.mxu1 %v14260_v23  ;;  %10673 = vmatpush3.bf16.msra.mxu1 %v11839_v27  ;;  %16161 = vst [vmem:[#allocation48_spill] sm:$0xff] %v14845_v32  ;;  %16163 = vst [vmem:[#allocation8_spill] sm:$0xff] %v14854_v58  ;;  %v15648_v23 = vshll.u32 %v14856_v55, 16  ;;  %v7964_v53 = vrot.slane %v14667_v8, 1  ;;  %v7965_v49 = vrot.slane %v14670_v34, 2  ;;  %v7972_v58 = vrot.slane %v14684_v7, 1 }
 0x3d9   : > { %10674 = vmatprep.subr.bf16.mxu1 %v11840_v11  ;;  %v7977_v62 = vrot.slane %v14699_v10, 2  ;;  %vm16172_vm15 = vmmov %vm16170_vm2 }
 0x3da   : > { %v14864_v27 = vrot.slane %v15648_v23, 1  ;;  %v7954_v23 = vrot.slane %v7952_v42, 2  ;;  %v7976_v42 = vrot.slane %v14696_v61, 1  ;;  %vm16173_vm10 = vmmov %vm16170_vm2 }
 0x3db   : > { %vm16174_vm3 = vmmov %vm16170_vm2 }
 0x3dc   : > { %10675 = vmatpush3.bf16.msra.mxu1 %v11840_v11  ;;  %16164 = vst [vmem:[#allocation7_spill] sm:$0xff] %v14864_v27  ;;  %v14870_v36 = vsel %vm16165_vm6, %v6813_v59, %v14864_v27  ;;  %v14885_v11 = vld [vmem:[#allocation2] sm:$0xff]  ;;  %v7968_v59 = vrot.slane %v14678_v21, 1  ;;  %v7969_v27 = vrot.slane %v14681_v18, 2  ;;  %vm16176_vm8 = vmmov %vm16170_vm2 }
 0x3dd   : > { %10712 = vmatprep.subr.bf16.mxu1 %v14851_v6  ;;  %16166 = vst [vmem:[#allocation55_spill] sm:$0xff] %v14870_v36  ;;  %vm16178_vm0 = vmmov %vm16170_vm2 }
 0x3de   : > { %vm16180_vm11 = vmmov %vm16178_vm0 }
 0x3df   : > { %10641 = vmatmul.mubr.bf16.gmra.mrb[16].mxu1 %v14312_v50  ;;  %v7961_v50 = vrot.slane %v14664_v19, 2  ;;  %vm16182_vm7 = vmmov %vm16178_vm0 }
 0x3e0   : > { %10644 = vmatprep.mubr.bf16.mxu1 %v14325_v1  ;;  %v15655_v1 = vrot.slane %v14856_v55, 1  ;;  %vm16184_vm6 = vmmov %vm16178_vm0 }
 0x3e7   : > { %10645 = vmatmul.mubr.bf16.gmra.mrb[20].mxu1 %v14413_v33  ;;  %v7957_v33 = vrot.slane %v14654_v35, 2 }
 0x3e8   : > { %10648 = vmatprep.mubr.bf16.mxu1 %v14434_v22  ;;  %v15654_v22 = vrot.slane %v14872_v47, 1 }
 0x3ea   : > { %v14896_v24 = vsel %vm16168_vm5, %v15655_v1, %v15654_v22  ;;  %v7962_v22 = vor.u32 %v7961_v50, %v7960_v30  ;;  %v7966_v1 = vor.u32 %v7965_v49, %v7964_v53  ;;  %v7978_v49 = vor.u32 %v7977_v62, %v7976_v42  ;;  %vm16186_vm5 = vmmov %vm16178_vm0 }
 0x3eb   : > { %16169 = vst [vmem:[#allocation61_spill] sm:$0xff] %v14896_v24  ;;  %v7970_v24 = vor.u32 %v7969_v27, %v7968_v59  ;;  %v7981_v50 = vrot.slane %v14705_v38, 2  ;;  %v7984_v30 = vrot.slane %v14710_v45, 1  ;;  %v7992_v62 = vrot.slane %v14726_v26, 1 }
 0x3ec   : > { %v14916_v37 = vsel %vm16172_vm15, %v7962_v22, %v7966_v1  ;;  %v7993_v53 = vrot.slane %v14729_v29, 2  ;;  %vm16196_vm15 = vmmov %vm16178_vm0 }
 0x3ed   : > { %v14920_v27 = vsel %vm16173_vm10, %v7966_v1, %v7970_v24  ;;  %v7982_v1 = vor.u32 %v7981_v50, %v7980_v60  ;;  %vm16197_vm10 = vmmov %vm16178_vm0 }
 0x3ee   : > { %v7994_v42 = vor.u32 %v7993_v53, %v7992_v62  ;;  %v8008_v62 = vrot.slane %v14767_v48, 1 }
 0x3ef   : > { %10649 = vmatmul.mubr.bf16.gmra.mrb[24].mxu1 %v14497_v54  ;;  %v7956_v54 = vrot.slane %v14651_v0, 1 }
 0x3f0   : > { %10652 = vmatprep.mubr.bf16.mxu1 %v14500_v40  ;;  %v7951_v40 = vrot.slane %v7949_v57, 1  ;;  %v7973_v57 = vrot.slane %v14687_v52, 2 }
 0x3f1   : > { %v7958_v36 = vor.u32 %v7957_v33, %v7956_v54 }
 0x3f2   : > { %v7955_v32 = vor.u32 %v7954_v23, %v7951_v40  ;;  %v7974_v23 = vor.u32 %v7973_v57, %v7972_v58  ;;  %v7989_v58 = vrot.slane %v14719_v51, 2  ;;  %v14939_v57 = vsel %vm16178_vm0, %v7978_v49, %v7982_v1 }
 0x3f3   : > { %v14913_v54 = vsel %vm16171_vm13, %v7958_v36, %v7962_v22  ;;  %v7988_v22 = vrot.slane %v14716_v2, 1  ;;  %16179 = vst [vmem:[#allocation6_spill] sm:$0xff] %v14939_v57  ;;  %vm16195_vm13 = vmmov %vm16178_vm0 }
 0x3f4   : > { %v14910_v33 = vsel %vm16170_vm2, %v7955_v32, %v7958_v36  ;;  %v14926_v32 = vsel %vm16174_vm3, %v7970_v24, %v7974_v23  ;;  %v7985_v36 = vrot.slane %v14713_v4, 2  ;;  %v7997_v24 = vrot.slane %v14739_v46, 2  ;;  %vm16190_vm2 = vmmov %vm16178_vm0 }
 0x3f5   : > { %16175 = vst [vmem:[#allocation62_spill] sm:$0xff] %v14926_v32  ;;  %v7990_v40 = vor.u32 %v7989_v58, %v7988_v22  ;;  %v8000_v32 = vrot.slane %v14746_v41, 1  ;;  %vm16198_vm3 = vmmov %vm16178_vm0 }
 0x3f6   : > { %v7986_v59 = vor.u32 %v7985_v36, %v7984_v30  ;;  %v8004_v36 = vrot.slane %v14752_v17, 1 }
 0x3f7   : > { %10653 = vmatmul.mubr.bf16.gmra.mrb[28].mxu1 %v14550_v44  ;;  %v14932_v44 = vsel %vm16176_vm8, %v7974_v23, %v7978_v49  ;;  %v8001_v23 = vrot.slane %v14749_v20, 2  ;;  %v14951_v22 = vsel %vm16184_vm6, %v7990_v40, %v7994_v42  ;;  %v8005_v49 = vrot.slane %v14760_v15, 2  ;;  %vm16199_vm8 = vmmov %vm16178_vm0 }
 0x3f8   : > { %10656 = vmatprep.mubr.bf16.mxu1 %v14553_v13  ;;  %16177 = vst [vmem:[#allocation9_spill] sm:$0xff] %v14932_v44  ;;  %v7996_v13 = vrot.slane %v14736_v3, 1  ;;  %v14944_v60 = vsel %vm16180_vm11, %v7982_v1, %v7986_v59  ;;  %v14947_v50 = vsel %vm16182_vm7, %v7986_v59, %v7990_v40  ;;  %16185 = vst [vmem:[#allocation63_spill] sm:$0xff] %v14951_v22  ;;  %v8009_v1 = vrot.slane %v14776_v28, 2 }
 0x3f9   : > { %16181 = vst [vmem:[#allocation60_spill] sm:$0xff] %v14944_v60  ;;  %16183 = vst [vmem:[#allocation12_spill] sm:$0xff] %v14947_v50  ;;  %v8002_v58 = vor.u32 %v8001_v23, %v8000_v32  ;;  %v16188_v60 = vshrl.u32 %v14856_v55, 16  ;;  %v8006_v32 = vor.u32 %v8005_v49, %v8004_v36  ;;  %v16191_v23 = vshrl.u32 %v14872_v47, 16 }
 0x3fa   : > { %v7998_v30 = vor.u32 %v7997_v24, %v7996_v13  ;;  %v16189_v13 = vshll.u32 %v14856_v55, 16  ;;  %v8010_v50 = vor.u32 %v8009_v1, %v8008_v62  ;;  %v16204_v1 = vld [vmem:[#allocation5_spill] sm:$0xff]  ;;  %vm11919_vm0 = vmpackc.low %vm14408_vm12, %vm14384_vm1  ;;  %vm16263_vm1 = vsmask.f32 7424 }
 0x3fb   : > { %v8012_v59 = vrot.slane %v16188_v60, 1  ;;  %v8016_v22 = vrot.slane %v16191_v23, 1  ;;  %v16193_v60 = vshrl.u32 %v14885_v11, 16  ;;  %vm16267_vm12 = vmmov %vm16263_vm1  ;;  %vm16271_vm11 = vcmask 1046528  }
 0x3fc   : > { %v14956_v53 = vsel %vm16186_vm5, %v7994_v42, %v7998_v30  ;;  %v8013_v24 = vrot.slane %v16189_v13, 2  ;;  %v14965_v40 = vsel %vm16190_vm2, %v7998_v30, %v8002_v58  ;;  %v16192_v42 = vshll.u32 %v14872_v47, 16  ;;  %vm16272_vm7 = vmmov %vm16271_vm11 }
 0x3fd   : > { %16187 = vst [vmem:[#allocation64_spill] sm:$0xff] %v14956_v53  ;;  %v8020_v44 = vrot.slane %v16193_v60, 1  ;;  %v16194_v13 = vshll.u32 %v14885_v11, 16  ;;  %v14977_v30 = vsel %vm16195_vm13, %v8002_v58, %v8006_v32  ;;  %v14980_v49 = vsel %vm16196_vm15, %v8006_v32, %v8010_v50  ;;  %v11842_v58 = vld [vmem:[%s15484_s3 + $0xc8] sm:$0xff]   ;;  %v16207_v32 = vld [vmem:[#allocation28_spill] sm:$0xff]  ;;  %vm16273_vm6 = vmmov %vm16272_vm7 }
 0x3fe   : > { %v8017_v53 = vrot.slane %v16192_v42, 2  ;;  %v8014_v57 = vor.u32 %v8013_v24, %v8012_v59  ;;  %v16205_v59 = vld [vmem:[#allocation27_spill] sm:$0xff]  ;;  %v16206_v24 = vld [vmem:[#allocation17_spill] sm:$0xff]  ;;  %v16208_v60 = vld [vmem:[#allocation36_spill] sm:$0xff] }
 0x3ff   : > { %10657 = vmatmul.mubr.bf16.gmra.mrb[32].mxu1 %v14617_v12  ;;  %v8021_v12 = vrot.slane %v16194_v13, 2  ;;  %v16209_v13 = vld [vmem:[#allocation14_spill] sm:$0xff]  ;;  %vm16274_vm5 = vmmov %vm16273_vm6 }
 0x400   : > { %10676 = vmatprep.mubr.bf16.mxu1 %v14186_v39  ;;  %v8018_v36 = vor.u32 %v8017_v53, %v8016_v22  ;;  %v14983_v23 = vsel %vm16197_vm10, %v8010_v50, %v8014_v57  ;;  %v16201_v50 = vld [vmem:[#allocation23_spill] sm:$0xff]  ;;  %v16203_v53 = vld [vmem:[#allocation4_spill] sm:$0xff]  ;;  %vm16275_vm2 = vmmov %vm16274_vm5 }
 0x401   : > { %v14985_v42 = vor.u32 %v8021_v12, %v8020_v44  ;;  %v11843_v44 = vld [vmem:[%s15484_s3 + $0xd0] sm:$0xff]   ;;  %v5624_v12 = vshrl.u32 %v16209_v13, 16  ;;  %vm16276_vm13 = vmmov %vm16275_vm2 }
 0x402   : > { %v14988_v39 = vsel %vm16198_vm3, %v8014_v57, %v8018_v36  ;;  %v11844_v57 = vld [vmem:[%s15484_s3 + $0xd8] sm:$0xff]   ;;  %v16202_v22 = vld [vmem:[#allocation15_spill] sm:$0xff]  ;;  %vm16277_vm15 = vmmov %vm16275_vm2 }
 0x403   : > { %v14992_v62 = vsel %vm16199_vm8, %v8018_v36, %v14985_v42  ;;  %v5910_v36 = vld [vmem:[#allocation2 + $0x8] sm:$0x80]  ;;  %vm16278_vm10 = vmmov %vm16275_vm2 }
 0x404   : > { %vm16279_vm3 = vmmov %vm16275_vm2 }
 0x405   : > { %vm16280_vm8 = vmmov %vm16275_vm2 }
 0x407   : > { %10677 = vmatmul.mubr.bf16.vlgmr.msra.gmra.mrb[0].mxu1 %v13992_v56  ;;  %v11845_v56 = vld [vmem:[%s15484_s3 + $0xe0] sm:$0xff]  }
 0x408   : > { %10680 = vmatprep.mubr.bf16.mxu1 %v14191_v14  ;;  %10713 = vmatpush3.bf16.msra.mxu1 %v14851_v6  ;;  %v11846_v14 = vld [vmem:[%s15484_s3 + $0xe8] sm:$0xff]   ;;  %v16200_v6 = vld [vmem:[#allocation25_spill] sm:$0xff] }
 0x409   : > { %10714 = vmatprep.subr.bf16.mxu1 %v11842_v58 }
 0x40c   : > { %10715 = vmatpush3.bf16.msra.mxu1 %v11842_v58  ;;  %v15034_v58 = vrot.slane %v5624_v12, 7 }
 0x40d   : > { %10716 = vmatprep.subr.bf16.mxu1 %v11843_v44 }
 0x40f   : > { %10681 = vmatmul.mubr.bf16.gmra.mrb[4].mxu1 %v14357_v31  ;;  %v11847_v31 = vld [vmem:[%s15484_s3 + $0xf0] sm:$0xff]  }
 0x410   : > { %10684 = vmatprep.mubr.bf16.mxu1 %v14450_v16  ;;  %10717 = vmatpush3.bf16.msra.mxu1 %v11843_v44  ;;  %v11848_v16 = vld [vmem:[%s15484_s3 + $0xf8] sm:$0xff]  }
 0x411   : > { %10718 = vmatprep.subr.bf16.mxu1 %v11844_v57  ;;  %v16210_v44 = vld [vmem:[#allocation32_spill] sm:$0xff] }
 0x414   : > { %10719 = vmatpush3.bf16.msra.mxu1 %v11844_v57  ;;  %v5947_v57 = vshrl.u32 %v5910_v36, 16 }
 0x415   : > { %10720 = vmatprep.subr.bf16.mxu1 %v11845_v56 }
 0x417   : > { %10685 = vmatmul.mubr.bf16.gmra.mrb[8].mxu1 %v14519_v25  ;;  %v11849_v25 = vld [vmem:[%s15484_s3 + $0x100] sm:$0xff]  }
 0x418   : > { %10688 = vmatprep.mubr.bf16.mxu1 %v16200_v6  ;;  %10721 = vmatpush3.bf16.msra.mxu1 %v11845_v56  ;;  %v16211_v56 = vld [vmem:[#allocation30_spill] sm:$0xff] }
 0x419   : > { %10722 = vmatprep.subr.bf16.mxu1 %v11846_v14 }
 0x41c   : > { %10723 = vmatpush3.bf16.msra.mxu1 %v11846_v14  ;;  %v16212_v14 = vshrl.u32 %v16211_v56, 16 }
 0x41d   : > { %10724 = vmatprep.subr.bf16.mxu1 %v11847_v31 }
 0x41e   : > { %v5953_v6 = vrot.slane %v16212_v14, 7 }
 0x41f   : > { %10689 = vmatmul.mubr.bf16.gmra.mrb[12].mxu1 %v16201_v50 }
 0x420   : > { %10692 = vmatprep.mubr.bf16.mxu1 %v16202_v22  ;;  %10725 = vmatpush3.bf16.msra.mxu1 %v11847_v31  ;;  %v16213_v31 = vld [vmem:[#allocation29_spill] sm:$0xff]  ;;  %v5949_v22 = vrot.slane %v5947_v57, 7 }
 0x421   : > { %10726 = vmatprep.subr.bf16.mxu1 %v11848_v16 }
 0x424   : > { %10727 = vmatpush3.bf16.msra.mxu1 %v11848_v16  ;;  %v5627_v16 = vshll.u32 %v16209_v13, 16 }
 0x425   : > { %10764 = vmatprep.subr.bf16.mxu1 %v11849_v25 }
 0x426   : > { %v15042_v50 = vor.u32 %v5627_v16, %v15034_v58 }
 0x427   : > { %10693 = vmatmul.mubr.bf16.gmra.mrb[16].mxu1 %v16203_v53  ;;  %v16214_v53 = vshll.u32 %v16211_v56, 16 }
 0x428   : > { %10696 = vmatprep.mubr.bf16.mxu1 %v16204_v1 }
 0x429   : > { %v5956_v1 = vor.u32 %v16214_v53, %v5953_v6  ;;  %v5977_v53 = vrot.slane %v14661_v9, 7  ;;  %v11852_v9 = vld [vmem:[%s15484_s3 + $0x118] sm:$0xff]  }
 0x42b   : > { %v5957_v36 = vsel %vm5567_vm4, %v5949_v22, %v5956_v1  ;;  %v5985_v22 = vrot.slane %v14667_v8, 7  ;;  %v5993_v8 = vrot.slane %v14678_v21, 7  ;;  %v11854_v21 = vld [vmem:[%s15484_s3 + $0x128] sm:$0xff]  }
 0x42d   : > { %v5988_v1 = vor.u32 %v14670_v34, %v5985_v22  ;;  %v5996_v34 = vor.u32 %v14681_v18, %v5993_v8  ;;  %v11855_v18 = vld [vmem:[%s15484_s3 + $0x130] sm:$0xff]  }
 0x42f   : > { %10697 = vmatmul.mubr.bf16.gmra.mrb[20].mxu1 %v16205_v59  ;;  %v16215_v59 = vld [vmem:[#allocation26_spill] sm:$0xff] }
 0x430   : > { %10700 = vmatprep.mubr.bf16.mxu1 %v16206_v24  ;;  %v5630_v24 = vsel %vm5567_vm4, %v16215_v59, %v15042_v50 }
 0x437   : > { %10701 = vmatmul.mubr.bf16.gmra.mrb[24].mxu1 %v16207_v32  ;;  %v16216_v32 = vld [vmem:[#allocation38_spill] sm:$0xff] }
 0x438   : > { %10704 = vmatprep.mubr.bf16.mxu1 %v16208_v60  ;;  %v16217_v60 = vshrl.u32 %v16216_v32, 16  ;;  %v16218_v13 = vshll.u32 %v16216_v32, 16 }
 0x43a   : > { %v5961_v12 = vrot.slane %v16217_v60, 7 }
 0x43c   : > { %v5964_v14 = vor.u32 %v16218_v13, %v5961_v12 }
 0x43e   : > { %v5965_v16 = vsel %vm5567_vm4, %v5953_v6, %v5964_v14 }
 0x43f   : > { %10705 = vmatmul.mubr.bf16.gmra.mrb[28].mxu1 %v16210_v44  ;;  %v5969_v44 = vrot.slane %v14651_v0, 7  ;;  %v11851_v0 = vld [vmem:[%s15484_s3 + $0x110] sm:$0xff]  }
 0x440   : > { %10708 = vmatprep.mubr.bf16.mxu1 %v16213_v31  ;;  %v11850_v31 = vld [vmem:[%s15484_s3 + $0x108] sm:$0xff]  }
 0x441   : > { %v5972_v57 = vor.u32 %v14654_v35, %v5969_v44  ;;  %v5980_v35 = vor.u32 %v14664_v19, %v5977_v53  ;;  %v11853_v19 = vld [vmem:[%s15484_s3 + $0x120] sm:$0xff]  }
 0x443   : > { %v5973_v59 = vsel %vm5567_vm4, %v5961_v12, %v5972_v57  ;;  %v5981_v6 = vsel %vm5567_vm4, %v5969_v44, %v5980_v35  ;;  %v5997_v12 = vsel %vm5567_vm4, %v5985_v22, %v5996_v34  ;;  %v6017_v44 = vrot.slane %v14702_v5, 7  ;;  %v16222_v34 = vld [vmem:[#allocation39_spill] sm:$0xff] }
 0x444   : > { %v6025_v5 = vrot.slane %v14710_v45, 7 }
 0x445   : > { %v6020_v13 = vor.u32 %v14705_v38, %v6017_v44  ;;  %v11857_v38 = vld [vmem:[%s15484_s3 + $0x140] sm:$0xff]  }
 0x447   : > { %10709 = vmatmul.mubr.bf16.gmra.mrb[32].mxu1 %v5630_v24  ;;  %v6001_v24 = vrot.slane %v14684_v7, 7  ;;  %v6009_v7 = vrot.slane %v14696_v61, 7  ;;  %v11856_v61 = vld [vmem:[%s15484_s3 + $0x138] sm:$0xff]  }
 0x448   : > { %10728 = vmatprep.mubr.bf16.mxu1 %v5957_v36 }
 0x449   : > { %v6004_v60 = vor.u32 %v14687_v52, %v6001_v24  ;;  %v6012_v52 = vor.u32 %v14699_v10, %v6009_v7  ;;  %v6021_v57 = vsel %vm5567_vm4, %v6009_v7, %v6020_v13  ;;  %v6028_v10 = vor.u32 %v14713_v4, %v6025_v5  ;;  %v11863_v7 = vld [vmem:[%s15484_s3 + $0x170] sm:$0xff]   ;;  %v16227_v13 = vld [vmem:[#allocation40_spill] sm:$0xff] }
 0x44b   : > { %v6005_v36 = vsel %vm5567_vm4, %v5993_v8, %v6004_v60  ;;  %v6013_v14 = vsel %vm5567_vm4, %v6001_v24, %v6012_v52  ;;  %v6029_v45 = vsel %vm5567_vm4, %v6017_v44, %v6028_v10  ;;  %v11862_v60 = vld [vmem:[%s15484_s3 + $0x168] sm:$0xff]   ;;  %v16225_v44 = vld [vmem:[#allocation3_spill] sm:$0xff]  ;;  %v11865_v52 = vld [vmem:[%s15484_s3 + $0x180] sm:$0xff]  }
 0x44c   : > { %v11874_v10 = vld [vmem:[%s15484_s3 + $0x1c8] sm:$0xff]  }
 0x44f   : > { %10729 = vmatmul.mubr.bf16.vlgmr.msra.gmra.mrb[0].mxu1 %v5965_v16 }
 0x450   : > { %10732 = vmatprep.mubr.bf16.mxu1 %v5973_v59  ;;  %10765 = vmatpush3.bf16.msra.mxu1 %v11849_v25  ;;  %v5989_v25 = vsel %vm5567_vm4, %v5977_v53, %v5988_v1  ;;  %v6041_v53 = vrot.slane %v14726_v26, 7  ;;  %v6049_v59 = vrot.slane %v14736_v3, 7  ;;  %v6065_v1 = vrot.slane %v14752_v17, 7 }
 0x451   : > { %10766 = vmatprep.subr.bf16.mxu1 %v11850_v31 }
 0x452   : > { %v6044_v22 = vor.u32 %v14729_v29, %v6041_v53  ;;  %v6073_v29 = vrot.slane %v14767_v48, 7 }
 0x454   : > { %10767 = vmatpush3.bf16.msra.mxu1 %v11850_v31  ;;  %v6033_v31 = vrot.slane %v14716_v2, 7 }
 0x455   : > { %10768 = vmatprep.subr.bf16.mxu1 %v11851_v0 }
 0x456   : > { %v6036_v16 = vor.u32 %v14719_v51, %v6033_v31  ;;  %v6045_v4 = vsel %vm5567_vm4, %v6033_v31, %v6044_v22  ;;  %v6057_v51 = vrot.slane %v14746_v41, 7  ;;  %v6076_v41 = vor.u32 %v14776_v28, %v6073_v29  ;;  %v11858_v28 = vld [vmem:[%s15484_s3 + $0x148] sm:$0xff]  }
 0x457   : > { %10733 = vmatmul.mubr.bf16.gmra.mrb[4].mxu1 %v5981_v6  ;;  %v16219_v6 = vld [vmem:[#allocation21_spill] sm:$0xff]  ;;  %v16232_v31 = vld [vmem:[#allocation50_spill] sm:$0xff] }
 0x458   : > { %10736 = vmatprep.mubr.bf16.mxu1 %v5989_v25  ;;  %10769 = vmatpush3.bf16.msra.mxu1 %v11851_v0  ;;  %v6037_v2 = vsel %vm5567_vm4, %v6025_v5, %v6036_v16  ;;  %v6052_v0 = vor.u32 %v14739_v46, %v6049_v59  ;;  %v6060_v26 = vor.u32 %v14749_v20, %v6057_v51  ;;  %v6087_v8 = vshrl.u32 %v16219_v6, 16  ;;  %v16230_v5 = vld [vmem:[#allocation41_spill] sm:$0xff]  ;;  %v11875_v16 = vld [vmem:[%s15484_s3 + $0x1d0] sm:$0xff]  }
 0x459   : > { %10770 = vmatprep.subr.bf16.mxu1 %v11852_v9  ;;  %v6077_v25 = vsel %vm5567_vm4, %v6065_v1, %v6076_v41  ;;  %v6085_v20 = vsel %vm5567_vm4, %v6073_v29, %v15042_v50  ;;  %v11859_v50 = vld [vmem:[%s15484_s3 + $0x150] sm:$0xff]   ;;  %v11866_v29 = vld [vmem:[%s15484_s3 + $0x188] sm:$0xff]   ;;  %v16248_v41 = vld [vmem:[#allocation45_spill] sm:$0xff] }
 0x45a   : > { %v6053_v35 = vsel %vm5567_vm4, %v6041_v53, %v6052_v0  ;;  %v6061_v3 = vsel %vm5567_vm4, %v6049_v59, %v6060_v26  ;;  %v6089_v17 = vrot.slane %v6087_v8, 7  ;;  %v11868_v8 = vld [vmem:[%s15484_s3 + $0x198] sm:$0xff]   ;;  %v11881_v0 = vld [vmem:[%s15484_s3 + $0x200] sm:$0xff]  }
 0x45c   : > { %10771 = vmatpush3.bf16.msra.mxu1 %v11852_v9  ;;  %v6068_v9 = vor.u32 %v14760_v15, %v6065_v1  ;;  %v6090_v15 = vshll.u32 %v16219_v6, 16  ;;  %v16244_v1 = vld [vmem:[#allocation13_spill] sm:$0xff]  ;;  %v11867_v6 = vld [vmem:[%s15484_s3 + $0x190] sm:$0xff]  }
 0x45d   : > { %10772 = vmatprep.subr.bf16.mxu1 %v11853_v19  ;;  %v16245_v26 = vmax.f32 %v16244_v1, 0.0  ;;  %v16268_v1 = vshrl.u32 %v14885_v11, 16 }
 0x45e   : > { %v6069_v46 = vsel %vm5567_vm4, %v6057_v51, %v6068_v9  ;;  %v6092_v24 = vor.u32 %v6090_v15, %v6089_v17  ;;  %v16242_v51 = vld [vmem:[#allocation22_spill] sm:$0xff]  ;;  %v16250_v17 = vld [vmem:[#allocation53_spill] sm:$0xff] }
 0x45f   : > { %10737 = vmatmul.mubr.bf16.gmra.mrb[8].mxu1 %v5997_v12  ;;  %v16224_v12 = vld [vmem:[#allocation34_spill] sm:$0xff] }
 0x460   : > { %10740 = vmatprep.mubr.bf16.mxu1 %v6005_v36  ;;  %10773 = vmatpush3.bf16.msra.mxu1 %v11853_v19  ;;  %v6093_v48 = vsel %vm5567_vm4, %v15034_v58, %v6092_v24  ;;  %v16220_v19 = vld [vmem:[#allocation33_spill] sm:$0xff]  ;;  %v11860_v58 = vld [vmem:[%s15484_s3 + $0x158] sm:$0xff]   ;;  %vm11916_vm4 = vmpackc.low %vm14423_vm9, %vm14397_vm14 }
 0x461   : > { %10774 = vmatprep.subr.bf16.mxu1 %v11854_v21  ;;  %v11864_v36 = vld [vmem:[%s15484_s3 + $0x178] sm:$0xff]   ;;  %v11870_v15 = vld [vmem:[%s15484_s3 + $0x1a8] sm:$0xff]   ;;  %vm16265_vm14 = vmmov %vm16263_vm1 }
 0x462   : > { %v16251_v24 = vld [vmem:[#allocation46_spill] sm:$0xff]  ;;  %vm16269_vm9 = vmmov %vm16263_vm1 }
 0x464   : > { %10775 = vmatpush3.bf16.msra.mxu1 %v11854_v21  ;;  %v16223_v21 = vld [vmem:[#allocation37_spill] sm:$0xff] }
 0x465   : > { %10776 = vmatprep.subr.bf16.mxu1 %v11855_v18 }
 0x467   : > { %10741 = vmatmul.mubr.bf16.gmra.mrb[12].mxu1 %v6013_v14  ;;  %v16229_v14 = vld [vmem:[#allocation43_spill] sm:$0xff] }
 0x468   : > { %10744 = vmatprep.mubr.bf16.mxu1 %v6021_v57  ;;  %10777 = vmatpush3.bf16.msra.mxu1 %v11855_v18  ;;  %v16226_v18 = vld [vmem:[#allocation42_spill] sm:$0xff]  ;;  %v16231_v57 = vld [vmem:[#allocation49_spill] sm:$0xff] }
 0x469   : > { %10778 = vmatprep.subr.bf16.mxu1 %v11856_v61 }
 0x46c   : > { %10779 = vmatpush3.bf16.msra.mxu1 %v11856_v61  ;;  %v16228_v61 = vld [vmem:[#allocation35_spill] sm:$0xff] }
 0x46d   : > { %10816 = vmatprep.subr.bf16.mxu1 %v11857_v38 }
 0x46f   : > { %10745 = vmatmul.mubr.bf16.gmra.mrb[16].mxu1 %v6029_v45  ;;  %v16236_v45 = vld [vmem:[#allocation19_spill] sm:$0xff] }
 0x470   : > { %10748 = vmatprep.mubr.bf16.mxu1 %v6037_v2  ;;  %v16237_v53 = vmax.f32 %v16236_v45, 0.0  ;;  %v16238_v2 = vld [vmem:[#allocation24_spill] sm:$0xff] }
 0x471   : > { %v16239_v59 = vmax.f32 %v16238_v2, 0.0  ;;  %v11876_v45 = vld [vmem:[%s15484_s3 + $0x1d8] sm:$0xff]   ;;  %v11878_v2 = vld [vmem:[%s15484_s3 + $0x1e8] sm:$0xff]  }
 0x473   : > { %v11917_v22 = vpack.c.bf16 %v16239_v59, %v16237_v53  ;;  %v11877_v53 = vld [vmem:[%s15484_s3 + $0x1e0] sm:$0xff]   ;;  %v11879_v59 = vld [vmem:[%s15484_s3 + $0x1f0] sm:$0xff]  }
 0x477   : > { %10749 = vmatmul.mubr.bf16.gmra.mrb[20].mxu1 %v6045_v4 }
 0x478   : > { %10752 = vmatprep.mubr.bf16.mxu1 %v6053_v35  ;;  %v16243_v35 = vmax.f32 %v16242_v51, 0.0 }
 0x47a   : > { %v11920_v9 = vpack.c.bf16 %v16245_v26, %v16243_v35 }
 0x47f   : > { %10753 = vmatmul.mubr.bf16.gmra.mrb[24].mxu1 %v6061_v3  ;;  %v16246_v3 = vld [vmem:[#allocation51_spill] sm:$0xff] }
 0x480   : > { %10756 = vmatprep.mubr.bf16.mxu1 %v6069_v46  ;;  %v16247_v46 = vld [vmem:[#allocation52_spill] sm:$0xff] }
 0x487   : > { %10757 = vmatmul.mubr.bf16.gmra.mrb[28].mxu1 %v6077_v25  ;;  %v16249_v25 = vld [vmem:[#allocation54_spill] sm:$0xff] }
 0x488   : > { %10760 = vmatprep.mubr.bf16.mxu1 %v6085_v20  ;;  %v11869_v20 = vld [vmem:[%s15484_s3 + $0x1a0] sm:$0xff]  }
 0x48f   : > { %10761 = vmatmul.mubr.bf16.gmra.mrb[32].mxu1 %v6093_v48  ;;  %v16252_v48 = vld [vmem:[#allocation56_spill] sm:$0xff] }
 0x490   : > { %10780 = vmatprep.mubr.bf16.mxu1 %v16211_v56  ;;  %v16221_v56 = vld [vmem:[#allocation31_spill] sm:$0xff] }
 0x497   : > { %10781 = vmatmul.mubr.bf16.vlgmr.msra.gmra.mrb[0].mxu1 %v16216_v32  ;;  %v11861_v32 = vld [vmem:[%s15484_s3 + $0x160] sm:$0xff]  }
 0x498   : > { %10784 = vmatprep.mubr.bf16.mxu1 %v16220_v19  ;;  %10817 = vmatpush3.bf16.msra.mxu1 %v11857_v38  ;;  %v16233_v38 = vld [vmem:[#allocation44_spill] sm:$0xff] }
 0x499   : > { %10818 = vmatprep.subr.bf16.mxu1 %v11858_v28  ;;  %v11872_v19 = vld [vmem:[%s15484_s3 + $0x1b8] sm:$0xff]  }
 0x49c   : > { %10819 = vmatpush3.bf16.msra.mxu1 %v11858_v28  ;;  %v11871_v28 = vld [vmem:[%s15484_s3 + $0x1b0] sm:$0xff]  }
 0x49d   : > { %10820 = vmatprep.subr.bf16.mxu1 %v11859_v50 }
 0x49f   : > { %10785 = vmatmul.mubr.bf16.gmra.mrb[4].mxu1 %v16221_v56  ;;  %v16254_v56 = vld [vmem:[#allocation47_spill] sm:$0xff] }
 0x4a0   : > { %10788 = vmatprep.mubr.bf16.mxu1 %v16222_v34  ;;  %10821 = vmatpush3.bf16.msra.mxu1 %v11859_v50  ;;  %v16253_v50 = vld [vmem:[#allocation57_spill] sm:$0xff]  ;;  %v16255_v34 = vld [vmem:[#allocation59_spill] sm:$0xff] }
 0x4a1   : > { %10822 = vmatprep.subr.bf16.mxu1 %v11860_v58 }
 0x4a4   : > { %10823 = vmatpush3.bf16.msra.mxu1 %v11860_v58  ;;  %v11873_v58 = vld [vmem:[%s15484_s3 + $0x1c0] sm:$0xff]  }
 0x4a5   : > { %10824 = vmatprep.subr.bf16.mxu1 %v11861_v32 }
 0x4a7   : > { %10789 = vmatmul.mubr.bf16.gmra.mrb[8].mxu1 %v16223_v21  ;;  %v16258_v21 = vld [vmem:[#allocation8_spill] sm:$0xff] }
 0x4a8   : > { %10792 = vmatprep.mubr.bf16.mxu1 %v16224_v12  ;;  %10825 = vmatpush3.bf16.msra.mxu1 %v11861_v32  ;;  %v16256_v32 = vld [vmem:[#allocation58_spill] sm:$0xff]  ;;  %v16259_v12 = vld [vmem:[#allocation7_spill] sm:$0xff] }
 0x4a9   : > { %10826 = vmatprep.subr.bf16.mxu1 %v11862_v60 }
 0x4ac   : > { %10827 = vmatpush3.bf16.msra.mxu1 %v11862_v60  ;;  %v16257_v60 = vld [vmem:[#allocation48_spill] sm:$0xff] }
 0x4ad   : > { %10828 = vmatprep.subr.bf16.mxu1 %v11863_v7 }
 0x4af   : > { %10793 = vmatmul.mubr.bf16.gmra.mrb[12].mxu1 %v16225_v44  ;;  %v6669_v44 = vld [vmem:[#allocation2 + $0xa0] sm:$0x1] }
 0x4b0   : > { %10796 = vmatprep.mubr.bf16.mxu1 %v16226_v18  ;;  %10829 = vmatpush3.bf16.msra.mxu1 %v11863_v7  ;;  %v16260_v7 = vshrl.u32 %v14856_v55, 16  ;;  %v16261_v18 = vshll.u32 %v14872_v47, 16 }
 0x4b1   : > { %10830 = vmatprep.subr.bf16.mxu1 %v11864_v36 }
 0x4b4   : > { %10831 = vmatpush3.bf16.msra.mxu1 %v11864_v36  ;;  %v6821_v36 = vor.u32 %v16260_v7, %v16259_v12  ;;  %v11885_v12 = vld [vmem:[%s15484_s3 + $0x220] sm:$0xff]   ;;  %v11907_v7 = vld [vmem:[#allocation2 + $0x48] sm:$0xff] }
 0x4b5   : > { %10868 = vmatprep.subr.bf16.mxu1 %v11865_v52 }
 0x4b7   : > { %10797 = vmatmul.mubr.bf16.gmra.mrb[16].mxu1 %v16227_v13  ;;  %v6831_v13 = vshll.u32 %v6669_v44, 16  ;;  %v11908_v44 = vld [vmem:[#allocation2 + $0x50] sm:$0xff] }
 0x4b8   : > { %10800 = vmatprep.mubr.bf16.mxu1 %v16228_v61  ;;  %v16262_v61 = vld [vmem:[#allocation55_spill] sm:$0xff] }
 0x4bf   : > { %10801 = vmatmul.mubr.bf16.gmra.mrb[20].mxu1 %v16229_v14 }
 0x4c0   : > { %10804 = vmatprep.mubr.bf16.mxu1 %v16230_v5  ;;  %v16264_v5 = vshrl.u32 %v14872_v47, 16 }
 0x4c7   : > { %10805 = vmatmul.mubr.bf16.gmra.mrb[24].mxu1 %v16231_v57 }
 0x4c8   : > { %10808 = vmatprep.mubr.bf16.mxu1 %v16232_v31  ;;  %v6833_v31 = vrot.slane %v6831_v13, 1 }
 0x4cf   : > { %10809 = vmatmul.mubr.bf16.gmra.mrb[28].mxu1 %v16233_v38 }
 0x4d0   : > { %11918 = vmatprep.mubr.msk.bf16.mxu1 %vm11916_vm4, %v11917_v22  ;;  %v11880_v22 = vld [vmem:[%s15484_s3 + $0x1f8] sm:$0xff]   ;;  %vm16281_vm4 = vmmov %vm16275_vm2 }
 0x4d7   : > { %11921 = vmatmul.mubr.msk.bf16.gmra.mrb[32].mxu1 %vm11919_vm0, %v11920_v9  ;;  %vm16282_vm0 = vmmov %vm16275_vm2 }
 0x4d8   : > { %10832 = vmatprep.mubr.bf16.mxu1 %v16246_v3  ;;  %v11902_v3 = vld [vmem:[#allocation2 + $0x20] sm:$0xff] }
 0x4df   : > { %10833 = vmatmul.mubr.bf16.vlgmr.msra.gmra.mrb[0].mxu1 %v16247_v46 }
 0x4e0   : > { %10836 = vmatprep.mubr.bf16.mxu1 %v16248_v41  ;;  %10869 = vmatpush3.bf16.msra.mxu1 %v11865_v52  ;;  %v6825_v52 = vrot.slane %v16261_v18, 1  ;;  %v7627_v18 = vrot.slane %v11908_v44, 1 }
 0x4e1   : > { %10870 = vmatprep.subr.bf16.mxu1 %v11866_v29 }
 0x4e2   : > { %v6826_v14 = vsel %vm16263_vm1, %v6821_v36, %v6825_v52  ;;  %v6829_v57 = vor.u32 %v16264_v5, %v6825_v52  ;;  %v7625_v36 = vrot.slane %v11907_v7, 1  ;;  %v11886_v52 = vld [vmem:[%s15484_s3 + $0x228] sm:$0xff]   ;;  %v11909_v5 = vld [vmem:[#allocation2 + $0x58] sm:$0xff]  ;;  %vm16283_vm1 = vmmov %vm16282_vm0 }
 0x4e4   : > { %10871 = vmatpush3.bf16.msra.mxu1 %v11866_v29  ;;  %v6834_v38 = vsel %vm16265_vm14, %v6829_v57, %v6833_v31  ;;  %v7615_v29 = vrot.slane %v11902_v3, 1  ;;  %v11910_v31 = vld [vmem:[#allocation2 + $0x60] sm:$0xff]  ;;  %v11915_v3 = vld [vmem:[#allocation2 + $0x88] sm:$0xff]  ;;  %vm16284_vm14 = vmmov %vm16282_vm0 }
 0x4e5   : > { %10872 = vmatprep.subr.bf16.mxu1 %v11867_v6 }
 0x4e7   : > { %10837 = vmatmul.mubr.bf16.gmra.mrb[4].mxu1 %v16249_v25 }
 0x4e8   : > { %10840 = vmatprep.mubr.bf16.mxu1 %v16250_v17  ;;  %10873 = vmatpush3.bf16.msra.mxu1 %v11867_v6 }
 0x4e9   : > { %10874 = vmatprep.subr.bf16.mxu1 %v11868_v8 }
 0x4ec   : > { %10875 = vmatpush3.bf16.msra.mxu1 %v11868_v8 }
 0x4ed   : > { %10876 = vmatprep.subr.bf16.mxu1 %v11869_v20 }
 0x4ef   : > { %10841 = vmatmul.mubr.bf16.gmra.mrb[8].mxu1 %v16251_v24 }
 0x4f0   : > { %10844 = vmatprep.mubr.bf16.mxu1 %v16252_v48  ;;  %10877 = vmatpush3.bf16.msra.mxu1 %v11869_v20  ;;  %v11904_v20 = vld [vmem:[#allocation2 + $0x30] sm:$0xff] }
 0x4f1   : > { %10878 = vmatprep.subr.bf16.mxu1 %v11870_v15 }
 0x4f4   : > { %10879 = vmatpush3.bf16.msra.mxu1 %v11870_v15  ;;  %v7619_v15 = vrot.slane %v11904_v20, 1 }
 0x4f5   : > { %10880 = vmatprep.subr.bf16.mxu1 %v11871_v28 }
 0x4f7   : > { %10845 = vmatmul.mubr.bf16.gmra.mrb[12].mxu1 %v16253_v50 }
 0x4f8   : > { %10848 = vmatprep.mubr.bf16.mxu1 %v14823_v43  ;;  %10881 = vmatpush3.bf16.msra.mxu1 %v11871_v28 }
 0x4f9   : > { %10882 = vmatprep.subr.bf16.mxu1 %v11872_v19 }
 0x4fc   : > { %10883 = vmatpush3.bf16.msra.mxu1 %v11872_v19  ;;  %v11883_v19 = vld [vmem:[%s15484_s3 + $0x210] sm:$0xff]  }
 0x4fd   : > { %10920 = vmatprep.subr.bf16.mxu1 %v11873_v58 }
 0x4ff   : > { %10849 = vmatmul.mubr.bf16.gmra.mrb[16].mxu1 %v14826_v63 }
 0x500   : > { %10852 = vmatprep.mubr.bf16.mxu1 %v16254_v56 }
 0x507   : > { %10853 = vmatmul.mubr.bf16.gmra.mrb[20].mxu1 %v16255_v34 }
 0x508   : > { %10856 = vmatprep.mubr.bf16.mxu1 %v16256_v32 }
 0x50f   : > { %10857 = vmatmul.mubr.bf16.gmra.mrb[24].mxu1 %v16257_v60 }
 0x510   : > { %10860 = vmatprep.mubr.bf16.mxu1 %v16258_v21 }
 0x517   : > { %10861 = vmatmul.mubr.bf16.gmra.mrb[28].mxu1 %v16262_v61 }
 0x518   : > { %10864 = vmatprep.mubr.bf16.mxu1 %v6826_v14 }
 0x51f   : > { %10865 = vmatmul.mubr.bf16.gmra.mrb[32].mxu1 %v6834_v38  ;;  %v7631_v38 = vrot.slane %v11910_v31, 1 }
 0x520   : > { %10884 = vmatprep.mubr.bf16.mxu1 %v16247_v46 }
 0x527   : > { %10885 = vmatmul.mubr.bf16.vlgmr.msra.gmra.mrb[0].mxu1 %v16248_v41  ;;  %v16270_v41 = vld [vmem:[#allocation18_spill] sm:$0xff] }
 0x528   : > { %10888 = vmatprep.mubr.bf16.mxu1 %v16249_v25  ;;  %10921 = vmatpush3.bf16.msra.mxu1 %v11873_v58  ;;  %v7614_v6 = vrot.slane %v16270_v41, 1  ;;  %v11903_v25 = vld [vmem:[#allocation2 + $0x28] sm:$0xff]  ;;  %v16285_v41 = vrot.slane %v14856_v55, 1 }
 0x529   : > { %10922 = vmatprep.subr.bf16.mxu1 %v11874_v10  ;;  %v16291_v55 = vld [vmem:[#allocation62_spill] sm:$0xff] }
 0x52a   : > { %v7616_v8 = vsel %vm16271_vm11, %v7614_v6, %v7615_v29  ;;  %vm16290_vm11 = vmmov %vm16282_vm0 }
 0x52c   : > { %10923 = vmatpush3.bf16.msra.mxu1 %v11874_v10  ;;  %v11888_v10 = vld [vmem:[%s15484_s3 + $0x238] sm:$0xff]  }
 0x52d   : > { %10924 = vmatprep.subr.bf16.mxu1 %v11875_v16 }
 0x52f   : > { %10889 = vmatmul.mubr.bf16.gmra.mrb[4].mxu1 %v16250_v17  ;;  %v7617_v17 = vrot.slane %v11903_v25, 1  ;;  %v16287_v25 = vld [vmem:[#allocation61_spill] sm:$0xff] }
 0x530   : > { %10892 = vmatprep.mubr.bf16.mxu1 %v16251_v24  ;;  %10925 = vmatpush3.bf16.msra.mxu1 %v11875_v16  ;;  %v11882_v24 = vld [vmem:[%s15484_s3 + $0x208] sm:$0xff]  }
 0x531   : > { %10926 = vmatprep.subr.bf16.mxu1 %v11876_v45  ;;  %v7620_v28 = vsel %vm16273_vm6, %v7617_v17, %v7619_v15  ;;  %vm16299_vm6 = vcmask 1044480  }
 0x534   : > { %10927 = vmatpush3.bf16.msra.mxu1 %v11876_v45 }
 0x535   : > { %10928 = vmatprep.subr.bf16.mxu1 %v11877_v53 }
 0x537   : > { %10893 = vmatmul.mubr.bf16.gmra.mrb[8].mxu1 %v16252_v48  ;;  %v7618_v48 = vsel %vm16272_vm7, %v7615_v29, %v7617_v17  ;;  %v7641_v29 = vrot.slane %v11915_v3, 1  ;;  %v16288_v17 = vrot.slane %v14872_v47, 1  ;;  %v16293_v47 = vld [vmem:[#allocation6_spill] sm:$0xff]  ;;  %vm16298_vm7 = vsmask.f32 6400 }
 0x538   : > { %10896 = vmatprep.mubr.bf16.mxu1 %v16253_v50  ;;  %10929 = vmatpush3.bf16.msra.mxu1 %v11877_v53  ;;  %v11905_v50 = vld [vmem:[#allocation2 + $0x38] sm:$0xff]  ;;  %v11911_v53 = vld [vmem:[#allocation2 + $0x68] sm:$0xff] }
 0x539   : > { %10930 = vmatprep.subr.bf16.mxu1 %v11878_v2  ;;  %v7621_v58 = vrot.slane %v11905_v50, 1 }
 0x53c   : > { %10931 = vmatpush3.bf16.msra.mxu1 %v11878_v2  ;;  %v7633_v2 = vrot.slane %v11911_v53, 1 }
 0x53d   : > { %10932 = vmatprep.subr.bf16.mxu1 %v11879_v59 }
 0x53f   : > { %10897 = vmatmul.mubr.bf16.gmra.mrb[12].mxu1 %v14823_v43  ;;  %v16266_v43 = vshll.u32 %v14885_v11, 16 }
 0x540   : > { %10900 = vmatprep.mubr.bf16.mxu1 %v14826_v63  ;;  %10933 = vmatpush3.bf16.msra.mxu1 %v11879_v59  ;;  %v15271_v63 = vld [vmem:[#allocation2 + $0xa8] sm:$0x1]  ;;  %v11912_v59 = vld [vmem:[#allocation2 + $0x70] sm:$0xff] }
 0x541   : > { %10934 = vmatprep.subr.bf16.mxu1 %v11880_v22  ;;  %v7288_v4 = vrot.slane %v16266_v43, 1  ;;  %v7294_v51 = vshll.u32 %v15271_v63, 16 }
 0x543   : > { %v7289_v35 = vsel %vm16267_vm12, %v6829_v57, %v7288_v4  ;;  %v7292_v26 = vor.u32 %v16268_v1, %v7288_v4  ;;  %v7296_v9 = vrot.slane %v7294_v51, 1  ;;  %v7629_v57 = vrot.slane %v11909_v5, 1  ;;  %v11913_v4 = vld [vmem:[#allocation2 + $0x78] sm:$0xff]  ;;  %vm16286_vm12 = vmmov %vm16282_vm0 }
 0x544   : > { %10935 = vmatpush3.bf16.msra.mxu1 %v11880_v22  ;;  %v7635_v22 = vrot.slane %v11912_v59, 1  ;;  %v7637_v51 = vrot.slane %v11913_v4, 1  ;;  %v7644_v6 = vsel %vm16286_vm12, %v7641_v29, %v16285_v41  ;;  %v15367_v41 = vld [vmem:[%s11984_s29 + $0x38] sm:$0xff]  }
 0x545   : > { %10972 = vmatprep.subr.bf16.mxu1 %v11881_v0  ;;  %v7297_v46 = vsel %vm16269_vm9, %v7292_v26, %v7296_v9  ;;  %v7630_v16 = vsel %vm16278_vm10, %v7627_v18, %v7629_v57  ;;  %v7632_v45 = vsel %vm16279_vm3, %v7629_v57, %v7631_v38  ;;  %vm16289_vm9 = vmmov %vm16282_vm0 }
 0x546   : > { %v7636_v43 = vsel %vm16281_vm4, %v7633_v2, %v7635_v22  ;;  %v7638_v26 = vsel %vm16282_vm0, %v7635_v22, %v7637_v51 }
 0x547   : > { %10901 = vmatmul.mubr.bf16.gmra.mrb[16].mxu1 %v16254_v56  ;;  %v11906_v56 = vld [vmem:[#allocation2 + $0x40] sm:$0xff] }
 0x548   : > { %10904 = vmatprep.mubr.bf16.mxu1 %v16255_v34  ;;  %v7623_v34 = vrot.slane %v11906_v56, 1  ;;  %v8312_v56 = vld [vmem:[%s11984_s29 + $0x8] sm:$0xe] }
 0x54a   : > { %v7626_v13 = vsel %vm16276_vm13, %v7623_v34, %v7625_v36 }
 0x54f   : > { %10905 = vmatmul.mubr.bf16.gmra.mrb[20].mxu1 %v16256_v32  ;;  %v11884_v32 = vld [vmem:[%s15484_s3 + $0x218] sm:$0xff]  }
 0x550   : > { %10908 = vmatprep.mubr.bf16.mxu1 %v16257_v60  ;;  %v7622_v60 = vsel %vm16274_vm5, %v7619_v15, %v7621_v58  ;;  %v7649_v15 = vrot.slane %v15271_v63, 1  ;;  %v16295_v63 = vld [vmem:[#allocation12_spill] sm:$0xff]  ;;  %vm16300_vm5 = vmmov %vm16299_vm6 }
 0x557   : > { %10909 = vmatmul.mubr.bf16.gmra.mrb[24].mxu1 %v16258_v21  ;;  %v7624_v21 = vsel %vm16275_vm2, %v7621_v58, %v7623_v34  ;;  %v8313_v34 = vld [vmem:[%s11984_s29 + $0xc] sm:$0xf]  ;;  %vm16301_vm2 = vmmov %vm16300_vm5 }
 0x558   : > { %10912 = vmatprep.mubr.bf16.mxu1 %v16262_v61  ;;  %v7628_v61 = vsel %vm16277_vm15, %v7625_v36, %v7627_v18  ;;  %v9588_v36 = vld [vmem:[%s11984_s29 + $0x20] sm:$0xff]   ;;  %vm16302_vm13 = vmmov %vm16301_vm2 }
 0x559   : > { %vm16303_vm15 = vmmov %vm16301_vm2 }
 0x55a   : > { %vm16304_vm10 = vmmov %vm16301_vm2 }
 0x55b   : > { %vm16305_vm3 = vmmov %vm16301_vm2 }
 0x55c   : > { %vm16307_vm4 = vmmov %vm16301_vm2 }
 0x55d   : > { %vm16308_vm0 = vmmov %vm16301_vm2 }
 0x55e   : > { %vm16311_vm12 = vmmov %vm16308_vm0 }
 0x55f   : > { %10913 = vmatmul.mubr.bf16.gmra.mrb[28].mxu1 %v6826_v14  ;;  %v11887_v14 = vld [vmem:[%s15484_s3 + $0x230] sm:$0xff]  }
 0x560   : > { %10916 = vmatprep.mubr.bf16.mxu1 %v7289_v35  ;;  %v11914_v35 = vld [vmem:[#allocation2 + $0x80] sm:$0xff] }
 0x561   : > { %v7639_v1 = vrot.slane %v11914_v35, 1 }
 0x563   : > { %v7640_v9 = vsel %vm16283_vm1, %v7637_v51, %v7639_v1  ;;  %vm16309_vm1 = vmmov %vm16308_vm0 }
 0x567   : > { %10917 = vmatmul.mubr.bf16.gmra.mrb[32].mxu1 %v7297_v46  ;;  %v7642_v46 = vsel %vm16284_vm14, %v7639_v1, %v7641_v29  ;;  %vm16310_vm14 = vmmov %vm16308_vm0 }
 0x568   : > { %10936 = vmatprep.mubr.bf16.mxu1 %v7616_v8  ;;  %v7647_v8 = vrot.slane %v14885_v11, 1  ;;  %v16292_v11 = vld [vmem:[#allocation9_spill] sm:$0xff] }
 0x56a   : > { %v7648_v20 = vsel %vm16289_vm9, %v16288_v17, %v7647_v8  ;;  %vm16312_vm9 = vmmov %vm16308_vm0 }
 0x56f   : > { %10937 = vmatmul.mubr.bf16.vlgmr.msra.gmra.mrb[0].mxu1 %v7618_v48  ;;  %v16294_v48 = vld [vmem:[#allocation60_spill] sm:$0xff] }
 0x570   : > { %10940 = vmatprep.mubr.bf16.mxu1 %v7620_v28  ;;  %10973 = vmatpush3.bf16.msra.mxu1 %v11881_v0  ;;  %v7634_v0 = vsel %vm16280_vm8, %v7631_v38, %v7633_v2  ;;  %v16296_v28 = vld [vmem:[#allocation63_spill] sm:$0xff]  ;;  %vm16306_vm8 = vmmov %vm16301_vm2 }
 0x571   : > { %10974 = vmatprep.subr.bf16.mxu1 %v11882_v24 }
 0x574   : > { %10975 = vmatpush3.bf16.msra.mxu1 %v11882_v24  ;;  %v7650_v24 = vsel %vm16290_vm11, %v7647_v8, %v7649_v15  ;;  %vm16313_vm11 = vmmov %vm16308_vm0 }
 0x575   : > { %10976 = vmatprep.subr.bf16.mxu1 %v11883_v19 }
 0x577   : > { %10941 = vmatmul.mubr.bf16.gmra.mrb[4].mxu1 %v7622_v60  ;;  %v8349_v60 = vunpack.c.l.bf16 %v8312_v56 }
 0x578   : > { %10944 = vmatprep.mubr.bf16.mxu1 %v7624_v21  ;;  %10977 = vmatpush3.bf16.msra.mxu1 %v11883_v19  ;;  %v16297_v19 = vld [vmem:[#allocation64_spill] sm:$0xff]  ;;  %v8350_v21 = vunpack.c.l.bf16 %v8313_v34 }
 0x579   : > { %10978 = vmatprep.subr.bf16.mxu1 %v11884_v32  ;;  %v8467_v44 = vrot.slane %v8349_v60, 3  ;;  %v9592_v60 = vld [vmem:[%s11984_s29 + $0x40] sm:$0xff]  }
 0x57c   : > { %10979 = vmatpush3.bf16.msra.mxu1 %v11884_v32 }
 0x57d   : > { %10980 = vmatprep.subr.bf16.mxu1 %v11885_v12 }
 0x57f   : > { %10945 = vmatmul.mubr.bf16.gmra.mrb[8].mxu1 %v7626_v13  ;;  %v9439_v13 = vunpack.c.h.bf16 %v9588_v36 }
 0x580   : > { %10948 = vmatprep.mubr.bf16.mxu1 %v7628_v61  ;;  %10981 = vmatpush3.bf16.msra.mxu1 %v11885_v12  ;;  %v9589_v61 = vld [vmem:[%s11984_s29 + $0x28] sm:$0xff]  }
 0x581   : > { %10982 = vmatprep.subr.bf16.mxu1 %v11886_v52  ;;  %v9442_v59 = vunpack.c.l.bf16 %v9589_v61  ;;  %v8480_v51 = vrot.slane %v9439_v13, 3 }
 0x584   : > { %10983 = vmatpush3.bf16.msra.mxu1 %v11886_v52  ;;  %v9438_v52 = vunpack.c.l.bf16 %v9588_v36 }
 0x585   : > { %10984 = vmatprep.subr.bf16.mxu1 %v11887_v14 }
 0x586   : > { %v8478_v4 = vrot.slane %v9438_v52, 3 }
 0x587   : > { %10949 = vmatmul.mubr.bf16.gmra.mrb[12].mxu1 %v7630_v16 }
 0x588   : > { %10952 = vmatprep.mubr.bf16.mxu1 %v7632_v45  ;;  %10985 = vmatpush3.bf16.msra.mxu1 %v11887_v14 }
 0x589   : > { %10986 = vmatprep.subr.bf16.mxu1 %v11888_v10 }
 0x58c   : > { %10987 = vmatpush3.bf16.msra.mxu1 %v11888_v10 }
 0x58f   : > { %10953 = vmatmul.mubr.bf16.gmra.mrb[16].mxu1 %v7634_v0 }
 0x590   : > { %10956 = vmatprep.mubr.bf16.mxu1 %v7636_v43 }
 0x597   : > { %10957 = vmatmul.mubr.bf16.gmra.mrb[20].mxu1 %v7638_v26  ;;  %v9590_v26 = vld [vmem:[%s11984_s29 + $0x30] sm:$0xff]  }
 0x598   : > { %10960 = vmatprep.mubr.bf16.mxu1 %v7640_v9  ;;  %v9446_v17 = vunpack.c.l.bf16 %v9590_v26 }
 0x59a   : > { %v8486_v56 = vrot.slane %v9446_v17, 3 }
 0x59f   : > { %10961 = vmatmul.mubr.bf16.gmra.mrb[24].mxu1 %v7642_v46  ;;  %v8482_v46 = vrot.slane %v9442_v59, 3 }
 0x5a0   : > { %10964 = vmatprep.mubr.bf16.mxu1 %v7644_v6 }
 0x5a7   : > { %10965 = vmatmul.mubr.bf16.gmra.mrb[28].mxu1 %v16287_v25  ;;  %v8481_v25 = vsel %vm16303_vm15, %v8478_v4, %v8480_v51  ;;  %vm16319_vm15 = vmmov %vm16308_vm0 }
 0x5a8   : > { %10968 = vmatprep.mubr.bf16.mxu1 %v7648_v20 }
 0x5af   : > { %10969 = vmatmul.mubr.bf16.gmra.mrb[32].mxu1 %v7650_v24 }
 0x5b0   : > { %10988 = vmatprep.mubr.bf16.mxu1 %v14910_v33 }
 0x5b7   : > { %10989 = vmatmul.mubr.bf16.vlgmr.msra.gmra.mrb[0].mxu1 %v14913_v54 }
 0x5b8   : > { %10992 = vmatprep.mubr.bf16.mxu1 %v14916_v37  ;;  %v7930_v37 = vld [vmem:[#allocation2 + $0xa8] sm:$0x3] }
 0x5b9   : > { %v8025_v33 = vshrl.u32 %v7930_v37, 16  ;;  %v8028_v54 = vshll.u32 %v7930_v37, 16 }
 0x5bb   : > { %v8030_v50 = vrot.slane %v8028_v54, 2 }
 0x5bf   : > { %10993 = vmatmul.mubr.bf16.gmra.mrb[4].mxu1 %v14920_v27  ;;  %v8027_v27 = vrot.slane %v8025_v33, 1 }
 0x5c0   : > { %10996 = vmatprep.mubr.bf16.mxu1 %v16291_v55  ;;  %v9447_v55 = vunpack.c.h.bf16 %v9590_v26 }
 0x5c1   : > { %v8031_v58 = vor.u32 %v8030_v50, %v8027_v27  ;;  %v8483_v27 = vsel %vm16305_vm3, %v8480_v51, %v8482_v46  ;;  %vm16321_vm3 = vmmov %vm16308_vm0 }
 0x5c7   : > { %10997 = vmatmul.mubr.bf16.gmra.mrb[8].mxu1 %v16292_v11  ;;  %v9443_v11 = vunpack.c.h.bf16 %v9589_v61 }
 0x5c8   : > { %11000 = vmatprep.mubr.bf16.mxu1 %v16293_v47 }
 0x5cf   : > { %11001 = vmatmul.mubr.bf16.gmra.mrb[12].mxu1 %v16294_v48 }
 0x5d0   : > { %11004 = vmatprep.mubr.bf16.mxu1 %v16295_v63 }
 0x5d7   : > { %11005 = vmatmul.mubr.bf16.gmra.mrb[16].mxu1 %v16296_v28 }
 0x5d8   : > { %11008 = vmatprep.mubr.bf16.mxu1 %v16297_v19  ;;  %v9450_v19 = vunpack.c.l.bf16 %v15367_v41 }
 0x5df   : > { %11009 = vmatmul.mubr.bf16.gmra.mrb[20].mxu1 %v14965_v40  ;;  %v8032_v40 = vsel %vm16298_vm7, %v14985_v42, %v8031_v58  ;;  %v15353_v42 = vld [vmem:[%s15485_s4] ss:$0 sm:$0xff]  ;;  %vm16314_vm7 = vmmov %vm16308_vm0 }
 0x5e0   : > { %11012 = vmatprep.mubr.bf16.mxu1 %v14977_v30  ;;  %v9586_v30 = vld [vmem:[%s11984_s29 + $0x10] sm:$0xff]  }
 0x5e1   : > { %v9431_v32 = vunpack.c.h.bf16 %v9586_v30 }
 0x5e7   : > { %11013 = vmatmul.mubr.bf16.gmra.mrb[24].mxu1 %v14980_v49  ;;  %v9587_v49 = vld [vmem:[%s11984_s29 + $0x18] sm:$0xff]  }
 0x5e8   : > { %11016 = vmatprep.mubr.bf16.mxu1 %v14983_v23  ;;  %v9430_v23 = vunpack.c.l.bf16 %v9586_v30  ;;  %v9434_v12 = vunpack.c.l.bf16 %v9587_v49  ;;  %v9435_v10 = vunpack.c.h.bf16 %v9587_v49 }
 0x5ea   : > { %v8470_v7 = vrot.slane %v9430_v23, 3  ;;  %v8474_v18 = vrot.slane %v9434_v12, 3  ;;  %v8476_v3 = vrot.slane %v9435_v10, 3  ;;  %v8488_v23 = vrot.slane %v9447_v55, 3 }
 0x5eb   : > { %v8490_v12 = vrot.slane %v9450_v19, 3 }
 0x5ec   : > { %v8477_v28 = vsel %vm16304_vm10, %v8474_v18, %v8476_v3  ;;  %v8479_v30 = vsel %vm16306_vm8, %v8476_v3, %v8478_v4  ;;  %vm16320_vm10 = vmmov %vm16308_vm0 }
 0x5ed   : > { %v8491_v10 = vsel %vm16309_vm1, %v8488_v23, %v8490_v12  ;;  %vm16322_vm8 = vmmov %vm16308_vm0 }
 0x5ee   : > { %vm16324_vm1 = vmmov %vm16308_vm0 }
 0x5ef   : > { %11017 = vmatmul.mubr.bf16.gmra.mrb[28].mxu1 %v14988_v39  ;;  %v8472_v39 = vrot.slane %v9431_v32, 3  ;;  %v8484_v32 = vrot.slane %v9443_v11, 3 }
 0x5f0   : > { %11020 = vmatprep.mubr.bf16.mxu1 %v14992_v62  ;;  %v8468_v62 = vrot.slane %v8350_v21, 3 }
 0x5f1   : > { %v8473_v5 = vsel %vm16299_vm6, %v8470_v7, %v8472_v39  ;;  %v8475_v53 = vsel %vm16301_vm2, %v8472_v39, %v8474_v18  ;;  %v9593_v18 = vld [vmem:[%s11984_s29 + $0x48] sm:$0xff]   ;;  %v8487_v59 = vsel %vm16310_vm14, %v8484_v32, %v8486_v56  ;;  %vm16315_vm6 = vmmov %vm16308_vm0 }
 0x5f2   : > { %v8469_v38 = vsel %vm16300_vm5, %v8467_v44, %v8468_v62  ;;  %v8471_v2 = vsel %vm16302_vm13, %v8468_v62, %v8470_v7  ;;  %v9454_v44 = vunpack.c.l.bf16 %v9592_v60  ;;  %v9455_v62 = vunpack.c.h.bf16 %v9592_v60  ;;  %vm16316_vm5 = vmmov %vm16308_vm0 }
 0x5f3   : > { %vm16317_vm2 = vmmov %vm16308_vm0 }
 0x5f4   : > { %v8494_v51 = vrot.slane %v9454_v44, 3  ;;  %vm16318_vm13 = vmmov %vm16308_vm0 }
 0x5f5   : > { %vm16325_vm14 = vmmov %vm16308_vm0 }
 0x5f7   : > { %11021 = vmatmul.mubr.bf16.gmra.mrb[32].mxu1 %v8032_v40 }
 0x68a   : > { %v10990_v14 = vpop.f32.mrb[0].mxu1 }
 0x68b   : > { %v8395_v57 = vadd.f32 %v10990_v14, %v15353_v42  ;;  %v8133_v31 = vpop.f32.mrb[1].mxu1  ;;  %v8489_v14 = vsel %vm16307_vm4, %v8486_v56, %v8488_v23  ;;  %vm16323_vm4 = vmmov %vm16308_vm0 }
 0x68c   : > { %v8393_v16 = vadd.f32 %v15353_v42, %v8133_v31  ;;  %v10991_v45 = vpop.f32.mrb[2].mxu1 }
 0x68d   : > { %v8578_v22 = vadd.f32 %v8473_v5, %v8395_v57  ;;  %v8396_v0 = vadd.f32 %v10991_v45, %v15353_v42  ;;  %v8136_v43 = vpop.f32.mrb[3].mxu1  ;;  %v8485_v5 = vsel %vm16308_vm0, %v8482_v46, %v8484_v32 }
 0x68e   : > { %v8576_v35 = vadd.f32 %v8469_v38, %v8393_v16  ;;  %v8394_v1 = vadd.f32 %v15353_v42, %v8136_v43  ;;  %v9451_v16 = vunpack.c.h.bf16 %v15367_v41 }
 0x68f   : > { %v8579_v9 = vadd.f32 %v8475_v53, %v8396_v0  ;;  %v8614_v6 = vmax.f32 %v8578_v22, 0.0  ;;  %v9458_v22 = vunpack.c.l.bf16 %v9593_v18 }
 0x690   : > { %v8577_v29 = vadd.f32 %v8471_v2, %v8394_v1  ;;  %v8612_v20 = vmax.f32 %v8576_v35, 0.0  ;;  %v8496_v35 = vrot.slane %v9455_v62, 3 }
 0x691   : > { %v8615_v8 = vmax.f32 %v8579_v9, 0.0  ;;  %v9594_v9 = vld [vmem:[%s11984_s29 + $0x50] sm:$0xff]   ;;  %v8498_v41 = vrot.slane %v9458_v22, 3 }
 0x692   : > { %v8613_v15 = vmax.f32 %v8577_v29, 0.0  ;;  %v10994_v24 = vpop.f32.mrb[4].mxu1  ;;  %v8492_v29 = vrot.slane %v9451_v16, 3  ;;  %v8497_v17 = vsel %vm16311_vm12, %v8494_v51, %v8496_v35  ;;  %v9463_v11 = vunpack.c.h.bf16 %v9594_v9  ;;  %vm16326_vm12 = vmmov %vm16308_vm0 }
 0x693   : > { %v9504_v47 = vpack.c.bf16 %v8615_v8, %v8614_v6  ;;  %v8399_v48 = vadd.f32 %v10994_v24, %v15353_v42  ;;  %v8149_v63 = vpop.f32.mrb[5].mxu1  ;;  %v15400_v6 = vld [vmem:[%s11984_s29 + $0x58] sm:$0xff]  }
 0x694   : > { %v9499_v37 = vpack.c.bf16 %v8613_v15, %v8612_v20  ;;  %v8397_v33 = vadd.f32 %v15353_v42, %v8149_v63  ;;  %v10995_v54 = vpop.f32.mrb[6].mxu1  ;;  %v9462_v20 = vunpack.c.l.bf16 %v9594_v9  ;;  %v8493_v19 = vsel %vm16312_vm9, %v8490_v12, %v8492_v29  ;;  %vm16327_vm9 = vmmov %vm16308_vm0 }
 0x695   : > { %9603 = vst [vmem:[%s15373_s8 + $0x8] sm:$0xff] %v9504_v47   ;;  %v8582_v50 = vadd.f32 %v8481_v25, %v8399_v48  ;;  %v8400_v58 = vadd.f32 %v10995_v54, %v15353_v42  ;;  %v8152_v40 = vpop.f32.mrb[7].mxu1  ;;  %v9459_v47 = vunpack.c.h.bf16 %v9593_v18  ;;  %v8495_v56 = vsel %vm16314_vm7, %v8492_v29, %v8494_v51  ;;  %vm16329_vm7 = vmmov %vm16308_vm0 }
 0x696   : > { %9500 = vst [vmem:[%s15373_s8] sm:$0xff] %v9499_v37   ;;  %v8580_v34 = vadd.f32 %v8477_v28, %v8397_v33  ;;  %v8398_v49 = vadd.f32 %v15353_v42, %v8152_v40  ;;  %v9466_v37 = vunpack.c.l.bf16 %v15400_v6  ;;  %v8504_v32 = vrot.slane %v9463_v11, 3 }
 0x697   : > { %v8583_v21 = vadd.f32 %v8483_v27, %v8400_v58  ;;  %v8618_v39 = vmax.f32 %v8582_v50, 0.0  ;;  %v8499_v50 = vsel %vm16313_vm11, %v8496_v35, %v8498_v41  ;;  %v8500_v60 = vrot.slane %v9459_v47, 3  ;;  %vm16328_vm11 = vmmov %vm16308_vm0 }
 0x698   : > { %v8581_v7 = vadd.f32 %v8479_v30, %v8398_v49  ;;  %v8616_v52 = vmax.f32 %v8580_v34, 0.0  ;;  %v8502_v34 = vrot.slane %v9462_v20, 3 }
 0x699   : > { %v8619_v36 = vmax.f32 %v8583_v21, 0.0  ;;  %v9596_v21 = vld [vmem:[%s11984_s29 + $0x60] sm:$0xff]  }
 0x69a   : > { %v8617_v13 = vmax.f32 %v8581_v7, 0.0  ;;  %v10998_v61 = vpop.f32.mrb[8].mxu1  ;;  %v8506_v7 = vrot.slane %v9466_v37, 3  ;;  %v9470_v62 = vunpack.c.l.bf16 %v9596_v21  ;;  %v9471_v18 = vunpack.c.h.bf16 %v9596_v21 }
 0x69b   : > { %v9514_v57 = vpack.c.bf16 %v8619_v36, %v8618_v39  ;;  %v8403_v31 = vadd.f32 %v10998_v61, %v15353_v42  ;;  %v8165_v38 = vpop.f32.mrb[9].mxu1  ;;  %v8503_v22 = vsel %vm16318_vm13, %v8500_v60, %v8502_v34  ;;  %vm16333_vm13 = vmmov %vm16308_vm0 }
 0x69c   : > { %v9509_v45 = vpack.c.bf16 %v8617_v13, %v8616_v52  ;;  %v8401_v53 = vadd.f32 %v15353_v42, %v8165_v38  ;;  %v10999_v2 = vpop.f32.mrb[10].mxu1  ;;  %v9597_v52 = vld [vmem:[%s11984_s29 + $0x68] sm:$0xff]   ;;  %v8507_v16 = vsel %vm16317_vm2, %v8504_v32, %v8506_v7  ;;  %v8510_v35 = vrot.slane %v9470_v62, 3  ;;  %vm16332_vm2 = vmmov %vm16308_vm0 }
 0x69d   : > { %9605 = vst [vmem:[%s15373_s8 + $0x18] sm:$0xff] %v9514_v57   ;;  %v8586_v0 = vadd.f32 %v8489_v14, %v8403_v31  ;;  %v8404_v43 = vadd.f32 %v10999_v2, %v15353_v42  ;;  %v8168_v4 = vpop.f32.mrb[11].mxu1  ;;  %v8501_v57 = vsel %vm16316_vm5, %v8498_v41, %v8500_v60  ;;  %vm16331_vm5 = vmmov %vm16308_vm0 }
 0x69e   : > { %9604 = vst [vmem:[%s15373_s8 + $0x10] sm:$0xff] %v9509_v45   ;;  %v8584_v1 = vadd.f32 %v8485_v5, %v8401_v53  ;;  %v8402_v26 = vadd.f32 %v15353_v42, %v8168_v4  ;;  %v8505_v5 = vsel %vm16315_vm6, %v8502_v34, %v8504_v32  ;;  %v9467_v45 = vunpack.c.h.bf16 %v15400_v6  ;;  %vm16330_vm6 = vmmov %vm16308_vm0 }
 0x69f   : > { %v8587_v3 = vadd.f32 %v8491_v10, %v8404_v43  ;;  %v8622_v8 = vmax.f32 %v8586_v0, 0.0  ;;  %v9474_v0 = vunpack.c.l.bf16 %v9597_v52 }
 0x6a0   : > { %v8585_v46 = vadd.f32 %v8487_v59, %v8402_v26  ;;  %v8620_v15 = vmax.f32 %v8584_v1, 0.0  ;;  %v8512_v1 = vrot.slane %v9471_v18, 3 }
 0x6a1   : > { %v8623_v25 = vmax.f32 %v8587_v3, 0.0  ;;  %v9598_v3 = vld [vmem:[%s11984_s29 + $0x70] sm:$0xff]   ;;  %v8514_v6 = vrot.slane %v9474_v0, 3 }
 0x6a2   : > { %v8621_v24 = vmax.f32 %v8585_v46, 0.0  ;;  %v11002_v55 = vpop.f32.mrb[12].mxu1  ;;  %v8508_v46 = vrot.slane %v9467_v45, 3  ;;  %v8513_v20 = vsel %vm16319_vm15, %v8510_v35, %v8512_v1  ;;  %v9479_v47 = vunpack.c.h.bf16 %v9598_v3 }
 0x6a3   : > { %v9524_v48 = vpack.c.bf16 %v8623_v25, %v8622_v8  ;;  %v8407_v63 = vadd.f32 %v11002_v55, %v15353_v42  ;;  %v8181_v28 = vpop.f32.mrb[13].mxu1  ;;  %v15428_v8 = vld [vmem:[%s11984_s29 + $0x78] sm:$0xff]  }
 0x6a4   : > { %v9519_v33 = vpack.c.bf16 %v8621_v24, %v8620_v15  ;;  %v8405_v54 = vadd.f32 %v15353_v42, %v8181_v28  ;;  %v11003_v27 = vpop.f32.mrb[14].mxu1  ;;  %v9478_v15 = vunpack.c.l.bf16 %v9598_v3  ;;  %v8509_v37 = vsel %vm16320_vm10, %v8506_v7, %v8508_v46 }
 0x6a5   : > { %9607 = vst [vmem:[%s15373_s8 + $0x28] sm:$0xff] %v9524_v48   ;;  %v8590_v58 = vadd.f32 %v8497_v17, %v8407_v63  ;;  %v8408_v40 = vadd.f32 %v11003_v27, %v15353_v42  ;;  %v8184_v30 = vpop.f32.mrb[15].mxu1  ;;  %v9475_v48 = vunpack.c.h.bf16 %v9597_v52  ;;  %v8511_v34 = vsel %vm16322_vm8, %v8508_v46, %v8510_v35 }
 0x6a6   : > { %9606 = vst [vmem:[%s15373_s8 + $0x20] sm:$0xff] %v9519_v33   ;;  %v8588_v49 = vadd.f32 %v8493_v19, %v8405_v54  ;;  %v8406_v23 = vadd.f32 %v15353_v42, %v8184_v30  ;;  %v9482_v33 = vunpack.c.l.bf16 %v15428_v8  ;;  %v8520_v60 = vrot.slane %v9479_v47, 3 }
 0x6a7   : > { %v8591_v12 = vadd.f32 %v8499_v50, %v8408_v40  ;;  %v8626_v36 = vmax.f32 %v8590_v58, 0.0  ;;  %v8515_v58 = vsel %vm16321_vm3, %v8512_v1, %v8514_v6  ;;  %v8516_v21 = vrot.slane %v9475_v48, 3 }
 0x6a8   : > { %v8589_v39 = vadd.f32 %v8495_v56, %v8406_v23  ;;  %v8624_v13 = vmax.f32 %v8588_v49, 0.0  ;;  %v8518_v49 = vrot.slane %v9478_v15, 3  ;;  %v8348_v15 = vld [vmem:[%s11984_s29 + $0x98] sm:$0x3] }
 0x6a9   : > { %v8627_v44 = vmax.f32 %v8591_v12, 0.0  ;;  %v9600_v12 = vld [vmem:[%s11984_s29 + $0x80] sm:$0xff]  }
 0x6aa   : > { %v8625_v61 = vmax.f32 %v8589_v39, 0.0  ;;  %v11006_v14 = vpop.f32.mrb[16].mxu1  ;;  %v8522_v39 = vrot.slane %v9482_v33, 3  ;;  %v9486_v18 = vunpack.c.l.bf16 %v9600_v12  ;;  %v9487_v52 = vunpack.c.h.bf16 %v9600_v12 }
 0x6ab   : > { %v9534_v31 = vpack.c.bf16 %v8627_v44, %v8626_v36  ;;  %v8411_v38 = vadd.f32 %v11006_v14, %v15353_v42  ;;  %v8197_v10 = vpop.f32.mrb[17].mxu1  ;;  %v8519_v0 = vsel %vm16325_vm14, %v8516_v21, %v8518_v49 }
 0x6ac   : > { %v9529_v53 = vpack.c.bf16 %v8625_v61, %v8624_v13  ;;  %v8409_v2 = vadd.f32 %v15353_v42, %v8197_v10  ;;  %v11007_v59 = vpop.f32.mrb[18].mxu1  ;;  %v9601_v13 = vld [vmem:[%s11984_s29 + $0x88] sm:$0xff]   ;;  %v8523_v45 = vsel %vm16324_vm1, %v8520_v60, %v8522_v39  ;;  %v8526_v1 = vrot.slane %v9486_v18, 3 }
 0x6ad   : > { %9609 = vst [vmem:[%s15373_s8 + $0x38] sm:$0xff] %v9534_v31   ;;  %v8594_v43 = vadd.f32 %v8505_v5, %v8411_v38  ;;  %v8412_v4 = vadd.f32 %v11007_v59, %v15353_v42  ;;  %v8200_v51 = vpop.f32.mrb[19].mxu1  ;;  %v8517_v31 = vsel %vm16308_vm0, %v8514_v6, %v8516_v21  ;;  %v9491_v33 = vunpack.c.h.bf16 %v9601_v13 }
 0x6ae   : > { %9608 = vst [vmem:[%s15373_s8 + $0x30] sm:$0xff] %v9529_v53   ;;  %v8592_v26 = vadd.f32 %v8501_v57, %v8409_v2  ;;  %v8410_v9 = vadd.f32 %v15353_v42, %v8200_v51  ;;  %v8521_v57 = vsel %vm16323_vm4, %v8518_v49, %v8520_v60  ;;  %v9483_v53 = vunpack.c.h.bf16 %v15428_v8 }
 0x6af   : > { %v8595_v29 = vadd.f32 %v8507_v16, %v8412_v4  ;;  %v8630_v25 = vmax.f32 %v8594_v43, 0.0  ;;  %v9490_v43 = vunpack.c.l.bf16 %v9601_v13 }
 0x6b0   : > { %v8593_v41 = vadd.f32 %v8503_v22, %v8410_v9  ;;  %v8628_v24 = vmax.f32 %v8592_v26, 0.0  ;;  %v8528_v26 = vrot.slane %v9487_v52, 3  ;;  %v8524_v46 = vrot.slane %v9483_v53, 3 }
 0x6b1   : > { %v8631_v17 = vmax.f32 %v8595_v29, 0.0  ;;  %v8530_v8 = vrot.slane %v9490_v43, 3 }
 0x6b2   : > { %v8629_v55 = vmax.f32 %v8593_v41, 0.0  ;;  %v11010_v11 = vpop.f32.mrb[20].mxu1  ;;  %v9602_v41 = vld [vmem:[%s11984_s29 + $0x90] sm:$0xff]   ;;  %v8527_v49 = vsel %vm16329_vm7, %v8524_v46, %v8526_v1 }
 0x6b3   : > { %v9544_v63 = vpack.c.bf16 %v8631_v17, %v8630_v25  ;;  %v8415_v28 = vadd.f32 %v11010_v11, %v15353_v42  ;;  %v8213_v19 = vpop.f32.mrb[21].mxu1  ;;  %v9494_v47 = vunpack.c.l.bf16 %v9602_v41  ;;  %v9495_v48 = vunpack.c.h.bf16 %v9602_v41 }
 0x6b4   : > { %v9539_v54 = vpack.c.bf16 %v8629_v55, %v8628_v24  ;;  %v8413_v27 = vadd.f32 %v15353_v42, %v8213_v19  ;;  %v11011_v50 = vpop.f32.mrb[22].mxu1 }
 0x6b5   : > { %9611 = vst [vmem:[%s15373_s8 + $0x48] sm:$0xff] %v9544_v63   ;;  %v8598_v40 = vadd.f32 %v8513_v20, %v8415_v28  ;;  %v8416_v30 = vadd.f32 %v11011_v50, %v15353_v42  ;;  %v8216_v56 = vpop.f32.mrb[23].mxu1  ;;  %v8529_v20 = vsel %vm16326_vm12, %v8526_v1, %v8528_v26  ;;  %v8534_v60 = vrot.slane %v9494_v47, 3 }
 0x6b6   : > { %9610 = vst [vmem:[%s15373_s8 + $0x40] sm:$0xff] %v9539_v54   ;;  %v8596_v23 = vadd.f32 %v8509_v37, %v8413_v27  ;;  %v8414_v32 = vadd.f32 %v15353_v42, %v8216_v56  ;;  %v8525_v37 = vsel %vm16327_vm9, %v8522_v39, %v8524_v46  ;;  %v8536_v21 = vrot.slane %v9495_v48, 3 }
 0x6b7   : > { %v8599_v7 = vadd.f32 %v8515_v58, %v8416_v30  ;;  %v8634_v44 = vmax.f32 %v8598_v40, 0.0  ;;  %v8531_v58 = vsel %vm16328_vm11, %v8528_v26, %v8530_v8  ;;  %v8385_v40 = vunpack.c.l.bf16 %v8348_v15 }
 0x6b8   : > { %v8597_v36 = vadd.f32 %v8511_v34, %v8414_v32  ;;  %v8632_v61 = vmax.f32 %v8596_v23, 0.0 }
 0x6b9   : > { %v8635_v62 = vmax.f32 %v8599_v7, 0.0  ;;  %v8532_v7 = vrot.slane %v9491_v33, 3 }
 0x6ba   : > { %v8633_v14 = vmax.f32 %v8597_v36, 0.0  ;;  %v11014_v5 = vpop.f32.mrb[24].mxu1  ;;  %v8538_v36 = vrot.slane %v8385_v40, 3 }
 0x6bb   : > { %v9554_v38 = vpack.c.bf16 %v8635_v62, %v8634_v44  ;;  %v8419_v10 = vadd.f32 %v11014_v5, %v15353_v42  ;;  %v8229_v16 = vpop.f32.mrb[25].mxu1 }
 0x6bc   : > { %v9549_v2 = vpack.c.bf16 %v8633_v14, %v8632_v61  ;;  %v8417_v59 = vadd.f32 %v15353_v42, %v8229_v16  ;;  %v11015_v22 = vpop.f32.mrb[26].mxu1  ;;  %v8537_v61 = vsel %vm16330_vm6, %v8534_v60, %v8536_v21 }
 0x6bd   : > { %9613 = vst [vmem:[%s15373_s8 + $0x58] sm:$0xff] %v9554_v38   ;;  %v8602_v4 = vadd.f32 %v8521_v57, %v8419_v10  ;;  %v8420_v51 = vadd.f32 %v11015_v22, %v15353_v42  ;;  %v8232_v35 = vpop.f32.mrb[27].mxu1  ;;  %v8535_v22 = vsel %vm16333_vm13, %v8532_v7, %v8534_v60 }
 0x6be   : > { %9612 = vst [vmem:[%s15373_s8 + $0x50] sm:$0xff] %v9549_v2   ;;  %v8600_v9 = vadd.f32 %v8517_v31, %v8417_v59  ;;  %v8418_v3 = vadd.f32 %v15353_v42, %v8232_v35  ;;  %v8533_v31 = vsel %vm16331_vm5, %v8530_v8, %v8532_v7 }
 0x6bf   : > { %v8603_v29 = vadd.f32 %v8523_v45, %v8420_v51  ;;  %v8638_v25 = vmax.f32 %v8602_v4, 0.0  ;;  %v8539_v45 = vsel %vm16332_vm2, %v8536_v21, %v8538_v36 }
 0x6c0   : > { %v8601_v6 = vadd.f32 %v8519_v0, %v8418_v3  ;;  %v8636_v24 = vmax.f32 %v8600_v9, 0.0 }
 0x6c1   : > { %v8639_v17 = vmax.f32 %v8603_v29, 0.0 }
 0x6c2   : > { %v8637_v55 = vmax.f32 %v8601_v6, 0.0  ;;  %v11018_v11 = vpop.f32.mrb[28].mxu1 }
 0x6c3   : > { %v9564_v63 = vpack.c.bf16 %v8639_v17, %v8638_v25  ;;  %v8423_v28 = vadd.f32 %v11018_v11, %v15353_v42  ;;  %v8245_v19 = vpop.f32.mrb[29].mxu1 }
 0x6c4   : > { %v9559_v54 = vpack.c.bf16 %v8637_v55, %v8636_v24  ;;  %v8421_v27 = vadd.f32 %v15353_v42, %v8245_v19  ;;  %v11019_v50 = vpop.f32.mrb[30].mxu1 }
 0x6c5   : > { %9615 = vst [vmem:[%s15373_s8 + $0x68] sm:$0xff] %v9564_v63   ;;  %v8606_v30 = vadd.f32 %v8529_v20, %v8423_v28  ;;  %v8424_v56 = vadd.f32 %v11019_v50, %v15353_v42  ;;  %v8248_v34 = vpop.f32.mrb[31].mxu1 }
 0x6c6   : > { %9614 = vst [vmem:[%s15373_s8 + $0x60] sm:$0xff] %v9559_v54   ;;  %v8604_v23 = vadd.f32 %v8525_v37, %v8421_v27  ;;  %v8422_v32 = vadd.f32 %v15353_v42, %v8248_v34 }
 0x6c7   : > { %v8607_v12 = vadd.f32 %v8531_v58, %v8424_v56  ;;  %v8642_v44 = vmax.f32 %v8606_v30, 0.0 }
 0x6c8   : > { %v8605_v39 = vadd.f32 %v8527_v49, %v8422_v32  ;;  %v8640_v18 = vmax.f32 %v8604_v23, 0.0 }
 0x6c9   : > { %v8643_v62 = vmax.f32 %v8607_v12, 0.0 }
 0x6ca   : > { %v8641_v52 = vmax.f32 %v8605_v39, 0.0  ;;  %v11022_v13 = vpop.f32.mrb[32].mxu1 }
 0x6cb   : > { %v9574_v14 = vpack.c.bf16 %v8643_v62, %v8642_v44  ;;  %v8427_v5 = vadd.f32 %v11022_v13, %v15353_v42  ;;  %v8261_v57 = vpop.f32.mrb[33].mxu1 }
 0x6cc   : > { %v9569_v38 = vpack.c.bf16 %v8641_v52, %v8640_v18  ;;  %v8425_v10 = vadd.f32 %v15353_v42, %v8261_v57  ;;  %v11023_v16 = vpop.f32.mrb[34].mxu1 }
 0x6cd   : > { %9617 = vst [vmem:[%s15373_s8 + $0x78] sm:$0xff] %v9574_v14   ;;  %v8610_v53 = vadd.f32 %v8537_v61, %v8427_v5  ;;  %v8428_v2 = vadd.f32 %v11023_v16, %v15353_v42  ;;  %v8264_v59 = vpop.f32.mrb[35].mxu1 }
 0x6ce   : > { %9616 = vst [vmem:[%s15373_s8 + $0x70] sm:$0xff] %v9569_v38   ;;  %v8608_v0 = vadd.f32 %v8533_v31, %v8425_v10  ;;  %v8426_v43 = vadd.f32 %v15353_v42, %v8264_v59 }
 0x6cf   : > { %v8611_v4 = vadd.f32 %v8539_v45, %v8428_v2  ;;  %v8646_v35 = vmax.f32 %v8610_v53, 0.0 }
 0x6d0   : > { %v8609_v51 = vadd.f32 %v8535_v22, %v8426_v43  ;;  %v8644_v26 = vmax.f32 %v8608_v0, 0.0 }
 0x6d1   : > { %v8647_v1 = vmax.f32 %v8611_v4, 0.0 }
 0x6d2   : > { %v8645_v9 = vmax.f32 %v8609_v51, 0.0 }
 0x6d3   : > { %v9584_v3 = vpack.c.bf16 %v8647_v1, %v8646_v35 }
 0x6d4   : > { %v9579_v29 = vpack.c.bf16 %v8645_v9, %v8644_v26 }
 0x6d5   : > { %9619 = vst [vmem:[%s15373_s8 + $0x88] sm:$0xff] %v9584_v3  }
 0x6d6   : > { %9618 = vst [vmem:[%s15373_s8 + $0x80] sm:$0xff] %v9579_v29  }
 0x6d7 PF: > { %s15_s18 = sadd.s32 1, %s11928_s18  }
 0x6d8   : > { %p12_p4 = scmp.ge.s32.totalorder %s15_s18, 4  }
 0x6da   :  { %14 = sbr.rel (!%p12_p4) target bundleno = 1 (0x1), region = 86 }

</bundles_post_ra>
